<compile_context>
chip_gen: v5e
topology: v5e:2x2
jax: 0.10.0
libtpu: 0.0.40
codegen_flags: <defaults>
</compile_context>

<pallas_src>
import functools

import numpy as np
import jax
import jax.numpy as jnp
from jax import lax
from jax.experimental import pallas as pl
from jax.experimental.pallas import tpu as pltpu

KSZ = 5  # conv kernel size


def _round_up(x, m):
    return (x + m - 1) // m * m


# ---------------------------------------------------------------------------
# Fused forward kernel (one grid step == one image)
# ---------------------------------------------------------------------------
def _vae_kernel(x_ref, cw_ref, cb_ref,
                w1_ref, b1_ref, wmu_ref, bmu_ref,
                w2_ref, b2_ref, w3_ref, b3_ref,
                o_ref,
                in0_ref, p4_ref, p5_ref, p6_ref,
                *, d2, d3, width, height):
    f32 = jnp.float32
    bf16 = jnp.bfloat16

    def conv(a, layer, oh, act):
        """Slab conv: a is (Hin, CP) f32, row = spatial-h, lane = w*Cin + ci.

        out[oh_, ow*Cout+co] = b[co] + sum_kh (a[oh_+kh, :] @ Toeplitz[layer, kh]) -- the kw
        unrolling lives inside the prepared weight, so a 5x5 conv is just 5 shifted matmuls.
        """
        acc = jnp.dot(a[0:oh, :].astype(bf16), cw_ref[layer, 0],
                      preferred_element_type=f32)
        for kh in range(1, KSZ):
            acc = acc + jnp.dot(a[kh:kh + oh, :].astype(bf16), cw_ref[layer, kh],
                                preferred_element_type=f32)
        acc = acc + cb_ref[layer]
        return jax.nn.sigmoid(acc) if act == "sigmoid" else jnp.maximum(acc, 0.0)

    # ---------------- encode: conv1 -> conv2 -> conv3 (all ReLU) ----------------
    in0_ref[...] = jnp.zeros_like(in0_ref)
    in0_ref[:, 0:height] = x_ref[0]                 # Cin = 1 -> lane index == spatial w
    a0 = in0_ref[...]                               # (width, CP)
    a1 = conv(a0, 0, width - 4, "relu")             # (width-4, CP), lanes [0, (height-4)*2)
    a2 = conv(a1, 1, width - 8, "relu")             # (width-8, CP), lanes [0, (height-8)*4)
    a3 = conv(a2, 2, d2, "relu")                    # (d2, CP),      lanes [0, d3*8)

    # ---------------- dense middle (permutations + lin1 residual baked in) ------
    row = d3 * 8
    h1 = b1_ref[...]                                # (1, hidden)
    for h in range(d2):                             # flatten handled as per-row weight blocks
        h1 = h1 + jnp.dot(a3[h:h + 1, :].astype(bf16), w1_ref[h],
                          preferred_element_type=f32)
    h1 = jnp.maximum(h1, 0.0)                       # relu(x + lin1(x))
    z = jnp.dot(h1.astype(bf16), wmu_ref[...], preferred_element_type=f32) + bmu_ref[...]
    d = jnp.dot(z.astype(bf16), w2_ref[...], preferred_element_type=f32) + b2_ref[...]
    d = jnp.maximum(d, 0.0)                         # relu(lin2(mu(x)))
    d = d + jnp.dot(d.astype(bf16), w3_ref[...], preferred_element_type=f32) + b3_ref[...]
    d = jnp.maximum(d, 0.0)                         # relu(d + lin3(d)), NHWC-flat (1, hidden)

    # ---------------- decode: 3 transposed convs (zero-pad slabs in VMEM) -------
    p4_ref[...] = jnp.zeros_like(p4_ref)
    for h in range(d2):                             # unflatten + spatial (k-1) zero padding
        p4_ref[h + 4:h + 5, 4 * 8:4 * 8 + row] = d[:, h * row:(h + 1) * row]
    a4 = conv(p4_ref[...], 3, d2 + 4, "relu")       # (d2+4, CP), lanes [0, (d3+4)*4)

    p5_ref[...] = jnp.zeros_like(p5_ref)
    p5_ref[4:4 + d2 + 4, 4 * 4:4 * 4 + (d3 + 4) * 4] = a4[:, 0:(d3 + 4) * 4]
    a5 = conv(p5_ref[...], 4, d2 + 8, "relu")       # (d2+8, CP), lanes [0, (d3+8)*2)

    p6_ref[...] = jnp.zeros_like(p6_ref)
    p6_ref[4:4 + d2 + 8, 4 * 2:4 * 2 + (d3 + 8) * 2] = a5[:, 0:(d3 + 8) * 2]
    a6 = conv(p6_ref[...], 5, width, "sigmoid")     # (width, CP), lanes [0, height)

    o_ref[0] = a6[:, 0:height]


# ---------------------------------------------------------------------------
# One-time host-side parameter preparation
# ---------------------------------------------------------------------------
def prepare_params(params, *, width, height, bottleneck):
    d2, d3 = width - 4 * 3, height - 4 * 3
    hidden = d2 * d3 * 8

    def convT_to_conv(w):   # ConvTranspose2d (in,out,k,k) -> equivalent Conv2d (out,in,k,k)
        return np.transpose(np.asarray(w, np.float32)[:, :, ::-1, ::-1], (1, 0, 2, 3))

    # (conv weight as OIHW valid-correlation, bias, lane-spatial extent of its input slab)
    cfgs = [
        (np.asarray(params["conv1_w"], np.float32), params["conv1_b"], height),
        (np.asarray(params["conv2_w"], np.float32), params["conv2_b"], height - 4),
        (np.asarray(params["conv3_w"], np.float32), params["conv3_b"], height - 8),
        (convT_to_conv(params["conv4_w"]), params["conv4_b"], d3 + 8),
        (convT_to_conv(params["conv5_w"]), params["conv5_b"], (d3 + 4) + 8),
        (convT_to_conv(params["conv6_w"]), params["conv6_b"], (d3 + 8) + 8),
    ]
    cp = 128
    for w, _, wi in cfgs:
        cout, cin = w.shape[0], w.shape[1]
        cp = max(cp, _round_up(wi * cin, 128), _round_up((wi - 4) * cout, 128))

    # Block-Toeplitz conv weights: out[:, ow*Cout+co] = sum_kh a[oh+kh, :] @ M[kh]
    conv_w = np.zeros((6, KSZ, cp, cp), np.float32)
    conv_b = np.zeros((6, 1, cp), np.float32)
    for l, (w, b, wi) in enumerate(cfgs):
        cout, cin = w.shape[0], w.shape[1]
        wo = wi - (KSZ - 1)
        for kh in range(KSZ):
            for ow in range(wo):
                for kw in range(KSZ):
                    wc = ow + kw
                    conv_w[l, kh, wc * cin:(wc + 1) * cin,
                           ow * cout:(ow + 1) * cout] = w[:, :, kh, kw].T
        conv_b[l, 0, :wo * cout] = np.tile(np.asarray(b, np.float32), wo)

    # NHWC-flat -> NCHW-flat permutation (bakes both torch .view() flattens into weights)
    perm = np.zeros(hidden, np.int64)
    for i2 in range(d2):
        for i3 in range(d3):
            for c in range(8):
                perm[i2 * d3 * 8 + i3 * 8 + c] = c * d2 * d3 + i2 * d3 + i3

    hid_p = _round_up(hidden, 128)
    bot_p = _round_up(bottleneck, 128)

    # lin1 with residual baked in: x + lin1(x) = x @ (I + W1^T) + b1, split into per-row blocks
    w1t = np.asarray(params["lin1_w"], np.float32).T
    a1m = (np.eye(hidden, dtype=np.float32) + w1t)[np.ix_(perm, perm)]
    w1_blk = np.zeros((d2, cp, hid_p), np.float32)
    for h in range(d2):
        w1_blk[h, :d3 * 8, :hidden] = a1m[h * d3 * 8:(h + 1) * d3 * 8, :]
    b1 = np.zeros((1, hid_p), np.float32)
    b1[0, :hidden] = np.asarray(params["lin1_b"], np.float32)[perm]

    wmu = np.zeros((hid_p, bot_p), np.float32)
    wmu[:hidden, :bottleneck] = np.asarray(params["mu_w"], np.float32).T[perm, :]
    bmu = np.zeros((1, bot_p), np.float32)
    bmu[0, :bottleneck] = np.asarray(params["mu_b"], np.float32)

    w2 = np.zeros((bot_p, hid_p), np.float32)
    w2[:bottleneck, :hidden] = np.asarray(params["lin2_w"], np.float32).T[:, perm]
    b2 = np.zeros((1, hid_p), np.float32)
    b2[0, :hidden] = np.asarray(params["lin2_b"], np.float32)[perm]

    w3 = np.zeros((hid_p, hid_p), np.float32)       # lin3 residual kept in f32 in-kernel
    w3[:hidden, :hidden] = np.asarray(params["lin3_w"], np.float32).T[np.ix_(perm, perm)]
    b3 = np.zeros((1, hid_p), np.float32)
    b3[0, :hidden] = np.asarray(params["lin3_b"], np.float32)[perm]

    bf = lambda a: jnp.asarray(a, dtype=jnp.bfloat16)
    fp = lambda a: jnp.asarray(a, dtype=jnp.float32)
    return {
        "conv_w": bf(conv_w), "conv_b": fp(conv_b),
        "w1": bf(w1_blk), "b1": fp(b1),
        "wmu": bf(wmu), "bmu": fp(bmu),
        "w2": bf(w2), "b2": fp(b2),
        "w3": bf(w3), "b3": fp(b3),
    }


# ---------------------------------------------------------------------------
# Forward wrapper: ONE pallas_call for the whole network
# ---------------------------------------------------------------------------
def vae_forward(x_nchw, prep, *, width, height):
    B = x_nchw.shape[0]
    d2, d3 = width - 4 * 3, height - 4 * 3
    cp = prep["conv_w"].shape[-1]

    x2d = x_nchw.reshape(B, width, height).astype(jnp.float32)

    def whole(arr):
        nd = arr.ndim
        return pl.BlockSpec(arr.shape, lambda b: (0,) * nd)

    kernel = functools.partial(_vae_kernel, d2=d2, d3=d3, width=width, height=height)
    out = pl.pallas_call(
        kernel,
        out_shape=jax.ShapeDtypeStruct((B, width, height), jnp.float32),
        grid=(B,),
        in_specs=[
            pl.BlockSpec((1, width, height), lambda b: (b, 0, 0)),
            whole(prep["conv_w"]), whole(prep["conv_b"]),
            whole(prep["w1"]), whole(prep["b1"]),
            whole(prep["wmu"]), whole(prep["bmu"]),
            whole(prep["w2"]), whole(prep["b2"]),
            whole(prep["w3"]), whole(prep["b3"]),
        ],
        out_specs=pl.BlockSpec((1, width, height), lambda b: (b, 0, 0)),
        scratch_shapes=[
            pltpu.VMEM((width, cp), jnp.float32),        # conv1 input slab
            pltpu.VMEM((d2 + 8, cp), jnp.float32),       # conv4 zero-padded input slab
            pltpu.VMEM((d2 + 12, cp), jnp.float32),      # conv5 zero-padded input slab
            pltpu.VMEM((d2 + 16, cp), jnp.float32),      # conv6 zero-padded input slab
        ],
        compiler_params=pltpu.CompilerParams(dimension_semantics=("parallel",)),
    )(x2d, prep["conv_w"], prep["conv_b"],
      prep["w1"], prep["b1"], prep["wmu"], prep["bmu"],
      prep["w2"], prep["b2"], prep["w3"], prep["b3"])
    return out.reshape(B, 1, width, height)


# ---------------------------------------------------------------------------
# Pure-JAX reference (matches the PyTorch forward) for a correctness check
# ---------------------------------------------------------------------------
def vae_reference(x, params, *, width, height):
    d2, d3 = width - 4 * 3, height - 4 * 3
    B = x.shape[0]

    def conv(h, w, b):
        y = lax.conv_general_dilated(h, w, (1, 1), "VALID",
                                     dimension_numbers=("NCHW", "OIHW", "NCHW"))
        return y + b.reshape(1, -1, 1, 1)

    def conv_t(h, w, b):  # ConvTranspose2d == full correlation with flipped/swapped weight
        wc = jnp.transpose(w[:, :, ::-1, ::-1], (1, 0, 2, 3))
        hp = jnp.pad(h, ((0, 0), (0, 0), (4, 4), (4, 4)))
        return conv(hp, wc, b)

    h = jax.nn.relu(conv(x, params["conv1_w"], params["conv1_b"]))
    h = jax.nn.relu(conv(h, params["conv2_w"], params["conv2_b"]))
    h = jax.nn.relu(conv(h, params["conv3_w"], params["conv3_b"]))
    h = h.reshape(B, -1)
    h = jax.nn.relu(h + h @ params["lin1_w"].T + params["lin1_b"])
    z = h @ params["mu_w"].T + params["mu_b"]
    d = jax.nn.relu(z @ params["lin2_w"].T + params["lin2_b"])
    d = jax.nn.relu(d + d @ params["lin3_w"].T + params["lin3_b"])
    d = d.reshape(B, 8, d2, d3)
    d = jax.nn.relu(conv_t(d, params["conv4_w"], params["conv4_b"]))
    d = jax.nn.relu(conv_t(d, params["conv5_w"], params["conv5_b"]))
    d = jax.nn.sigmoid(conv_t(d, params["conv6_w"], params["conv6_b"]))
    return d


# ---------------------------------------------------------------------------
# Param init (PyTorch layouts) and driver
# ---------------------------------------------------------------------------
def init_params(key, width, height, bottleneck):
    hidden = (width - 4 * 3) * (height - 4 * 3) * 8
    shapes = {
        "conv1_w": (2, 1, 5, 5),   "conv1_b": (2,),
        "conv2_w": (4, 2, 5, 5),   "conv2_b": (4,),
        "conv3_w": (8, 4, 5, 5),   "conv3_b": (8,),
        "lin1_w": (hidden, hidden), "lin1_b": (hidden,),
        "mu_w": (bottleneck, hidden), "mu_b": (bottleneck,),
        "lin2_w": (hidden, bottleneck), "lin2_b": (hidden,),
        "lin3_w": (hidden, hidden), "lin3_b": (hidden,),
        "conv4_w": (8, 4, 5, 5),   "conv4_b": (4,),   # ConvTranspose2d layout (in, out, k, k)
        "conv5_w": (4, 2, 5, 5),   "conv5_b": (2,),
        "conv6_w": (2, 1, 5, 5),   "conv6_b": (1,),
    }
    params = {}
    keys = jax.random.split(key, len(shapes))
    for k_, (name, shp) in zip(keys, sorted(shapes.items())):
        params[name] = (0.05 * jax.random.normal(k_, shp)).astype(jnp.float32)
    return params


if __name__ == "__main__":
    # width=height=20 -> inner spatial 8x8, hidden_size = 512; bottleneck=16; batch=2.
    width, height, bottleneck = 20, 20, 16
    batch = 2

    key = jax.random.PRNGKey(0)
    k_params, k_x = jax.random.split(key)
    params = init_params(k_params, width, height, bottleneck)
    prep = prepare_params(params, width=width, height=height, bottleneck=bottleneck)
    x = jax.random.uniform(k_x, (batch, 1, width, height), dtype=jnp.float32)

    forward = jax.jit(functools.partial(vae_forward, width=width, height=height))
    out = forward(x, prep)
    jax.block_until_ready(out)
    assert out.shape == (batch, 1, width, height), out.shape

    ref = vae_reference(x, params, width=width, height=height)
    err = float(jnp.max(jnp.abs(out - ref)))
    assert err < 2e-2, f"max abs error vs f32 reference: {err}"   # bf16 MXU tolerance
    print("KERNEL_OK")
</pallas_src>

<mosaic_0001>
module attributes {stable_mosaic.version = 11 : i64} {
  func.func @_vae_kernel(%arg0: i32, %arg1: memref<1x20x20xf32, #tpu.memory_space<vmem>>, %arg2: memref<6x5x128x128xbf16, #tpu.memory_space<vmem>>, %arg3: memref<6x1x128xf32, #tpu.memory_space<vmem>>, %arg4: memref<8x128x512xbf16, #tpu.memory_space<vmem>>, %arg5: memref<1x512xf32, #tpu.memory_space<vmem>>, %arg6: memref<512x128xbf16, #tpu.memory_space<vmem>>, %arg7: memref<1x128xf32, #tpu.memory_space<vmem>>, %arg8: memref<128x512xbf16, #tpu.memory_space<vmem>>, %arg9: memref<1x512xf32, #tpu.memory_space<vmem>>, %arg10: memref<512x512xbf16, #tpu.memory_space<vmem>>, %arg11: memref<1x512xf32, #tpu.memory_space<vmem>>, %arg12: memref<1x20x20xf32, #tpu.memory_space<vmem>>, %arg13: memref<20x128xf32, #tpu.memory_space<vmem>>, %arg14: memref<16x128xf32, #tpu.memory_space<vmem>>, %arg15: memref<20x128xf32, #tpu.memory_space<vmem>>, %arg16: memref<24x128xf32, #tpu.memory_space<vmem>>) attributes {dimension_semantics = [#tpu.dimension_semantics<parallel>], iteration_bounds = array<i64: 2>, scalar_prefetch = 0 : i64, scratch_operands = 4 : i64, tpu.core_type = #tpu.core_type<tc>, window_params = [{transform_indices = @transform_0, window_bounds = array<i64: 1, 20, 20>}, {pipeline_mode = #tpu.pipeline_mode<synchronous>, transform_indices = @transform_1, window_bounds = array<i64: 6, 5, 128, 128>}, {pipeline_mode = #tpu.pipeline_mode<synchronous>, transform_indices = @transform_2, window_bounds = array<i64: 6, 1, 128>}, {pipeline_mode = #tpu.pipeline_mode<synchronous>, transform_indices = @transform_3, window_bounds = array<i64: 8, 128, 512>}, {pipeline_mode = #tpu.pipeline_mode<synchronous>, transform_indices = @transform_4, window_bounds = array<i64: 1, 512>}, {pipeline_mode = #tpu.pipeline_mode<synchronous>, transform_indices = @transform_5, window_bounds = array<i64: 512, 128>}, {pipeline_mode = #tpu.pipeline_mode<synchronous>, transform_indices = @transform_6, window_bounds = array<i64: 1, 128>}, {pipeline_mode = #tpu.pipeline_mode<synchronous>, transform_indices = @transform_7, window_bounds = array<i64: 128, 512>}, {pipeline_mode = #tpu.pipeline_mode<synchronous>, transform_indices = @transform_8, window_bounds = array<i64: 1, 512>}, {pipeline_mode = #tpu.pipeline_mode<synchronous>, transform_indices = @transform_9, window_bounds = array<i64: 512, 512>}, {pipeline_mode = #tpu.pipeline_mode<synchronous>, transform_indices = @transform_10, window_bounds = array<i64: 1, 512>}, {transform_indices = @transform_11, window_bounds = array<i64: 1, 20, 20>}]} {
    %cst = arith.constant 0.000000e+00 : f32
    %0 = vector.broadcast %cst : f32 to vector<20x128xf32>
    %c0 = arith.constant 0 : index
    %c0_0 = arith.constant 0 : index
    %1 = vector.load %arg13[%c0, %c0_0] : memref<20x128xf32, #tpu.memory_space<vmem>>, vector<20x128xf32>
    tpu.vector_store %arg13[%c0, %c0_0], %0 {strides = array<i32>} : memref<20x128xf32, #tpu.memory_space<vmem>>, vector<20x128xf32>,
    %c0_1 = arith.constant 0 : index
    %c0_2 = arith.constant 0 : index
    %c0_3 = arith.constant 0 : index
    %2 = vector.load %arg1[%c0_1, %c0_2, %c0_3] : memref<1x20x20xf32, #tpu.memory_space<vmem>>, vector<1x20x20xf32>
    %3 = vector.shape_cast %2 : vector<1x20x20xf32> to vector<20x20xf32>
    %c0_4 = arith.constant 0 : index
    %c0_5 = arith.constant 0 : index
    %4 = vector.load %arg13[%c0_4, %c0_5] : memref<20x128xf32, #tpu.memory_space<vmem>>, vector<20x20xf32>
    tpu.vector_store %arg13[%c0_4, %c0_5], %3 {strides = array<i32>} : memref<20x128xf32, #tpu.memory_space<vmem>>, vector<20x20xf32>,
    %c0_6 = arith.constant 0 : index
    %c0_7 = arith.constant 0 : index
    %5 = vector.load %arg13[%c0_6, %c0_7] : memref<20x128xf32, #tpu.memory_space<vmem>>, vector<20x128xf32>
    %6 = vector.extract_strided_slice %5 {offsets = [0, 0], sizes = [16, 128], strides = [1, 1]} : vector<20x128xf32> to vector<16x128xf32>
    %7 = arith.truncf %6 : vector<16x128xf32> to vector<16x128xbf16>
    %c0_8 = arith.constant 0 : index
    %c0_9 = arith.constant 0 : index
    %c0_10 = arith.constant 0 : index
    %c0_11 = arith.constant 0 : index
    %8 = vector.load %arg2[%c0_8, %c0_9, %c0_10, %c0_11] : memref<6x5x128x128xbf16, #tpu.memory_space<vmem>>, vector<1x1x128x128xbf16>
    %9 = vector.shape_cast %8 : vector<1x1x128x128xbf16> to vector<128x128xbf16>
    %cst_12 = arith.constant dense<0.000000e+00> : vector<16x128xf32>
    %10 = tpu.matmul %7, %9, %cst_12 {dimension_numbers = #tpu.dot_dimension_numbers<[1], [0], [0], [1], [0, 0, 1, 1], [], []>} : vector<16x128xbf16>, vector<128x128xbf16>, vector<16x128xf32> -> vector<16x128xf32>
    %11 = vector.extract_strided_slice %5 {offsets = [1, 0], sizes = [16, 128], strides = [1, 1]} : vector<20x128xf32> to vector<16x128xf32>
    %12 = arith.truncf %11 : vector<16x128xf32> to vector<16x128xbf16>
    %c0_13 = arith.constant 0 : index
    %c1 = arith.constant 1 : index
    %c0_14 = arith.constant 0 : index
    %c0_15 = arith.constant 0 : index
    %13 = vector.load %arg2[%c0_13, %c1, %c0_14, %c0_15] : memref<6x5x128x128xbf16, #tpu.memory_space<vmem>>, vector<1x1x128x128xbf16>
    %14 = vector.shape_cast %13 : vector<1x1x128x128xbf16> to vector<128x128xbf16>
    %cst_16 = arith.constant dense<0.000000e+00> : vector<16x128xf32>
    %15 = tpu.matmul %12, %14, %cst_16 {dimension_numbers = #tpu.dot_dimension_numbers<[1], [0], [0], [1], [0, 0, 1, 1], [], []>} : vector<16x128xbf16>, vector<128x128xbf16>, vector<16x128xf32> -> vector<16x128xf32>
    %16 = arith.addf %10, %15 : vector<16x128xf32>
    %17 = vector.extract_strided_slice %5 {offsets = [2, 0], sizes = [16, 128], strides = [1, 1]} : vector<20x128xf32> to vector<16x128xf32>
    %18 = arith.truncf %17 : vector<16x128xf32> to vector<16x128xbf16>
    %c0_17 = arith.constant 0 : index
    %c2 = arith.constant 2 : index
    %c0_18 = arith.constant 0 : index
    %c0_19 = arith.constant 0 : index
    %19 = vector.load %arg2[%c0_17, %c2, %c0_18, %c0_19] : memref<6x5x128x128xbf16, #tpu.memory_space<vmem>>, vector<1x1x128x128xbf16>
    %20 = vector.shape_cast %19 : vector<1x1x128x128xbf16> to vector<128x128xbf16>
    %cst_20 = arith.constant dense<0.000000e+00> : vector<16x128xf32>
    %21 = tpu.matmul %18, %20, %cst_20 {dimension_numbers = #tpu.dot_dimension_numbers<[1], [0], [0], [1], [0, 0, 1, 1], [], []>} : vector<16x128xbf16>, vector<128x128xbf16>, vector<16x128xf32> -> vector<16x128xf32>
    %22 = arith.addf %16, %21 : vector<16x128xf32>
    %23 = vector.extract_strided_slice %5 {offsets = [3, 0], sizes = [16, 128], strides = [1, 1]} : vector<20x128xf32> to vector<16x128xf32>
    %24 = arith.truncf %23 : vector<16x128xf32> to vector<16x128xbf16>
    %c0_21 = arith.constant 0 : index
    %c3 = arith.constant 3 : index
    %c0_22 = arith.constant 0 : index
    %c0_23 = arith.constant 0 : index
    %25 = vector.load %arg2[%c0_21, %c3, %c0_22, %c0_23] : memref<6x5x128x128xbf16, #tpu.memory_space<vmem>>, vector<1x1x128x128xbf16>
    %26 = vector.shape_cast %25 : vector<1x1x128x128xbf16> to vector<128x128xbf16>
    %cst_24 = arith.constant dense<0.000000e+00> : vector<16x128xf32>
    %27 = tpu.matmul %24, %26, %cst_24 {dimension_numbers = #tpu.dot_dimension_numbers<[1], [0], [0], [1], [0, 0, 1, 1], [], []>} : vector<16x128xbf16>, vector<128x128xbf16>, vector<16x128xf32> -> vector<16x128xf32>
    %28 = arith.addf %22, %27 : vector<16x128xf32>
    %29 = vector.extract_strided_slice %5 {offsets = [4, 0], sizes = [16, 128], strides = [1, 1]} : vector<20x128xf32> to vector<16x128xf32>
    %30 = arith.truncf %29 : vector<16x128xf32> to vector<16x128xbf16>
    %c0_25 = arith.constant 0 : index
    %c4 = arith.constant 4 : index
    %c0_26 = arith.constant 0 : index
    %c0_27 = arith.constant 0 : index
    %31 = vector.load %arg2[%c0_25, %c4, %c0_26, %c0_27] : memref<6x5x128x128xbf16, #tpu.memory_space<vmem>>, vector<1x1x128x128xbf16>
    %32 = vector.shape_cast %31 : vector<1x1x128x128xbf16> to vector<128x128xbf16>
    %cst_28 = arith.constant dense<0.000000e+00> : vector<16x128xf32>
    %33 = tpu.matmul %30, %32, %cst_28 {dimension_numbers = #tpu.dot_dimension_numbers<[1], [0], [0], [1], [0, 0, 1, 1], [], []>} : vector<16x128xbf16>, vector<128x128xbf16>, vector<16x128xf32> -> vector<16x128xf32>
    %34 = arith.addf %28, %33 : vector<16x128xf32>
    %c0_29 = arith.constant 0 : index
    %c0_30 = arith.constant 0 : index
    %c0_31 = arith.constant 0 : index
    %35 = vector.load %arg3[%c0_29, %c0_30, %c0_31] : memref<6x1x128xf32, #tpu.memory_space<vmem>>, vector<1x1x128xf32>
    %36 = vector.shape_cast %35 : vector<1x1x128xf32> to vector<1x128xf32>
    %37 = vector.broadcast %36 : vector<1x128xf32> to vector<16x128xf32>
    %38 = arith.addf %34, %37 : vector<16x128xf32>
    %cst_32 = arith.constant 0.000000e+00 : f32
    %39 = vector.broadcast %cst_32 : f32 to vector<16x128xf32>
    %40 = arith.maximumf %38, %39 : vector<16x128xf32>
    %41 = vector.extract_strided_slice %40 {offsets = [0, 0], sizes = [12, 128], strides = [1, 1]} : vector<16x128xf32> to vector<12x128xf32>
    %42 = arith.truncf %41 : vector<12x128xf32> to vector<12x128xbf16>
    %c1_33 = arith.constant 1 : index
    %c0_34 = arith.constant 0 : index
    %c0_35 = arith.constant 0 : index
    %c0_36 = arith.constant 0 : index
    %43 = vector.load %arg2[%c1_33, %c0_34, %c0_35, %c0_36] : memref<6x5x128x128xbf16, #tpu.memory_space<vmem>>, vector<1x1x128x128xbf16>
    %44 = vector.shape_cast %43 : vector<1x1x128x128xbf16> to vector<128x128xbf16>
    %cst_37 = arith.constant dense<0.000000e+00> : vector<12x128xf32>
    %45 = tpu.matmul %42, %44, %cst_37 {dimension_numbers = #tpu.dot_dimension_numbers<[1], [0], [0], [1], [0, 0, 1, 1], [], []>} : vector<12x128xbf16>, vector<128x128xbf16>, vector<12x128xf32> -> vector<12x128xf32>
    %46 = vector.extract_strided_slice %40 {offsets = [1, 0], sizes = [12, 128], strides = [1, 1]} : vector<16x128xf32> to vector<12x128xf32>
    %47 = arith.truncf %46 : vector<12x128xf32> to vector<12x128xbf16>
    %c1_38 = arith.constant 1 : index
    %c1_39 = arith.constant 1 : index
    %c0_40 = arith.constant 0 : index
    %c0_41 = arith.constant 0 : index
    %48 = vector.load %arg2[%c1_38, %c1_39, %c0_40, %c0_41] : memref<6x5x128x128xbf16, #tpu.memory_space<vmem>>, vector<1x1x128x128xbf16>
    %49 = vector.shape_cast %48 : vector<1x1x128x128xbf16> to vector<128x128xbf16>
    %cst_42 = arith.constant dense<0.000000e+00> : vector<12x128xf32>
    %50 = tpu.matmul %47, %49, %cst_42 {dimension_numbers = #tpu.dot_dimension_numbers<[1], [0], [0], [1], [0, 0, 1, 1], [], []>} : vector<12x128xbf16>, vector<128x128xbf16>, vector<12x128xf32> -> vector<12x128xf32>
    %51 = arith.addf %45, %50 : vector<12x128xf32>
    %52 = vector.extract_strided_slice %40 {offsets = [2, 0], sizes = [12, 128], strides = [1, 1]} : vector<16x128xf32> to vector<12x128xf32>
    %53 = arith.truncf %52 : vector<12x128xf32> to vector<12x128xbf16>
    %c1_43 = arith.constant 1 : index
    %c2_44 = arith.constant 2 : index
    %c0_45 = arith.constant 0 : index
    %c0_46 = arith.constant 0 : index
    %54 = vector.load %arg2[%c1_43, %c2_44, %c0_45, %c0_46] : memref<6x5x128x128xbf16, #tpu.memory_space<vmem>>, vector<1x1x128x128xbf16>
    %55 = vector.shape_cast %54 : vector<1x1x128x128xbf16> to vector<128x128xbf16>
    %cst_47 = arith.constant dense<0.000000e+00> : vector<12x128xf32>
    %56 = tpu.matmul %53, %55, %cst_47 {dimension_numbers = #tpu.dot_dimension_numbers<[1], [0], [0], [1], [0, 0, 1, 1], [], []>} : vector<12x128xbf16>, vector<128x128xbf16>, vector<12x128xf32> -> vector<12x128xf32>
    %57 = arith.addf %51, %56 : vector<12x128xf32>
    %58 = vector.extract_strided_slice %40 {offsets = [3, 0], sizes = [12, 128], strides = [1, 1]} : vector<16x128xf32> to vector<12x128xf32>
    %59 = arith.truncf %58 : vector<12x128xf32> to vector<12x128xbf16>
    %c1_48 = arith.constant 1 : index
    %c3_49 = arith.constant 3 : index
    %c0_50 = arith.constant 0 : index
    %c0_51 = arith.constant 0 : index
    %60 = vector.load %arg2[%c1_48, %c3_49, %c0_50, %c0_51] : memref<6x5x128x128xbf16, #tpu.memory_space<vmem>>, vector<1x1x128x128xbf16>
    %61 = vector.shape_cast %60 : vector<1x1x128x128xbf16> to vector<128x128xbf16>
    %cst_52 = arith.constant dense<0.000000e+00> : vector<12x128xf32>
    %62 = tpu.matmul %59, %61, %cst_52 {dimension_numbers = #tpu.dot_dimension_numbers<[1], [0], [0], [1], [0, 0, 1, 1], [], []>} : vector<12x128xbf16>, vector<128x128xbf16>, vector<12x128xf32> -> vector<12x128xf32>
    %63 = arith.addf %57, %62 : vector<12x128xf32>
    %64 = vector.extract_strided_slice %40 {offsets = [4, 0], sizes = [12, 128], strides = [1, 1]} : vector<16x128xf32> to vector<12x128xf32>
    %65 = arith.truncf %64 : vector<12x128xf32> to vector<12x128xbf16>
    %c1_53 = arith.constant 1 : index
    %c4_54 = arith.constant 4 : index
    %c0_55 = arith.constant 0 : index
    %c0_56 = arith.constant 0 : index
    %66 = vector.load %arg2[%c1_53, %c4_54, %c0_55, %c0_56] : memref<6x5x128x128xbf16, #tpu.memory_space<vmem>>, vector<1x1x128x128xbf16>
    %67 = vector.shape_cast %66 : vector<1x1x128x128xbf16> to vector<128x128xbf16>
    %cst_57 = arith.constant dense<0.000000e+00> : vector<12x128xf32>
    %68 = tpu.matmul %65, %67, %cst_57 {dimension_numbers = #tpu.dot_dimension_numbers<[1], [0], [0], [1], [0, 0, 1, 1], [], []>} : vector<12x128xbf16>, vector<128x128xbf16>, vector<12x128xf32> -> vector<12x128xf32>
    %69 = arith.addf %63, %68 : vector<12x128xf32>
    %c1_58 = arith.constant 1 : index
    %c0_59 = arith.constant 0 : index
    %c0_60 = arith.constant 0 : index
    %70 = vector.load %arg3[%c1_58, %c0_59, %c0_60] : memref<6x1x128xf32, #tpu.memory_space<vmem>>, vector<1x1x128xf32>
    %71 = vector.shape_cast %70 : vector<1x1x128xf32> to vector<1x128xf32>
    %72 = vector.broadcast %71 : vector<1x128xf32> to vector<12x128xf32>
    %73 = arith.addf %69, %72 : vector<12x128xf32>
    %cst_61 = arith.constant 0.000000e+00 : f32
    %74 = vector.broadcast %cst_61 : f32 to vector<12x128xf32>
    %75 = arith.maximumf %73, %74 : vector<12x128xf32>
    %76 = vector.extract_strided_slice %75 {offsets = [0, 0], sizes = [8, 128], strides = [1, 1]} : vector<12x128xf32> to vector<8x128xf32>
    %77 = arith.truncf %76 : vector<8x128xf32> to vector<8x128xbf16>
    %c2_62 = arith.constant 2 : index
    %c0_63 = arith.constant 0 : index
    %c0_64 = arith.constant 0 : index
    %c0_65 = arith.constant 0 : index
    %78 = vector.load %arg2[%c2_62, %c0_63, %c0_64, %c0_65] : memref<6x5x128x128xbf16, #tpu.memory_space<vmem>>, vector<1x1x128x128xbf16>
    %79 = vector.shape_cast %78 : vector<1x1x128x128xbf16> to vector<128x128xbf16>
    %cst_66 = arith.constant dense<0.000000e+00> : vector<8x128xf32>
    %80 = tpu.matmul %77, %79, %cst_66 {dimension_numbers = #tpu.dot_dimension_numbers<[1], [0], [0], [1], [0, 0, 1, 1], [], []>} : vector<8x128xbf16>, vector<128x128xbf16>, vector<8x128xf32> -> vector<8x128xf32>
    %81 = vector.extract_strided_slice %75 {offsets = [1, 0], sizes = [8, 128], strides = [1, 1]} : vector<12x128xf32> to vector<8x128xf32>
    %82 = arith.truncf %81 : vector<8x128xf32> to vector<8x128xbf16>
    %c2_67 = arith.constant 2 : index
    %c1_68 = arith.constant 1 : index
    %c0_69 = arith.constant 0 : index
    %c0_70 = arith.constant 0 : index
    %83 = vector.load %arg2[%c2_67, %c1_68, %c0_69, %c0_70] : memref<6x5x128x128xbf16, #tpu.memory_space<vmem>>, vector<1x1x128x128xbf16>
    %84 = vector.shape_cast %83 : vector<1x1x128x128xbf16> to vector<128x128xbf16>
    %cst_71 = arith.constant dense<0.000000e+00> : vector<8x128xf32>
    %85 = tpu.matmul %82, %84, %cst_71 {dimension_numbers = #tpu.dot_dimension_numbers<[1], [0], [0], [1], [0, 0, 1, 1], [], []>} : vector<8x128xbf16>, vector<128x128xbf16>, vector<8x128xf32> -> vector<8x128xf32>
    %86 = arith.addf %80, %85 : vector<8x128xf32>
    %87 = vector.extract_strided_slice %75 {offsets = [2, 0], sizes = [8, 128], strides = [1, 1]} : vector<12x128xf32> to vector<8x128xf32>
    %88 = arith.truncf %87 : vector<8x128xf32> to vector<8x128xbf16>
    %c2_72 = arith.constant 2 : index
    %c2_73 = arith.constant 2 : index
    %c0_74 = arith.constant 0 : index
    %c0_75 = arith.constant 0 : index
    %89 = vector.load %arg2[%c2_72, %c2_73, %c0_74, %c0_75] : memref<6x5x128x128xbf16, #tpu.memory_space<vmem>>, vector<1x1x128x128xbf16>
    %90 = vector.shape_cast %89 : vector<1x1x128x128xbf16> to vector<128x128xbf16>
    %cst_76 = arith.constant dense<0.000000e+00> : vector<8x128xf32>
    %91 = tpu.matmul %88, %90, %cst_76 {dimension_numbers = #tpu.dot_dimension_numbers<[1], [0], [0], [1], [0, 0, 1, 1], [], []>} : vector<8x128xbf16>, vector<128x128xbf16>, vector<8x128xf32> -> vector<8x128xf32>
    %92 = arith.addf %86, %91 : vector<8x128xf32>
    %93 = vector.extract_strided_slice %75 {offsets = [3, 0], sizes = [8, 128], strides = [1, 1]} : vector<12x128xf32> to vector<8x128xf32>
    %94 = arith.truncf %93 : vector<8x128xf32> to vector<8x128xbf16>
    %c2_77 = arith.constant 2 : index
    %c3_78 = arith.constant 3 : index
    %c0_79 = arith.constant 0 : index
    %c0_80 = arith.constant 0 : index
    %95 = vector.load %arg2[%c2_77, %c3_78, %c0_79, %c0_80] : memref<6x5x128x128xbf16, #tpu.memory_space<vmem>>, vector<1x1x128x128xbf16>
    %96 = vector.shape_cast %95 : vector<1x1x128x128xbf16> to vector<128x128xbf16>
    %cst_81 = arith.constant dense<0.000000e+00> : vector<8x128xf32>
    %97 = tpu.matmul %94, %96, %cst_81 {dimension_numbers = #tpu.dot_dimension_numbers<[1], [0], [0], [1], [0, 0, 1, 1], [], []>} : vector<8x128xbf16>, vector<128x128xbf16>, vector<8x128xf32> -> vector<8x128xf32>
    %98 = arith.addf %92, %97 : vector<8x128xf32>
    %99 = vector.extract_strided_slice %75 {offsets = [4, 0], sizes = [8, 128], strides = [1, 1]} : vector<12x128xf32> to vector<8x128xf32>
    %100 = arith.truncf %99 : vector<8x128xf32> to vector<8x128xbf16>
    %c2_82 = arith.constant 2 : index
    %c4_83 = arith.constant 4 : index
    %c0_84 = arith.constant 0 : index
    %c0_85 = arith.constant 0 : index
    %101 = vector.load %arg2[%c2_82, %c4_83, %c0_84, %c0_85] : memref<6x5x128x128xbf16, #tpu.memory_space<vmem>>, vector<1x1x128x128xbf16>
    %102 = vector.shape_cast %101 : vector<1x1x128x128xbf16> to vector<128x128xbf16>
    %cst_86 = arith.constant dense<0.000000e+00> : vector<8x128xf32>
    %103 = tpu.matmul %100, %102, %cst_86 {dimension_numbers = #tpu.dot_dimension_numbers<[1], [0], [0], [1], [0, 0, 1, 1], [], []>} : vector<8x128xbf16>, vector<128x128xbf16>, vector<8x128xf32> -> vector<8x128xf32>
    %104 = arith.addf %98, %103 : vector<8x128xf32>
    %c2_87 = arith.constant 2 : index
    %c0_88 = arith.constant 0 : index
    %c0_89 = arith.constant 0 : index
    %105 = vector.load %arg3[%c2_87, %c0_88, %c0_89] : memref<6x1x128xf32, #tpu.memory_space<vmem>>, vector<1x1x128xf32>
    %106 = vector.shape_cast %105 : vector<1x1x128xf32> to vector<1x128xf32>
    %107 = vector.broadcast %106 : vector<1x128xf32> to vector<8x128xf32>
    %108 = arith.addf %104, %107 : vector<8x128xf32>
    %cst_90 = arith.constant 0.000000e+00 : f32
    %109 = vector.broadcast %cst_90 : f32 to vector<8x128xf32>
    %110 = arith.maximumf %108, %109 : vector<8x128xf32>
    %c0_91 = arith.constant 0 : index
    %c0_92 = arith.constant 0 : index
    %111 = vector.load %arg5[%c0_91, %c0_92] : memref<1x512xf32, #tpu.memory_space<vmem>>, vector<1x512xf32>
    %112 = vector.extract_strided_slice %110 {offsets = [0, 0], sizes = [1, 128], strides = [1, 1]} : vector<8x128xf32> to vector<1x128xf32>
    %113 = arith.truncf %112 : vector<1x128xf32> to vector<1x128xbf16>
    %c0_93 = arith.constant 0 : index
    %c0_94 = arith.constant 0 : index
    %c0_95 = arith.constant 0 : index
    %114 = vector.load %arg4[%c0_93, %c0_94, %c0_95] : memref<8x128x512xbf16, #tpu.memory_space<vmem>>, vector<1x128x512xbf16>
    %115 = vector.shape_cast %114 : vector<1x128x512xbf16> to vector<128x512xbf16>
    %cst_96 = arith.constant dense<0.000000e+00> : vector<1x512xf32>
    %116 = tpu.matmul %113, %115, %cst_96 {dimension_numbers = #tpu.dot_dimension_numbers<[1], [0], [0], [1], [0, 0, 1, 1], [], []>} : vector<1x128xbf16>, vector<128x512xbf16>, vector<1x512xf32> -> vector<1x512xf32>
    %117 = arith.addf %111, %116 : vector<1x512xf32>
    %118 = vector.extract_strided_slice %110 {offsets = [1, 0], sizes = [1, 128], strides = [1, 1]} : vector<8x128xf32> to vector<1x128xf32>
    %119 = arith.truncf %118 : vector<1x128xf32> to vector<1x128xbf16>
    %c1_97 = arith.constant 1 : index
    %c0_98 = arith.constant 0 : index
    %c0_99 = arith.constant 0 : index
    %120 = vector.load %arg4[%c1_97, %c0_98, %c0_99] : memref<8x128x512xbf16, #tpu.memory_space<vmem>>, vector<1x128x512xbf16>
    %121 = vector.shape_cast %120 : vector<1x128x512xbf16> to vector<128x512xbf16>
    %cst_100 = arith.constant dense<0.000000e+00> : vector<1x512xf32>
    %122 = tpu.matmul %119, %121, %cst_100 {dimension_numbers = #tpu.dot_dimension_numbers<[1], [0], [0], [1], [0, 0, 1, 1], [], []>} : vector<1x128xbf16>, vector<128x512xbf16>, vector<1x512xf32> -> vector<1x512xf32>
    %123 = arith.addf %117, %122 : vector<1x512xf32>
    %124 = vector.extract_strided_slice %110 {offsets = [2, 0], sizes = [1, 128], strides = [1, 1]} : vector<8x128xf32> to vector<1x128xf32>
    %125 = arith.truncf %124 : vector<1x128xf32> to vector<1x128xbf16>
    %c2_101 = arith.constant 2 : index
    %c0_102 = arith.constant 0 : index
    %c0_103 = arith.constant 0 : index
    %126 = vector.load %arg4[%c2_101, %c0_102, %c0_103] : memref<8x128x512xbf16, #tpu.memory_space<vmem>>, vector<1x128x512xbf16>
    %127 = vector.shape_cast %126 : vector<1x128x512xbf16> to vector<128x512xbf16>
    %cst_104 = arith.constant dense<0.000000e+00> : vector<1x512xf32>
    %128 = tpu.matmul %125, %127, %cst_104 {dimension_numbers = #tpu.dot_dimension_numbers<[1], [0], [0], [1], [0, 0, 1, 1], [], []>} : vector<1x128xbf16>, vector<128x512xbf16>, vector<1x512xf32> -> vector<1x512xf32>
    %129 = arith.addf %123, %128 : vector<1x512xf32>
    %130 = vector.extract_strided_slice %110 {offsets = [3, 0], sizes = [1, 128], strides = [1, 1]} : vector<8x128xf32> to vector<1x128xf32>
    %131 = arith.truncf %130 : vector<1x128xf32> to vector<1x128xbf16>
    %c3_105 = arith.constant 3 : index
    %c0_106 = arith.constant 0 : index
    %c0_107 = arith.constant 0 : index
    %132 = vector.load %arg4[%c3_105, %c0_106, %c0_107] : memref<8x128x512xbf16, #tpu.memory_space<vmem>>, vector<1x128x512xbf16>
    %133 = vector.shape_cast %132 : vector<1x128x512xbf16> to vector<128x512xbf16>
    %cst_108 = arith.constant dense<0.000000e+00> : vector<1x512xf32>
    %134 = tpu.matmul %131, %133, %cst_108 {dimension_numbers = #tpu.dot_dimension_numbers<[1], [0], [0], [1], [0, 0, 1, 1], [], []>} : vector<1x128xbf16>, vector<128x512xbf16>, vector<1x512xf32> -> vector<1x512xf32>
    %135 = arith.addf %129, %134 : vector<1x512xf32>
    %136 = vector.extract_strided_slice %110 {offsets = [4, 0], sizes = [1, 128], strides = [1, 1]} : vector<8x128xf32> to vector<1x128xf32>
    %137 = arith.truncf %136 : vector<1x128xf32> to vector<1x128xbf16>
    %c4_109 = arith.constant 4 : index
    %c0_110 = arith.constant 0 : index
    %c0_111 = arith.constant 0 : index
    %138 = vector.load %arg4[%c4_109, %c0_110, %c0_111] : memref<8x128x512xbf16, #tpu.memory_space<vmem>>, vector<1x128x512xbf16>
    %139 = vector.shape_cast %138 : vector<1x128x512xbf16> to vector<128x512xbf16>
    %cst_112 = arith.constant dense<0.000000e+00> : vector<1x512xf32>
    %140 = tpu.matmul %137, %139, %cst_112 {dimension_numbers = #tpu.dot_dimension_numbers<[1], [0], [0], [1], [0, 0, 1, 1], [], []>} : vector<1x128xbf16>, vector<128x512xbf16>, vector<1x512xf32> -> vector<1x512xf32>
    %141 = arith.addf %135, %140 : vector<1x512xf32>
    %142 = vector.extract_strided_slice %110 {offsets = [5, 0], sizes = [1, 128], strides = [1, 1]} : vector<8x128xf32> to vector<1x128xf32>
    %143 = arith.truncf %142 : vector<1x128xf32> to vector<1x128xbf16>
    %c5 = arith.constant 5 : index
    %c0_113 = arith.constant 0 : index
    %c0_114 = arith.constant 0 : index
    %144 = vector.load %arg4[%c5, %c0_113, %c0_114] : memref<8x128x512xbf16, #tpu.memory_space<vmem>>, vector<1x128x512xbf16>
    %145 = vector.shape_cast %144 : vector<1x128x512xbf16> to vector<128x512xbf16>
    %cst_115 = arith.constant dense<0.000000e+00> : vector<1x512xf32>
    %146 = tpu.matmul %143, %145, %cst_115 {dimension_numbers = #tpu.dot_dimension_numbers<[1], [0], [0], [1], [0, 0, 1, 1], [], []>} : vector<1x128xbf16>, vector<128x512xbf16>, vector<1x512xf32> -> vector<1x512xf32>
    %147 = arith.addf %141, %146 : vector<1x512xf32>
    %148 = vector.extract_strided_slice %110 {offsets = [6, 0], sizes = [1, 128], strides = [1, 1]} : vector<8x128xf32> to vector<1x128xf32>
    %149 = arith.truncf %148 : vector<1x128xf32> to vector<1x128xbf16>
    %c6 = arith.constant 6 : index
    %c0_116 = arith.constant 0 : index
    %c0_117 = arith.constant 0 : index
    %150 = vector.load %arg4[%c6, %c0_116, %c0_117] : memref<8x128x512xbf16, #tpu.memory_space<vmem>>, vector<1x128x512xbf16>
    %151 = vector.shape_cast %150 : vector<1x128x512xbf16> to vector<128x512xbf16>
    %cst_118 = arith.constant dense<0.000000e+00> : vector<1x512xf32>
    %152 = tpu.matmul %149, %151, %cst_118 {dimension_numbers = #tpu.dot_dimension_numbers<[1], [0], [0], [1], [0, 0, 1, 1], [], []>} : vector<1x128xbf16>, vector<128x512xbf16>, vector<1x512xf32> -> vector<1x512xf32>
    %153 = arith.addf %147, %152 : vector<1x512xf32>
    %154 = vector.extract_strided_slice %110 {offsets = [7, 0], sizes = [1, 128], strides = [1, 1]} : vector<8x128xf32> to vector<1x128xf32>
    %155 = arith.truncf %154 : vector<1x128xf32> to vector<1x128xbf16>
    %c7 = arith.constant 7 : index
    %c0_119 = arith.constant 0 : index
    %c0_120 = arith.constant 0 : index
    %156 = vector.load %arg4[%c7, %c0_119, %c0_120] : memref<8x128x512xbf16, #tpu.memory_space<vmem>>, vector<1x128x512xbf16>
    %157 = vector.shape_cast %156 : vector<1x128x512xbf16> to vector<128x512xbf16>
    %cst_121 = arith.constant dense<0.000000e+00> : vector<1x512xf32>
    %158 = tpu.matmul %155, %157, %cst_121 {dimension_numbers = #tpu.dot_dimension_numbers<[1], [0], [0], [1], [0, 0, 1, 1], [], []>} : vector<1x128xbf16>, vector<128x512xbf16>, vector<1x512xf32> -> vector<1x512xf32>
    %159 = arith.addf %153, %158 : vector<1x512xf32>
    %cst_122 = arith.constant 0.000000e+00 : f32
    %160 = vector.broadcast %cst_122 : f32 to vector<1x512xf32>
    %161 = arith.maximumf %159, %160 : vector<1x512xf32>
    %162 = arith.truncf %161 : vector<1x512xf32> to vector<1x512xbf16>
    %c0_123 = arith.constant 0 : index
    %c0_124 = arith.constant 0 : index
    %163 = vector.load %arg6[%c0_123, %c0_124] : memref<512x128xbf16, #tpu.memory_space<vmem>>, vector<512x128xbf16>
    %cst_125 = arith.constant dense<0.000000e+00> : vector<1x128xf32>
    %164 = tpu.matmul %162, %163, %cst_125 {dimension_numbers = #tpu.dot_dimension_numbers<[1], [0], [0], [1], [0, 0, 1, 1], [], []>} : vector<1x512xbf16>, vector<512x128xbf16>, vector<1x128xf32> -> vector<1x128xf32>
    %c0_126 = arith.constant 0 : index
    %c0_127 = arith.constant 0 : index
    %165 = vector.load %arg7[%c0_126, %c0_127] : memref<1x128xf32, #tpu.memory_space<vmem>>, vector<1x128xf32>
    %166 = arith.addf %164, %165 : vector<1x128xf32>
    %167 = arith.truncf %166 : vector<1x128xf32> to vector<1x128xbf16>
    %c0_128 = arith.constant 0 : index
    %c0_129 = arith.constant 0 : index
    %168 = vector.load %arg8[%c0_128, %c0_129] : memref<128x512xbf16, #tpu.memory_space<vmem>>, vector<128x512xbf16>
    %cst_130 = arith.constant dense<0.000000e+00> : vector<1x512xf32>
    %169 = tpu.matmul %167, %168, %cst_130 {dimension_numbers = #tpu.dot_dimension_numbers<[1], [0], [0], [1], [0, 0, 1, 1], [], []>} : vector<1x128xbf16>, vector<128x512xbf16>, vector<1x512xf32> -> vector<1x512xf32>
    %c0_131 = arith.constant 0 : index
    %c0_132 = arith.constant 0 : index
    %170 = vector.load %arg9[%c0_131, %c0_132] : memref<1x512xf32, #tpu.memory_space<vmem>>, vector<1x512xf32>
    %171 = arith.addf %169, %170 : vector<1x512xf32>
    %cst_133 = arith.constant 0.000000e+00 : f32
    %172 = vector.broadcast %cst_133 : f32 to vector<1x512xf32>
    %173 = arith.maximumf %171, %172 : vector<1x512xf32>
    %174 = arith.truncf %173 : vector<1x512xf32> to vector<1x512xbf16>
    %c0_134 = arith.constant 0 : index
    %c0_135 = arith.constant 0 : index
    %175 = vector.load %arg10[%c0_134, %c0_135] : memref<512x512xbf16, #tpu.memory_space<vmem>>, vector<512x512xbf16>
    %cst_136 = arith.constant dense<0.000000e+00> : vector<1x512xf32>
    %176 = tpu.matmul %174, %175, %cst_136 {dimension_numbers = #tpu.dot_dimension_numbers<[1], [0], [0], [1], [0, 0, 1, 1], [], []>} : vector<1x512xbf16>, vector<512x512xbf16>, vector<1x512xf32> -> vector<1x512xf32>
    %177 = arith.addf %173, %176 : vector<1x512xf32>
    %c0_137 = arith.constant 0 : index
    %c0_138 = arith.constant 0 : index
    %178 = vector.load %arg11[%c0_137, %c0_138] : memref<1x512xf32, #tpu.memory_space<vmem>>, vector<1x512xf32>
    %179 = arith.addf %177, %178 : vector<1x512xf32>
    %cst_139 = arith.constant 0.000000e+00 : f32
    %180 = vector.broadcast %cst_139 : f32 to vector<1x512xf32>
    %181 = arith.maximumf %179, %180 : vector<1x512xf32>
    %cst_140 = arith.constant 0.000000e+00 : f32
    %182 = vector.broadcast %cst_140 : f32 to vector<16x128xf32>
    %c0_141 = arith.constant 0 : index
    %c0_142 = arith.constant 0 : index
    %183 = vector.load %arg14[%c0_141, %c0_142] : memref<16x128xf32, #tpu.memory_space<vmem>>, vector<16x128xf32>
    tpu.vector_store %arg14[%c0_141, %c0_142], %182 {strides = array<i32>} : memref<16x128xf32, #tpu.memory_space<vmem>>, vector<16x128xf32>,
    %184 = vector.extract_strided_slice %181 {offsets = [0, 0], sizes = [1, 64], strides = [1, 1]} : vector<1x512xf32> to vector<1x64xf32>
    %c4_143 = arith.constant 4 : index
    %c32 = arith.constant 32 : index
    %185 = vector.load %arg14[%c4_143, %c32] : memref<16x128xf32, #tpu.memory_space<vmem>>, vector<1x64xf32>
    tpu.vector_store %arg14[%c4_143, %c32], %184 {strides = array<i32>} : memref<16x128xf32, #tpu.memory_space<vmem>>, vector<1x64xf32>,
    %186 = vector.extract_strided_slice %181 {offsets = [0, 64], sizes = [1, 64], strides = [1, 1]} : vector<1x512xf32> to vector<1x64xf32>
    %c5_144 = arith.constant 5 : index
    %c32_145 = arith.constant 32 : index
    %187 = vector.load %arg14[%c5_144, %c32_145] : memref<16x128xf32, #tpu.memory_space<vmem>>, vector<1x64xf32>
    tpu.vector_store %arg14[%c5_144, %c32_145], %186 {strides = array<i32>} : memref<16x128xf32, #tpu.memory_space<vmem>>, vector<1x64xf32>,
    %188 = vector.extract_strided_slice %181 {offsets = [0, 128], sizes = [1, 64], strides = [1, 1]} : vector<1x512xf32> to vector<1x64xf32>
    %c6_146 = arith.constant 6 : index
    %c32_147 = arith.constant 32 : index
    %189 = vector.load %arg14[%c6_146, %c32_147] : memref<16x128xf32, #tpu.memory_space<vmem>>, vector<1x64xf32>
    tpu.vector_store %arg14[%c6_146, %c32_147], %188 {strides = array<i32>} : memref<16x128xf32, #tpu.memory_space<vmem>>, vector<1x64xf32>,
    %190 = vector.extract_strided_slice %181 {offsets = [0, 192], sizes = [1, 64], strides = [1, 1]} : vector<1x512xf32> to vector<1x64xf32>
    %c7_148 = arith.constant 7 : index
    %c32_149 = arith.constant 32 : index
    %191 = vector.load %arg14[%c7_148, %c32_149] : memref<16x128xf32, #tpu.memory_space<vmem>>, vector<1x64xf32>
    tpu.vector_store %arg14[%c7_148, %c32_149], %190 {strides = array<i32>} : memref<16x128xf32, #tpu.memory_space<vmem>>, vector<1x64xf32>,
    %192 = vector.extract_strided_slice %181 {offsets = [0, 256], sizes = [1, 64], strides = [1, 1]} : vector<1x512xf32> to vector<1x64xf32>
    %c8 = arith.constant 8 : index
    %c32_150 = arith.constant 32 : index
    %193 = vector.load %arg14[%c8, %c32_150] : memref<16x128xf32, #tpu.memory_space<vmem>>, vector<1x64xf32>
    tpu.vector_store %arg14[%c8, %c32_150], %192 {strides = array<i32>} : memref<16x128xf32, #tpu.memory_space<vmem>>, vector<1x64xf32>,
    %194 = vector.extract_strided_slice %181 {offsets = [0, 320], sizes = [1, 64], strides = [1, 1]} : vector<1x512xf32> to vector<1x64xf32>
    %c9 = arith.constant 9 : index
    %c32_151 = arith.constant 32 : index
    %195 = vector.load %arg14[%c9, %c32_151] : memref<16x128xf32, #tpu.memory_space<vmem>>, vector<1x64xf32>
    tpu.vector_store %arg14[%c9, %c32_151], %194 {strides = array<i32>} : memref<16x128xf32, #tpu.memory_space<vmem>>, vector<1x64xf32>,
    %196 = vector.extract_strided_slice %181 {offsets = [0, 384], sizes = [1, 64], strides = [1, 1]} : vector<1x512xf32> to vector<1x64xf32>
    %c10 = arith.constant 10 : index
    %c32_152 = arith.constant 32 : index
    %197 = vector.load %arg14[%c10, %c32_152] : memref<16x128xf32, #tpu.memory_space<vmem>>, vector<1x64xf32>
    tpu.vector_store %arg14[%c10, %c32_152], %196 {strides = array<i32>} : memref<16x128xf32, #tpu.memory_space<vmem>>, vector<1x64xf32>,
    %198 = vector.extract_strided_slice %181 {offsets = [0, 448], sizes = [1, 64], strides = [1, 1]} : vector<1x512xf32> to vector<1x64xf32>
    %c11 = arith.constant 11 : index
    %c32_153 = arith.constant 32 : index
    %199 = vector.load %arg14[%c11, %c32_153] : memref<16x128xf32, #tpu.memory_space<vmem>>, vector<1x64xf32>
    tpu.vector_store %arg14[%c11, %c32_153], %198 {strides = array<i32>} : memref<16x128xf32, #tpu.memory_space<vmem>>, vector<1x64xf32>,
    %c0_154 = arith.constant 0 : index
    %c0_155 = arith.constant 0 : index
    %200 = vector.load %arg14[%c0_154, %c0_155] : memref<16x128xf32, #tpu.memory_space<vmem>>, vector<16x128xf32>
    %201 = vector.extract_strided_slice %200 {offsets = [0, 0], sizes = [12, 128], strides = [1, 1]} : vector<16x128xf32> to vector<12x128xf32>
    %202 = arith.truncf %201 : vector<12x128xf32> to vector<12x128xbf16>
    %c3_156 = arith.constant 3 : index
    %c0_157 = arith.constant 0 : index
    %c0_158 = arith.constant 0 : index
    %c0_159 = arith.constant 0 : index
    %203 = vector.load %arg2[%c3_156, %c0_157, %c0_158, %c0_159] : memref<6x5x128x128xbf16, #tpu.memory_space<vmem>>, vector<1x1x128x128xbf16>
    %204 = vector.shape_cast %203 : vector<1x1x128x128xbf16> to vector<128x128xbf16>
    %cst_160 = arith.constant dense<0.000000e+00> : vector<12x128xf32>
    %205 = tpu.matmul %202, %204, %cst_160 {dimension_numbers = #tpu.dot_dimension_numbers<[1], [0], [0], [1], [0, 0, 1, 1], [], []>} : vector<12x128xbf16>, vector<128x128xbf16>, vector<12x128xf32> -> vector<12x128xf32>
    %206 = vector.extract_strided_slice %200 {offsets = [1, 0], sizes = [12, 128], strides = [1, 1]} : vector<16x128xf32> to vector<12x128xf32>
    %207 = arith.truncf %206 : vector<12x128xf32> to vector<12x128xbf16>
    %c3_161 = arith.constant 3 : index
    %c1_162 = arith.constant 1 : index
    %c0_163 = arith.constant 0 : index
    %c0_164 = arith.constant 0 : index
    %208 = vector.load %arg2[%c3_161, %c1_162, %c0_163, %c0_164] : memref<6x5x128x128xbf16, #tpu.memory_space<vmem>>, vector<1x1x128x128xbf16>
    %209 = vector.shape_cast %208 : vector<1x1x128x128xbf16> to vector<128x128xbf16>
    %cst_165 = arith.constant dense<0.000000e+00> : vector<12x128xf32>
    %210 = tpu.matmul %207, %209, %cst_165 {dimension_numbers = #tpu.dot_dimension_numbers<[1], [0], [0], [1], [0, 0, 1, 1], [], []>} : vector<12x128xbf16>, vector<128x128xbf16>, vector<12x128xf32> -> vector<12x128xf32>
    %211 = arith.addf %205, %210 : vector<12x128xf32>
    %212 = vector.extract_strided_slice %200 {offsets = [2, 0], sizes = [12, 128], strides = [1, 1]} : vector<16x128xf32> to vector<12x128xf32>
    %213 = arith.truncf %212 : vector<12x128xf32> to vector<12x128xbf16>
    %c3_166 = arith.constant 3 : index
    %c2_167 = arith.constant 2 : index
    %c0_168 = arith.constant 0 : index
    %c0_169 = arith.constant 0 : index
    %214 = vector.load %arg2[%c3_166, %c2_167, %c0_168, %c0_169] : memref<6x5x128x128xbf16, #tpu.memory_space<vmem>>, vector<1x1x128x128xbf16>
    %215 = vector.shape_cast %214 : vector<1x1x128x128xbf16> to vector<128x128xbf16>
    %cst_170 = arith.constant dense<0.000000e+00> : vector<12x128xf32>
    %216 = tpu.matmul %213, %215, %cst_170 {dimension_numbers = #tpu.dot_dimension_numbers<[1], [0], [0], [1], [0, 0, 1, 1], [], []>} : vector<12x128xbf16>, vector<128x128xbf16>, vector<12x128xf32> -> vector<12x128xf32>
    %217 = arith.addf %211, %216 : vector<12x128xf32>
    %218 = vector.extract_strided_slice %200 {offsets = [3, 0], sizes = [12, 128], strides = [1, 1]} : vector<16x128xf32> to vector<12x128xf32>
    %219 = arith.truncf %218 : vector<12x128xf32> to vector<12x128xbf16>
    %c3_171 = arith.constant 3 : index
    %c3_172 = arith.constant 3 : index
    %c0_173 = arith.constant 0 : index
    %c0_174 = arith.constant 0 : index
    %220 = vector.load %arg2[%c3_171, %c3_172, %c0_173, %c0_174] : memref<6x5x128x128xbf16, #tpu.memory_space<vmem>>, vector<1x1x128x128xbf16>
    %221 = vector.shape_cast %220 : vector<1x1x128x128xbf16> to vector<128x128xbf16>
    %cst_175 = arith.constant dense<0.000000e+00> : vector<12x128xf32>
    %222 = tpu.matmul %219, %221, %cst_175 {dimension_numbers = #tpu.dot_dimension_numbers<[1], [0], [0], [1], [0, 0, 1, 1], [], []>} : vector<12x128xbf16>, vector<128x128xbf16>, vector<12x128xf32> -> vector<12x128xf32>
    %223 = arith.addf %217, %222 : vector<12x128xf32>
    %224 = vector.extract_strided_slice %200 {offsets = [4, 0], sizes = [12, 128], strides = [1, 1]} : vector<16x128xf32> to vector<12x128xf32>
    %225 = arith.truncf %224 : vector<12x128xf32> to vector<12x128xbf16>
    %c3_176 = arith.constant 3 : index
    %c4_177 = arith.constant 4 : index
    %c0_178 = arith.constant 0 : index
    %c0_179 = arith.constant 0 : index
    %226 = vector.load %arg2[%c3_176, %c4_177, %c0_178, %c0_179] : memref<6x5x128x128xbf16, #tpu.memory_space<vmem>>, vector<1x1x128x128xbf16>
    %227 = vector.shape_cast %226 : vector<1x1x128x128xbf16> to vector<128x128xbf16>
    %cst_180 = arith.constant dense<0.000000e+00> : vector<12x128xf32>
    %228 = tpu.matmul %225, %227, %cst_180 {dimension_numbers = #tpu.dot_dimension_numbers<[1], [0], [0], [1], [0, 0, 1, 1], [], []>} : vector<12x128xbf16>, vector<128x128xbf16>, vector<12x128xf32> -> vector<12x128xf32>
    %229 = arith.addf %223, %228 : vector<12x128xf32>
    %c3_181 = arith.constant 3 : index
    %c0_182 = arith.constant 0 : index
    %c0_183 = arith.constant 0 : index
    %230 = vector.load %arg3[%c3_181, %c0_182, %c0_183] : memref<6x1x128xf32, #tpu.memory_space<vmem>>, vector<1x1x128xf32>
    %231 = vector.shape_cast %230 : vector<1x1x128xf32> to vector<1x128xf32>
    %232 = vector.broadcast %231 : vector<1x128xf32> to vector<12x128xf32>
    %233 = arith.addf %229, %232 : vector<12x128xf32>
    %cst_184 = arith.constant 0.000000e+00 : f32
    %234 = vector.broadcast %cst_184 : f32 to vector<12x128xf32>
    %235 = arith.maximumf %233, %234 : vector<12x128xf32>
    %cst_185 = arith.constant 0.000000e+00 : f32
    %236 = vector.broadcast %cst_185 : f32 to vector<20x128xf32>
    %c0_186 = arith.constant 0 : index
    %c0_187 = arith.constant 0 : index
    %237 = vector.load %arg15[%c0_186, %c0_187] : memref<20x128xf32, #tpu.memory_space<vmem>>, vector<20x128xf32>
    tpu.vector_store %arg15[%c0_186, %c0_187], %236 {strides = array<i32>} : memref<20x128xf32, #tpu.memory_space<vmem>>, vector<20x128xf32>,
    %238 = vector.extract_strided_slice %235 {offsets = [0, 0], sizes = [12, 48], strides = [1, 1]} : vector<12x128xf32> to vector<12x48xf32>
    %c4_188 = arith.constant 4 : index
    %c16 = arith.constant 16 : index
    %239 = vector.load %arg15[%c4_188, %c16] : memref<20x128xf32, #tpu.memory_space<vmem>>, vector<12x48xf32>
    tpu.vector_store %arg15[%c4_188, %c16], %238 {strides = array<i32>} : memref<20x128xf32, #tpu.memory_space<vmem>>, vector<12x48xf32>,
    %c0_189 = arith.constant 0 : index
    %c0_190 = arith.constant 0 : index
    %240 = vector.load %arg15[%c0_189, %c0_190] : memref<20x128xf32, #tpu.memory_space<vmem>>, vector<20x128xf32>
    %241 = vector.extract_strided_slice %240 {offsets = [0, 0], sizes = [16, 128], strides = [1, 1]} : vector<20x128xf32> to vector<16x128xf32>
    %242 = arith.truncf %241 : vector<16x128xf32> to vector<16x128xbf16>
    %c4_191 = arith.constant 4 : index
    %c0_192 = arith.constant 0 : index
    %c0_193 = arith.constant 0 : index
    %c0_194 = arith.constant 0 : index
    %243 = vector.load %arg2[%c4_191, %c0_192, %c0_193, %c0_194] : memref<6x5x128x128xbf16, #tpu.memory_space<vmem>>, vector<1x1x128x128xbf16>
    %244 = vector.shape_cast %243 : vector<1x1x128x128xbf16> to vector<128x128xbf16>
    %cst_195 = arith.constant dense<0.000000e+00> : vector<16x128xf32>
    %245 = tpu.matmul %242, %244, %cst_195 {dimension_numbers = #tpu.dot_dimension_numbers<[1], [0], [0], [1], [0, 0, 1, 1], [], []>} : vector<16x128xbf16>, vector<128x128xbf16>, vector<16x128xf32> -> vector<16x128xf32>
    %246 = vector.extract_strided_slice %240 {offsets = [1, 0], sizes = [16, 128], strides = [1, 1]} : vector<20x128xf32> to vector<16x128xf32>
    %247 = arith.truncf %246 : vector<16x128xf32> to vector<16x128xbf16>
    %c4_196 = arith.constant 4 : index
    %c1_197 = arith.constant 1 : index
    %c0_198 = arith.constant 0 : index
    %c0_199 = arith.constant 0 : index
    %248 = vector.load %arg2[%c4_196, %c1_197, %c0_198, %c0_199] : memref<6x5x128x128xbf16, #tpu.memory_space<vmem>>, vector<1x1x128x128xbf16>
    %249 = vector.shape_cast %248 : vector<1x1x128x128xbf16> to vector<128x128xbf16>
    %cst_200 = arith.constant dense<0.000000e+00> : vector<16x128xf32>
    %250 = tpu.matmul %247, %249, %cst_200 {dimension_numbers = #tpu.dot_dimension_numbers<[1], [0], [0], [1], [0, 0, 1, 1], [], []>} : vector<16x128xbf16>, vector<128x128xbf16>, vector<16x128xf32> -> vector<16x128xf32>
    %251 = arith.addf %245, %250 : vector<16x128xf32>
    %252 = vector.extract_strided_slice %240 {offsets = [2, 0], sizes = [16, 128], strides = [1, 1]} : vector<20x128xf32> to vector<16x128xf32>
    %253 = arith.truncf %252 : vector<16x128xf32> to vector<16x128xbf16>
    %c4_201 = arith.constant 4 : index
    %c2_202 = arith.constant 2 : index
    %c0_203 = arith.constant 0 : index
    %c0_204 = arith.constant 0 : index
    %254 = vector.load %arg2[%c4_201, %c2_202, %c0_203, %c0_204] : memref<6x5x128x128xbf16, #tpu.memory_space<vmem>>, vector<1x1x128x128xbf16>
    %255 = vector.shape_cast %254 : vector<1x1x128x128xbf16> to vector<128x128xbf16>
    %cst_205 = arith.constant dense<0.000000e+00> : vector<16x128xf32>
    %256 = tpu.matmul %253, %255, %cst_205 {dimension_numbers = #tpu.dot_dimension_numbers<[1], [0], [0], [1], [0, 0, 1, 1], [], []>} : vector<16x128xbf16>, vector<128x128xbf16>, vector<16x128xf32> -> vector<16x128xf32>
    %257 = arith.addf %251, %256 : vector<16x128xf32>
    %258 = vector.extract_strided_slice %240 {offsets = [3, 0], sizes = [16, 128], strides = [1, 1]} : vector<20x128xf32> to vector<16x128xf32>
    %259 = arith.truncf %258 : vector<16x128xf32> to vector<16x128xbf16>
    %c4_206 = arith.constant 4 : index
    %c3_207 = arith.constant 3 : index
    %c0_208 = arith.constant 0 : index
    %c0_209 = arith.constant 0 : index
    %260 = vector.load %arg2[%c4_206, %c3_207, %c0_208, %c0_209] : memref<6x5x128x128xbf16, #tpu.memory_space<vmem>>, vector<1x1x128x128xbf16>
    %261 = vector.shape_cast %260 : vector<1x1x128x128xbf16> to vector<128x128xbf16>
    %cst_210 = arith.constant dense<0.000000e+00> : vector<16x128xf32>
    %262 = tpu.matmul %259, %261, %cst_210 {dimension_numbers = #tpu.dot_dimension_numbers<[1], [0], [0], [1], [0, 0, 1, 1], [], []>} : vector<16x128xbf16>, vector<128x128xbf16>, vector<16x128xf32> -> vector<16x128xf32>
    %263 = arith.addf %257, %262 : vector<16x128xf32>
    %264 = vector.extract_strided_slice %240 {offsets = [4, 0], sizes = [16, 128], strides = [1, 1]} : vector<20x128xf32> to vector<16x128xf32>
    %265 = arith.truncf %264 : vector<16x128xf32> to vector<16x128xbf16>
    %c4_211 = arith.constant 4 : index
    %c4_212 = arith.constant 4 : index
    %c0_213 = arith.constant 0 : index
    %c0_214 = arith.constant 0 : index
    %266 = vector.load %arg2[%c4_211, %c4_212, %c0_213, %c0_214] : memref<6x5x128x128xbf16, #tpu.memory_space<vmem>>, vector<1x1x128x128xbf16>
    %267 = vector.shape_cast %266 : vector<1x1x128x128xbf16> to vector<128x128xbf16>
    %cst_215 = arith.constant dense<0.000000e+00> : vector<16x128xf32>
    %268 = tpu.matmul %265, %267, %cst_215 {dimension_numbers = #tpu.dot_dimension_numbers<[1], [0], [0], [1], [0, 0, 1, 1], [], []>} : vector<16x128xbf16>, vector<128x128xbf16>, vector<16x128xf32> -> vector<16x128xf32>
    %269 = arith.addf %263, %268 : vector<16x128xf32>
    %c4_216 = arith.constant 4 : index
    %c0_217 = arith.constant 0 : index
    %c0_218 = arith.constant 0 : index
    %270 = vector.load %arg3[%c4_216, %c0_217, %c0_218] : memref<6x1x128xf32, #tpu.memory_space<vmem>>, vector<1x1x128xf32>
    %271 = vector.shape_cast %270 : vector<1x1x128xf32> to vector<1x128xf32>
    %272 = vector.broadcast %271 : vector<1x128xf32> to vector<16x128xf32>
    %273 = arith.addf %269, %272 : vector<16x128xf32>
    %cst_219 = arith.constant 0.000000e+00 : f32
    %274 = vector.broadcast %cst_219 : f32 to vector<16x128xf32>
    %275 = arith.maximumf %273, %274 : vector<16x128xf32>
    %cst_220 = arith.constant 0.000000e+00 : f32
    %276 = vector.broadcast %cst_220 : f32 to vector<24x128xf32>
    %c0_221 = arith.constant 0 : index
    %c0_222 = arith.constant 0 : index
    %277 = vector.load %arg16[%c0_221, %c0_222] : memref<24x128xf32, #tpu.memory_space<vmem>>, vector<24x128xf32>
    tpu.vector_store %arg16[%c0_221, %c0_222], %276 {strides = array<i32>} : memref<24x128xf32, #tpu.memory_space<vmem>>, vector<24x128xf32>,
    %278 = vector.extract_strided_slice %275 {offsets = [0, 0], sizes = [16, 32], strides = [1, 1]} : vector<16x128xf32> to vector<16x32xf32>
    %c4_223 = arith.constant 4 : index
    %c8_224 = arith.constant 8 : index
    %279 = vector.load %arg16[%c4_223, %c8_224] : memref<24x128xf32, #tpu.memory_space<vmem>>, vector<16x32xf32>
    tpu.vector_store %arg16[%c4_223, %c8_224], %278 {strides = array<i32>} : memref<24x128xf32, #tpu.memory_space<vmem>>, vector<16x32xf32>,
    %c0_225 = arith.constant 0 : index
    %c0_226 = arith.constant 0 : index
    %280 = vector.load %arg16[%c0_225, %c0_226] : memref<24x128xf32, #tpu.memory_space<vmem>>, vector<24x128xf32>
    %281 = vector.extract_strided_slice %280 {offsets = [0, 0], sizes = [20, 128], strides = [1, 1]} : vector<24x128xf32> to vector<20x128xf32>
    %282 = arith.truncf %281 : vector<20x128xf32> to vector<20x128xbf16>
    %c5_227 = arith.constant 5 : index
    %c0_228 = arith.constant 0 : index
    %c0_229 = arith.constant 0 : index
    %c0_230 = arith.constant 0 : index
    %283 = vector.load %arg2[%c5_227, %c0_228, %c0_229, %c0_230] : memref<6x5x128x128xbf16, #tpu.memory_space<vmem>>, vector<1x1x128x128xbf16>
    %284 = vector.shape_cast %283 : vector<1x1x128x128xbf16> to vector<128x128xbf16>
    %cst_231 = arith.constant dense<0.000000e+00> : vector<20x128xf32>
    %285 = tpu.matmul %282, %284, %cst_231 {dimension_numbers = #tpu.dot_dimension_numbers<[1], [0], [0], [1], [0, 0, 1, 1], [], []>} : vector<20x128xbf16>, vector<128x128xbf16>, vector<20x128xf32> -> vector<20x128xf32>
    %286 = vector.extract_strided_slice %280 {offsets = [1, 0], sizes = [20, 128], strides = [1, 1]} : vector<24x128xf32> to vector<20x128xf32>
    %287 = arith.truncf %286 : vector<20x128xf32> to vector<20x128xbf16>
    %c5_232 = arith.constant 5 : index
    %c1_233 = arith.constant 1 : index
    %c0_234 = arith.constant 0 : index
    %c0_235 = arith.constant 0 : index
    %288 = vector.load %arg2[%c5_232, %c1_233, %c0_234, %c0_235] : memref<6x5x128x128xbf16, #tpu.memory_space<vmem>>, vector<1x1x128x128xbf16>
    %289 = vector.shape_cast %288 : vector<1x1x128x128xbf16> to vector<128x128xbf16>
    %cst_236 = arith.constant dense<0.000000e+00> : vector<20x128xf32>
    %290 = tpu.matmul %287, %289, %cst_236 {dimension_numbers = #tpu.dot_dimension_numbers<[1], [0], [0], [1], [0, 0, 1, 1], [], []>} : vector<20x128xbf16>, vector<128x128xbf16>, vector<20x128xf32> -> vector<20x128xf32>
    %291 = arith.addf %285, %290 : vector<20x128xf32>
    %292 = vector.extract_strided_slice %280 {offsets = [2, 0], sizes = [20, 128], strides = [1, 1]} : vector<24x128xf32> to vector<20x128xf32>
    %293 = arith.truncf %292 : vector<20x128xf32> to vector<20x128xbf16>
    %c5_237 = arith.constant 5 : index
    %c2_238 = arith.constant 2 : index
    %c0_239 = arith.constant 0 : index
    %c0_240 = arith.constant 0 : index
    %294 = vector.load %arg2[%c5_237, %c2_238, %c0_239, %c0_240] : memref<6x5x128x128xbf16, #tpu.memory_space<vmem>>, vector<1x1x128x128xbf16>
    %295 = vector.shape_cast %294 : vector<1x1x128x128xbf16> to vector<128x128xbf16>
    %cst_241 = arith.constant dense<0.000000e+00> : vector<20x128xf32>
    %296 = tpu.matmul %293, %295, %cst_241 {dimension_numbers = #tpu.dot_dimension_numbers<[1], [0], [0], [1], [0, 0, 1, 1], [], []>} : vector<20x128xbf16>, vector<128x128xbf16>, vector<20x128xf32> -> vector<20x128xf32>
    %297 = arith.addf %291, %296 : vector<20x128xf32>
    %298 = vector.extract_strided_slice %280 {offsets = [3, 0], sizes = [20, 128], strides = [1, 1]} : vector<24x128xf32> to vector<20x128xf32>
    %299 = arith.truncf %298 : vector<20x128xf32> to vector<20x128xbf16>
    %c5_242 = arith.constant 5 : index
    %c3_243 = arith.constant 3 : index
    %c0_244 = arith.constant 0 : index
    %c0_245 = arith.constant 0 : index
    %300 = vector.load %arg2[%c5_242, %c3_243, %c0_244, %c0_245] : memref<6x5x128x128xbf16, #tpu.memory_space<vmem>>, vector<1x1x128x128xbf16>
    %301 = vector.shape_cast %300 : vector<1x1x128x128xbf16> to vector<128x128xbf16>
    %cst_246 = arith.constant dense<0.000000e+00> : vector<20x128xf32>
    %302 = tpu.matmul %299, %301, %cst_246 {dimension_numbers = #tpu.dot_dimension_numbers<[1], [0], [0], [1], [0, 0, 1, 1], [], []>} : vector<20x128xbf16>, vector<128x128xbf16>, vector<20x128xf32> -> vector<20x128xf32>
    %303 = arith.addf %297, %302 : vector<20x128xf32>
    %304 = vector.extract_strided_slice %280 {offsets = [4, 0], sizes = [20, 128], strides = [1, 1]} : vector<24x128xf32> to vector<20x128xf32>
    %305 = arith.truncf %304 : vector<20x128xf32> to vector<20x128xbf16>
    %c5_247 = arith.constant 5 : index
    %c4_248 = arith.constant 4 : index
    %c0_249 = arith.constant 0 : index
    %c0_250 = arith.constant 0 : index
    %306 = vector.load %arg2[%c5_247, %c4_248, %c0_249, %c0_250] : memref<6x5x128x128xbf16, #tpu.memory_space<vmem>>, vector<1x1x128x128xbf16>
    %307 = vector.shape_cast %306 : vector<1x1x128x128xbf16> to vector<128x128xbf16>
    %cst_251 = arith.constant dense<0.000000e+00> : vector<20x128xf32>
    %308 = tpu.matmul %305, %307, %cst_251 {dimension_numbers = #tpu.dot_dimension_numbers<[1], [0], [0], [1], [0, 0, 1, 1], [], []>} : vector<20x128xbf16>, vector<128x128xbf16>, vector<20x128xf32> -> vector<20x128xf32>
    %309 = arith.addf %303, %308 : vector<20x128xf32>
    %c5_252 = arith.constant 5 : index
    %c0_253 = arith.constant 0 : index
    %c0_254 = arith.constant 0 : index
    %310 = vector.load %arg3[%c5_252, %c0_253, %c0_254] : memref<6x1x128xf32, #tpu.memory_space<vmem>>, vector<1x1x128xf32>
    %311 = vector.shape_cast %310 : vector<1x1x128xf32> to vector<1x128xf32>
    %312 = vector.broadcast %311 : vector<1x128xf32> to vector<20x128xf32>
    %313 = arith.addf %309, %312 : vector<20x128xf32>
    %314 = arith.negf %313 : vector<20x128xf32>
    %315 = math.exp %314 : vector<20x128xf32>
    %cst_255 = arith.constant 1.000000e+00 : f32
    %316 = vector.broadcast %cst_255 : f32 to vector<20x128xf32>
    %317 = arith.addf %316, %315 : vector<20x128xf32>
    %318 = arith.divf %316, %317 : vector<20x128xf32>
    %319 = vector.extract_strided_slice %318 {offsets = [0, 0], sizes = [20, 20], strides = [1, 1]} : vector<20x128xf32> to vector<20x20xf32>
    %c0_256 = arith.constant 0 : index
    %c0_257 = arith.constant 0 : index
    %c0_258 = arith.constant 0 : index
    %320 = vector.load %arg12[%c0_256, %c0_257, %c0_258] : memref<1x20x20xf32, #tpu.memory_space<vmem>>, vector<1x20x20xf32>
    %321 = vector.shape_cast %320 : vector<1x20x20xf32> to vector<20x20xf32>
    %322 = vector.shape_cast %319 : vector<20x20xf32> to vector<1x20x20xf32>
    tpu.vector_store %arg12[%c0_256, %c0_257, %c0_258], %322 {strides = array<i32>} : memref<1x20x20xf32, #tpu.memory_space<vmem>>, vector<1x20x20xf32>,
    return
  }
  func.func @transform_0(%arg0: i32) -> (i32, i32, i32) {
    %c0_i32 = arith.constant 0 : i32
    %c0_i32_0 = arith.constant 0 : i32
    %c0_i32_1 = arith.constant 0 : i32
    return %arg0, %c0_i32, %c0_i32_0 : i32, i32, i32
  }
  func.func @transform_1(%arg0: i32) -> (i32, i32, i32, i32) {
    %c0_i32 = arith.constant 0 : i32
    %c0_i32_0 = arith.constant 0 : i32
    %c0_i32_1 = arith.constant 0 : i32
    %c0_i32_2 = arith.constant 0 : i32
    %c0_i32_3 = arith.constant 0 : i32
    return %c0_i32, %c0_i32_0, %c0_i32_1, %c0_i32_2 : i32, i32, i32, i32
  }
  func.func @transform_2(%arg0: i32) -> (i32, i32, i32) {
    %c0_i32 = arith.constant 0 : i32
    %c0_i32_0 = arith.constant 0 : i32
    %c0_i32_1 = arith.constant 0 : i32
    %c0_i32_2 = arith.constant 0 : i32
    return %c0_i32, %c0_i32_0, %c0_i32_1 : i32, i32, i32
  }
  func.func @transform_3(%arg0: i32) -> (i32, i32, i32) {
    %c0_i32 = arith.constant 0 : i32
    %c0_i32_0 = arith.constant 0 : i32
    %c0_i32_1 = arith.constant 0 : i32
    %c0_i32_2 = arith.constant 0 : i32
    return %c0_i32, %c0_i32_0, %c0_i32_1 : i32, i32, i32
  }
  func.func @transform_4(%arg0: i32) -> (i32, i32) {
    %c0_i32 = arith.constant 0 : i32
    %c0_i32_0 = arith.constant 0 : i32
    %c0_i32_1 = arith.constant 0 : i32
    return %c0_i32, %c0_i32_0 : i32, i32
  }
  func.func @transform_5(%arg0: i32) -> (i32, i32) {
    %c0_i32 = arith.constant 0 : i32
    %c0_i32_0 = arith.constant 0 : i32
    %c0_i32_1 = arith.constant 0 : i32
    return %c0_i32, %c0_i32_0 : i32, i32
  }
  func.func @transform_6(%arg0: i32) -> (i32, i32) {
    %c0_i32 = arith.constant 0 : i32
    %c0_i32_0 = arith.constant 0 : i32
    %c0_i32_1 = arith.constant 0 : i32
    return %c0_i32, %c0_i32_0 : i32, i32
  }
  func.func @transform_7(%arg0: i32) -> (i32, i32) {
    %c0_i32 = arith.constant 0 : i32
    %c0_i32_0 = arith.constant 0 : i32
    %c0_i32_1 = arith.constant 0 : i32
    return %c0_i32, %c0_i32_0 : i32, i32
  }
  func.func @transform_8(%arg0: i32) -> (i32, i32) {
    %c0_i32 = arith.constant 0 : i32
    %c0_i32_0 = arith.constant 0 : i32
    %c0_i32_1 = arith.constant 0 : i32
    return %c0_i32, %c0_i32_0 : i32, i32
  }
  func.func @transform_9(%arg0: i32) -> (i32, i32) {
    %c0_i32 = arith.constant 0 : i32
    %c0_i32_0 = arith.constant 0 : i32
    %c0_i32_1 = arith.constant 0 : i32
    return %c0_i32, %c0_i32_0 : i32, i32
  }
  func.func @transform_10(%arg0: i32) -> (i32, i32) {
    %c0_i32 = arith.constant 0 : i32
    %c0_i32_0 = arith.constant 0 : i32
    %c0_i32_1 = arith.constant 0 : i32
    return %c0_i32, %c0_i32_0 : i32, i32
  }
  func.func @transform_11(%arg0: i32) -> (i32, i32, i32) {
    %c0_i32 = arith.constant 0 : i32
    %c0_i32_0 = arith.constant 0 : i32
    %c0_i32_1 = arith.constant 0 : i32
    return %arg0, %c0_i32, %c0_i32_0 : i32, i32, i32
  }
}

</mosaic_0001>

<bundles_post_ra>
// kernel: vae_forward.1
= control target key start
LH: loop header
LB: loop body
LE: loop exit
PB: predicated region body
PF: predicated region fallthrough
CT: control target
= control target key end

     0   :  { %s11131_s0 = inlined_call_operand.vmem [shape: f32[2,20,20], index: 0, kind: input, shape index: {}]   ;;  %s11132_s1 = inlined_call_operand.hbm [shape: bf16[6,5,128,128], index: 1, kind: input, shape index: {}]   ;;  %s11133_s2 = inlined_call_operand.vmem [shape: f32[6,1,128], index: 2, kind: input, shape index: {}]   ;;  %s11134_s3 = inlined_call_operand.hbm [shape: bf16[8,128,512], index: 3, kind: input, shape index: {}]   ;;  %s11135_s4 = inlined_call_operand.vmem [shape: f32[1,512], index: 4, kind: input, shape index: {}]   ;;  %s11136_s5 = inlined_call_operand.hbm [shape: bf16[512,128], index: 5, kind: input, shape index: {}]   ;;  %s11137_s6 = inlined_call_operand.vmem [shape: f32[1,128], index: 6, kind: input, shape index: {}]   ;;  %s11138_s7 = inlined_call_operand.hbm [shape: bf16[128,512], index: 7, kind: input, shape index: {}]   ;;  %s11139_s8 = inlined_call_operand.vmem [shape: f32[1,512], index: 8, kind: input, shape index: {}]   ;;  %s11140_s9 = inlined_call_operand.hbm [shape: bf16[512,512], index: 9, kind: input, shape index: {}]   ;;  %s11141_s10 = inlined_call_operand.vmem [shape: f32[1,512], index: 10, kind: input, shape index: {}]   ;;  %s11142_s11 = inlined_call_operand.vmem [shape: f32[2,20,20], index: 11, kind: output, shape index: {}]  }
   0x1   :  { %11143 = sst [smem:[#allocation17_spill]] %s11132_s1 }
   0x2   :  { %16 = vsyncpa [#allocation7], 0 }
   0x3   :  { %17 = vsyncpa [#allocation9], 0 }
   0x4   :  { %18 = vsyncpa [#allocation12], 0  ;;  %s10839_s17 = smov 0  }
   0x5 LB: > { %s319_s20 = sshll.u32 %s11134_s3, 4  ;;  %s10848_s21 = sadd.s32 4294967295, %s10763_s17   ;;  %s10763_s17 = sphi %s10839_s17, %s24_s17   ;;  %s320_s20 = int_to_ptr.hbm [resolvable:$true] %s319_s20 }
   0x6   : > { %p7027_p0 = scmp.ge.s32.totalorder %s10763_s17, 1  ;;  %p291_p1 = scmp.lt.s32.totalorder %s10763_s17, 3 }
   0x7   : > { %p10545_p2 = scmp.eq.s32.totalorder %s10848_s21, 0  ;;  %s10765_s23 = smov [#allocation8]  }
   0x8   : > { %p10853_p3 = pnand %p7027_p0, %p291_p1  ;;  %s321_s24 = sshll.u32 %s10765_s23, 4  ;;  %s322_s24 = int_to_ptr.vmem [resolvable:$true] %s321_s24 }
   0x9   : > { %s353_s27 = sshll.u32 %s11138_s7, 4  ;;  %s10766_s29 = smov [#allocation11]   ;;  %s354_s27 = int_to_ptr.hbm [resolvable:$true] %s353_s27 }
   0xa   : > { %p10529_p4 = pneg %p10853_p3  ;;  %s355_s30 = sshll.u32 %s10766_s29, 4  ;;  %s356_s30 = int_to_ptr.vmem [resolvable:$true] %s355_s30 }
   0xb   : > { %s11146_s1 = sld [smem:[#allocation17_spill]]  ;;  %s10767_s15 = smov 256  }
   0xc   : > { %p10864_p5 = pnand %p10545_p2, %p10529_p4  ;;  %s10768_s16 = smov 16  }
   0xd   : > { %s10769_s18 = smov [#allocation6]   ;;  %s10770_s23 = smov 64  }
   0xe   : > { %10535 = dma.hbm_to_vmem [thread:$0]  (!%p10864_p5), %s320_s20, 32768, %s322_s24, [#allocation9], %s10767_s15, %s10767_s15, %s10768_s16  }
   0xf   : > { %10541 = dma.hbm_to_vmem [thread:$0]  (!%p10864_p5), %s354_s27, 4096, %s356_s30, [#allocation12], %s10767_s15, %s10767_s15, %s10768_s16  }
  0x10   : > { %s304_s19 = sshll.u32 %s10769_s18, 4  ;;  %s10771_s25 = smov 4   ;;  %s305_s19 = int_to_ptr.vmem [resolvable:$true] %s304_s19 }
  0x11   : > { %s302_s14 = sshll.u32 %s11146_s1, 4  ;;  %s336_s12 = sshll.u32 %s11136_s5, 4  ;;  %s303_s14 = int_to_ptr.hbm [resolvable:$true] %s302_s14  ;;  %s337_s12 = int_to_ptr.hbm [resolvable:$true] %s336_s12 }
  0x12   : > { %10532 = dma.hbm_to_vmem [thread:$0]  (!%p10864_p5), %s303_s14, 30720, %s305_s19, [#allocation7], %s10770_s23, %s10770_s23, %s10771_s25  }
  0x13   : > { %s10772_s13 = smov [#allocation10]   ;;  %s370_s27 = sshll.u32 %s11140_s9, 4  ;;  %s371_s27 = int_to_ptr.hbm [resolvable:$true] %s370_s27 }
  0x14   : > { %s338_s1 = sshll.u32 %s10772_s13, 4  ;;  %s10773_s30 = smov [#allocation13]   ;;  %s339_s1 = int_to_ptr.vmem [resolvable:$true] %s338_s1 }
  0x15   : > { %10538 = dma.hbm_to_vmem [thread:$0]  (!%p10864_p5), %s337_s12, 4096, %s339_s1, [#allocation9], %s10770_s23, %s10770_s23, %s10771_s25  }
  0x16   : > { %s372_s18 = sshll.u32 %s10773_s30, 4  ;;  %399 = sbr.rel (%p10853_p3) target bundleno = 2295 (0x8f7), region = 64  ;;  %s373_s18 = int_to_ptr.vmem [resolvable:$true] %s372_s18 }
  0x17   : > { %10544 = dma.hbm_to_vmem [thread:$0]  (!%p10864_p5), %s371_s27, 16384, %s373_s18, [#allocation12], %s10767_s15, %s10767_s15, %s10768_s16  }
  0x1b   : > { %10750 = dma.done.wait (%p10545_p2), [#allocation7], 30720  }
  0x1c   : > { %10752 = vsyncadd (%p10545_p2), [#allocation7], 4294936576 }
  0x1d   : > { %10754 = dma.done.wait (%p10545_p2), [#allocation9], 36864  }
  0x1e   : > { %10756 = vsyncadd (%p10545_p2), [#allocation9], 4294930432 }
  0x1f   : > { %10758 = dma.done.wait (%p10545_p2), [#allocation12], 20480  }
  0x20   : > { %10760 = vsyncadd (%p10545_p2), [#allocation12], 4294946816  ;;  %v10774_v0 = vmov 0.0   ;;  %p460_p6 = scmp.lt.s32.totalorder %s10848_s21, 1  ;;  %v9819_v1 = vld [vmem:[#allocation6 + $0x78] sm:$0xff]  ;;  %v9818_v5 = vld [vmem:[#allocation6 + $0x70] sm:$0xff] }
  0x21   : > { %470 = vst [vmem:[#allocation2] sm:$0xff] %v10774_v0  ;;  %v9827_v2 = vld [vmem:[#allocation6 + $0xb8] sm:$0xff]  ;;  %581 = vmatpush.bf16.msra.mxu0 %v9819_v1  ;;  %v9826_v6 = vld [vmem:[#allocation6 + $0xb0] sm:$0xff]  ;;  %v9817_v9 = vld [vmem:[#allocation6 + $0x68] sm:$0xff]  ;;  %vm476_vm0 = vcmask 162816   ;;  %vm479_vm1 = vcmask 158720  }
  0x22   : > { %471 = vst [vmem:[#allocation2 + $0x8] sm:$0xff] %v10774_v0  ;;  %s11148_s21 = smov (!%p460_p6, %s10848_s21), 1  ;;  %v9835_v3 = vld [vmem:[#allocation6 + $0xf8] sm:$0xff]  ;;  %729 = vmatpush.bf16.msra.mxu2 %v9827_v2  ;;  %v9834_v7 = vld [vmem:[#allocation6 + $0xf0] sm:$0xff]  ;;  %v9825_v10 = vld [vmem:[#allocation6 + $0xa8] sm:$0xff]  ;;  %vm676_vm2 = vcmask 1046528  }
  0x23   : > { %472 = vst [vmem:[#allocation2 + $0x10] sm:$0xf] %v10774_v0  ;;  %v9811_v4 = vld [vmem:[#allocation6 + $0x38] sm:$0xff]  ;;  %821 = vmatpush.bf16.msra.mxu3 %v9835_v3  ;;  %v9810_v8 = vld [vmem:[#allocation6 + $0x30] sm:$0xff]  ;;  %s10508_s1 = smul.u32 24, %s11148_s21  ;;  %v9833_v11 = vld [vmem:[#allocation6 + $0xe8] sm:$0xff] }
  0x24   : > { %5439 = vst [vmem:[#allocation3] sm:$0xff] %v10774_v0  ;;  %643 = vmatpush.bf16.msra.mxu1 %v9811_v4  ;;  %v9809_v12 = vld [vmem:[#allocation6 + $0x28] sm:$0xff]  ;;  %v9816_v13 = vld [vmem:[#allocation6 + $0x60] sm:$0xff]  ;;  %v9815_v20 = vld [vmem:[#allocation6 + $0x58] sm:$0xff]  ;;  %vm519_vm3 = vsmask.f32 7424 }
  0x25   : > { %5440 = vst [vmem:[#allocation3 + $0x8] sm:$0xff] %v10774_v0  ;;  %582 = vmatpush.bf16.msra.mxu0 %v9818_v5  ;;  %s464_s14 = scalar_lea.vmem %s11131_s0, %s10508_s1  ;;  %v9824_v14 = vld [vmem:[#allocation6 + $0xa0] sm:$0xff]  ;;  %v9823_v21 = vld [vmem:[#allocation6 + $0x98] sm:$0xff]  ;;  %v9814_v24 = vld [vmem:[#allocation6 + $0x50] sm:$0xff]  ;;  %vm762_vm4 = vsmask.f32 6400  ;;  %s11120_s20 = scalar_lea.vmem %s11142_s11, %s10508_s1 }
  0x26   : > { %5908 = vst [vmem:[#allocation4] sm:$0xff] %v10774_v0  ;;  %730 = vmatpush.bf16.msra.mxu2 %v9826_v6  ;;  %v9832_v15 = vld [vmem:[#allocation6 + $0xe0] sm:$0xff]  ;;  %v473_v16 = vld [vmem:[%s464_s14] sm:$0xff]  ;;  %v474_v18 = vld [vmem:[%s464_s14 + $0x8] sm:$0xff]  ;;  %vm854_vm5 = vcmask 1045504   ;;  %vm2031_vm6 = vcmask 1040384  }
  0x27   : > { %5909 = vst [vmem:[#allocation4 + $0x8] sm:$0xff] %v10774_v0  ;;  %822 = vmatpush.bf16.msra.mxu3 %v9834_v7  ;;  %v9808_v17 = vld [vmem:[#allocation6 + $0x20] sm:$0xff]  ;;  %v475_v19 = vld [vmem:[%s464_s14 + $0x10] sm:$0xf]  ;;  %v9822_v25 = vld [vmem:[#allocation6 + $0x90] sm:$0xff]  ;;  %vm2033_vm7 = vcmask 1042434  }
  0x28   : > { %5910 = vst [vmem:[#allocation4 + $0x10] sm:$0xf] %v10774_v0  ;;  %644 = vmatpush.bf16.msra.mxu1 %v9810_v8  ;;  %v9831_v22 = vld [vmem:[#allocation6 + $0xd8] sm:$0xff]  ;;  %v9830_v27 = vld [vmem:[#allocation6 + $0xd0] sm:$0xff]  ;;  %v9813_v33 = vld [vmem:[#allocation6 + $0x48] sm:$0xff]  ;;  %vm2035_vm8 = vcmask 1041408  }
  0x29   : > { %6371 = vst [vmem:[#allocation5] sm:$0xff] %v10774_v0  ;;  %583 = vmatpush.bf16.msra.mxu0 %v9817_v9  ;;  %v9807_v23 = vld [vmem:[#allocation6 + $0x18] sm:$0xff]  ;;  %v9806_v28 = vld [vmem:[#allocation6 + $0x10] sm:$0xff]  ;;  %v9821_v34 = vld [vmem:[#allocation6 + $0x88] sm:$0xff]  ;;  %s10775_s22 = smov 32   ;;  %s10776_s28 = smov 96  }
  0x2a   : > { %6372 = vst [vmem:[#allocation5 + $0x8] sm:$0xff] %v10774_v0  ;;  %731 = vmatpush.bf16.msra.mxu2 %v9825_v10  ;;  %v9829_v37 = vld [vmem:[#allocation6 + $0xc8] sm:$0xff]  ;;  %v9812_v46 = vld [vmem:[#allocation6 + $0x40] sm:$0xff]  ;;  %v9843_v52 = vld [vmem:[#allocation6 + $0x138] sm:$0xff]  ;;  %vm5445_vm9 = vcmask 778496   ;;  %s10777_s16 = smov 16  }
  0x2b   : > { %6373 = vst [vmem:[#allocation5 + $0x10] sm:$0xff] %v10774_v0  ;;  %823 = vmatpush.bf16.msra.mxu3 %v9833_v11  ;;  %v9805_v38 = vld [vmem:[#allocation6 + $0x8] sm:$0xff]  ;;  %v9820_v47 = vld [vmem:[#allocation6 + $0x80] sm:$0xff]  ;;  %v9842_v59 = vld [vmem:[#allocation6 + $0x130] sm:$0xff]  ;;  %vm5919_vm10 = vcmask 523392   ;;  %vm5921_vm11 = vcmask 519296  }
  0x2c   : > { %645 = vmatpush.bf16.msra.mxu1 %v9809_v12  ;;  %477 = vst.msk [vmem:[#allocation2] sm:$0xff] %vm476_vm0, %v473_v16  ;;  %v9828_v53 = vld [vmem:[#allocation6 + $0xc0] sm:$0xff]  ;;  %v9841_v61 = vld [vmem:[#allocation6 + $0x128] sm:$0xff]  ;;  %v9839_v63 = vld [vmem:[#allocation6 + $0x118] sm:$0xff]  ;;  %s10778_s25 = smov 8   ;;  %vm6382_vm12 = vcmask 326720  }
  0x2d   : > { %478 = vst.msk [vmem:[#allocation2 + $0x8] sm:$0xff] %vm476_vm0, %v474_v18  ;;  %584 = vmatpush.bf16.msra.mxu0 %v9816_v13  ;;  %v9804_v56 = vld [vmem:[#allocation6] sm:$0xff]  ;;  %v9838_v0 = vld [vmem:[#allocation6 + $0x110] sm:$0xff]  ;;  %v9837_v1 = vld [vmem:[#allocation6 + $0x108] sm:$0xff] }
  0x2e   : > { %480 = vst.msk [vmem:[#allocation2 + $0x10] sm:$0xf] %vm479_vm1, %v475_v19  ;;  %732 = vmatpush.bf16.msra.mxu2 %v9824_v14  ;;  %v9840_v62 = vld [vmem:[#allocation6 + $0x120] sm:$0xff]  ;;  %v9859_v6 = vld [vmem:[#allocation6 + $0x1b8] sm:$0xff]  ;;  %v9858_v7 = vld [vmem:[#allocation6 + $0x1b0] sm:$0xff] }
  0x2f   : > { %824 = vmatpush.bf16.msra.mxu3 %v9832_v15  ;;  %v9836_v2 = vld [vmem:[#allocation6 + $0x100] sm:$0xff]  ;;  %v9851_v8 = vld [vmem:[#allocation6 + $0x178] sm:$0xff]  ;;  %v9857_v9 = vld [vmem:[#allocation6 + $0x1a8] sm:$0xff] }
  0x30   : > { %646 = vmatpush.bf16.msra.mxu1 %v9808_v17  ;;  %v9867_v10 = vld [vmem:[#allocation6 + $0x1f8] sm:$0xff]  ;;  %v9850_v11 = vld [vmem:[#allocation6 + $0x170] sm:$0xff]  ;;  %v9856_v12 = vld [vmem:[#allocation6 + $0x1a0] sm:$0xff] }
  0x31   : > { %585 = vmatpush.bf16.msra.mxu0 %v9815_v20  ;;  %v9866_v13 = vld [vmem:[#allocation6 + $0x1f0] sm:$0xff]  ;;  %v9875_v14 = vld [vmem:[#allocation6 + $0x238] sm:$0xff]  ;;  %v9849_v15 = vld [vmem:[#allocation6 + $0x168] sm:$0xff] }
  0x32   : > { %733 = vmatpush.bf16.msra.mxu2 %v9823_v21  ;;  %v9855_v16 = vld [vmem:[#allocation6 + $0x198] sm:$0xff]  ;;  %v9874_v17 = vld [vmem:[#allocation6 + $0x230] sm:$0xff]  ;;  %v9865_v18 = vld [vmem:[#allocation6 + $0x1e8] sm:$0xff] }
  0x33   : > { %v481_v26 = vld [vmem:[#allocation2] sm:$0xff]  ;;  %825 = vmatpush.bf16.msra.mxu3 %v9831_v22  ;;  %v9848_v19 = vld [vmem:[#allocation6 + $0x160] sm:$0xff]  ;;  %v9854_v20 = vld [vmem:[#allocation6 + $0x190] sm:$0xff] }
  0x34   : > { %647 = vmatpush.bf16.msra.mxu1 %v9807_v23  ;;  %v482_v29 = vld [vmem:[#allocation2 + $0x8] sm:$0xff]  ;;  %v9864_v21 = vld [vmem:[#allocation6 + $0x1e0] sm:$0xff]  ;;  %v9873_v22 = vld [vmem:[#allocation6 + $0x228] sm:$0xff] }
  0x35   : > { %v483_v30 = vld [vmem:[#allocation2 + $0x10] sm:$0xf]  ;;  %v10914_v31 = vpack.c.bf16 %v482_v29, %v481_v26  ;;  %586 = vmatpush.bf16.msra.mxu0 %v9814_v24  ;;  %v9853_v24 = vld [vmem:[#allocation6 + $0x188] sm:$0xff]  ;;  %v9872_v26 = vld [vmem:[#allocation6 + $0x220] sm:$0xff] }
  0x36   : > { %v10916_v32 = vpack.c.bf16 %v483_v30, %v483_v30  ;;  %734 = vmatpush.bf16.msra.mxu2 %v9822_v25  ;;  %v9847_v23 = vld [vmem:[#allocation6 + $0x158] sm:$0xff]  ;;  %v9862_v29 = vld [vmem:[#allocation6 + $0x1d0] sm:$0xff] }
  0x37   : > { %v521_v35 = vshrl.u32 %v10914_v31, 16  ;;  %v523_v36 = vshll.u32 %v10914_v31, 16  ;;  %826 = vmatpush.bf16.msra.mxu3 %v9830_v27  ;;  %v677_v48 = vrot.slane %v10914_v31, 1  ;;  %v855_v3 = vrot.slane %v10914_v31, 2  ;;  %v9863_v25 = vld [vmem:[#allocation6 + $0x1d8] sm:$0xff]  ;;  %v9846_v27 = vld [vmem:[#allocation6 + $0x150] sm:$0xff] }
  0x38   : > { %648 = vmatpush.bf16.msra.mxu1 %v9806_v28  ;;  %v528_v39 = vshll.u32 %v10916_v32, 16  ;;  %v766_v40 = vshrl.u32 %v10916_v32, 16  ;;  %v678_v49 = vrot.slane %v10916_v32, 1  ;;  %v856_v4 = vrot.slane %v10916_v32, 2  ;;  %v9852_v28 = vld [vmem:[#allocation6 + $0x180] sm:$0xff]  ;;  %v9871_v30 = vld [vmem:[#allocation6 + $0x218] sm:$0xff] }
  0x39   : > { %v763_v41 = vrot.slane %v521_v35, 1  ;;  %v764_v42 = vrot.slane %v523_v36, 2  ;;  %v525_v43 = vrot.slane %v523_v36, 1  ;;  %587 = vmatpush.bf16.msra.mxu0 %v9813_v33  ;;  %v9845_v32 = vld [vmem:[#allocation6 + $0x148] sm:$0xff]  ;;  %v9844_v36 = vld [vmem:[#allocation6 + $0x140] sm:$0xff] }
  0x3a   : > { %v768_v44 = vrot.slane %v766_v40, 1  ;;  %v769_v45 = vrot.slane %v528_v39, 2  ;;  %735 = vmatpush.bf16.msra.mxu2 %v9821_v34  ;;  %v530_v51 = vrot.slane %v528_v39, 1  ;;  %v679_v57 = vsel %vm676_vm2, %v677_v48, %v678_v49  ;;  %v9861_v33 = vld [vmem:[#allocation6 + $0x1c8] sm:$0xff]  ;;  %v9870_v34 = vld [vmem:[#allocation6 + $0x210] sm:$0xff] }
  0x3b   : > { %v526_v50 = vor.u32 %v525_v43, %v521_v35  ;;  %827 = vmatpush.bf16.msra.mxu3 %v9829_v37  ;;  %v765_v54 = vor.u32 %v764_v42, %v763_v41  ;;  %v857_v5 = vsel %vm854_vm5, %v855_v3, %v856_v4  ;;  %v9882_v35 = vld [vmem:[#allocation6 + $0x270] sm:$0xff]  ;;  %v9869_v39 = vld [vmem:[#allocation6 + $0x208] sm:$0xff]  ;;  %v9868_v42 = vld [vmem:[#allocation6 + $0x200] sm:$0xff] }
  0x3c   : > { %649 = vmatpush.bf16.msra.mxu1 %v9805_v38  ;;  %v770_v55 = vor.u32 %v769_v45, %v768_v44  ;;  %v9860_v38 = vld [vmem:[#allocation6 + $0x1c0] sm:$0xff]  ;;  %v9881_v40 = vld [vmem:[#allocation6 + $0x268] sm:$0xff]  ;;  %v9879_v45 = vld [vmem:[#allocation6 + $0x258] sm:$0xff] }
  0x3d   : > { %588 = vmatpush.bf16.msra.mxu0 %v9812_v46  ;;  %v531_v58 = vsel %vm519_vm3, %v526_v50, %v530_v51  ;;  %v9880_v43 = vld [vmem:[#allocation6 + $0x260] sm:$0xff]  ;;  %v9877_v51 = vld [vmem:[#allocation6 + $0x248] sm:$0xff]  ;;  %v9890_v4 = vld [vmem:[#allocation6 + $0x2b0] sm:$0xff] }
  0x3e   : > { %736 = vmatpush.bf16.msra.mxu2 %v9820_v47  ;;  %v771_v60 = vsel %vm762_vm4, %v765_v54, %v770_v55  ;;  %v9878_v47 = vld [vmem:[#allocation6 + $0x250] sm:$0xff] }
  0x3f   : > { %828 = vmatpush.bf16.msra.mxu3 %v9828_v53 }
  0x40   : > { %650 = vmatpush.bf16.msra.mxu1 %v9804_v56  ;;  %589 = vmatmul.bf16.vlgmr.msra.gmra.mxu0 %v531_v58  ;;  %v9876_v56 = vld [vmem:[#allocation6 + $0x240] sm:$0xff] }
  0x41   : > { %907 = vmatpush.bf16.msrb.mxu0 %v9843_v52  ;;  %737 = vmatmul.bf16.vlgmr.msra.gmra.mxu2 %v679_v57 }
  0x42   : > { %829 = vmatmul.bf16.vlgmr.msra.gmra.mxu3 %v771_v60  ;;  %1084 = vmatpush.bf16.msrb.mxu2 %v9851_v8 }
  0x43   : > { %651 = vmatmul.bf16.vlgmr.msra.gmra.mxu1 %v10914_v31  ;;  %1166 = vmatpush.bf16.msrb.mxu3 %v9867_v10  ;;  %v9883_v31 = vld [vmem:[#allocation6 + $0x278] sm:$0xff] }
  0x44   : > { %1022 = vmatpush.bf16.msrb.mxu1 %v9859_v6 }
  0x45   : > { %908 = vmatpush.bf16.msrb.mxu0 %v9842_v59 }
  0x46   : > { %1085 = vmatpush.bf16.msrb.mxu2 %v9850_v11 }
  0x47   : > { %1167 = vmatpush.bf16.msrb.mxu3 %v9866_v13 }
  0x48   : > { %1023 = vmatpush.bf16.msrb.mxu1 %v9858_v7 }
  0x49   : > { %909 = vmatpush.bf16.msrb.mxu0 %v9841_v61  ;;  %v10577_v61 = vld [vmem:[%s11133_s2] ss:$0 sm:$0xff] }
  0x4a   : > { %1086 = vmatpush.bf16.msrb.mxu2 %v9849_v15 }
  0x4b   : > { %1168 = vmatpush.bf16.msrb.mxu3 %v9865_v18 }
  0x4c   : > { %1024 = vmatpush.bf16.msrb.mxu1 %v9857_v9 }
  0x4d   : > { %910 = vmatpush.bf16.msrb.mxu0 %v9840_v62 }
  0x4e   : > { %1087 = vmatpush.bf16.msrb.mxu2 %v9848_v19  ;;  %v9889_v19 = vld [vmem:[#allocation6 + $0x2a8] sm:$0xff] }
  0x4f   : > { %1169 = vmatpush.bf16.msrb.mxu3 %v9864_v21  ;;  %v9907_v21 = vld [vmem:[#allocation6 + $0x338] sm:$0xff] }
  0x50   : > { %1025 = vmatpush.bf16.msrb.mxu1 %v9856_v12 }
  0x51   : > { %911 = vmatpush.bf16.msrb.mxu0 %v9839_v63  ;;  %v9891_v63 = vld [vmem:[#allocation6 + $0x2b8] sm:$0xff] }
  0x52   : > { %1088 = vmatpush.bf16.msrb.mxu2 %v9847_v23  ;;  %v9896_v23 = vld [vmem:[#allocation6 + $0x2e0] sm:$0xff] }
  0x53   : > { %1170 = vmatpush.bf16.msrb.mxu3 %v9863_v25  ;;  %v9915_v25 = vld [vmem:[#allocation6 + $0x378] sm:$0xff] }
  0x54   : > { %1026 = vmatpush.bf16.msrb.mxu1 %v9855_v16 }
  0x55   : > { %912 = vmatpush.bf16.msrb.mxu0 %v9838_v0  ;;  %v9899_v0 = vld [vmem:[#allocation6 + $0x2f8] sm:$0xff] }
  0x56   : > { %1089 = vmatpush.bf16.msrb.mxu2 %v9846_v27  ;;  %v9895_v27 = vld [vmem:[#allocation6 + $0x2d8] sm:$0xff] }
  0x57   : > { %1171 = vmatpush.bf16.msrb.mxu3 %v9862_v29  ;;  %v9914_v29 = vld [vmem:[#allocation6 + $0x370] sm:$0xff] }
  0x58   : > { %1027 = vmatpush.bf16.msrb.mxu1 %v9854_v20  ;;  %v9897_v20 = vld [vmem:[#allocation6 + $0x2e8] sm:$0xff] }
  0x59   : > { %913 = vmatpush.bf16.msrb.mxu0 %v9837_v1 }
  0x5a   : > { %1090 = vmatpush.bf16.msrb.mxu2 %v9845_v32  ;;  %v9904_v32 = vld [vmem:[#allocation6 + $0x320] sm:$0xff] }
  0x5b   : > { %1172 = vmatpush.bf16.msrb.mxu3 %v9861_v33  ;;  %v9913_v33 = vld [vmem:[#allocation6 + $0x368] sm:$0xff] }
  0x5c   : > { %1028 = vmatpush.bf16.msrb.mxu1 %v9853_v24  ;;  %v9906_v24 = vld [vmem:[#allocation6 + $0x330] sm:$0xff] }
  0x5d   : > { %914 = vmatpush.bf16.msrb.mxu0 %v9836_v2 }
  0x5e   : > { %1091 = vmatpush.bf16.msrb.mxu2 %v9844_v36  ;;  %v9903_v36 = vld [vmem:[#allocation6 + $0x318] sm:$0xff] }
  0x5f   : > { %1173 = vmatpush.bf16.msrb.mxu3 %v9860_v38  ;;  %v9884_v38 = vld [vmem:[#allocation6 + $0x280] sm:$0xff] }
  0x60   : > { %915 = vmatmul.bf16.vlgmr.msrb.gmra.mxu0 %v857_v5  ;;  %1029 = vmatpush.bf16.msrb.mxu1 %v9852_v28  ;;  %v9898_v5 = vld [vmem:[#allocation6 + $0x2f0] sm:$0xff]  ;;  %v9905_v28 = vld [vmem:[#allocation6 + $0x328] sm:$0xff] }
  0x61   : > { %1251 = vmatpush.bf16.msra.mxu0 %v9875_v14 }
  0x62   : > { %1451 = vmatpush.bf16.msra.mxu2 %v9899_v0  ;;  %v10578_v0 = vld [vmem:[%s11133_s2 + $0x1] ss:$0 sm:$0xff] }
  0x63   : > { %1512 = vmatpush.bf16.msra.mxu3 %v9891_v63 }
  0x64   : > { %1334 = vmatpush.bf16.msra.mxu1 %v9883_v31  ;;  %v9894_v31 = vld [vmem:[#allocation6 + $0x2d0] sm:$0xff] }
  0x65   : > { %1252 = vmatpush.bf16.msra.mxu0 %v9874_v17 }
  0x66   : > { %1452 = vmatpush.bf16.msra.mxu2 %v9898_v5 }
  0x67   : > { %1513 = vmatpush.bf16.msra.mxu3 %v9890_v4  ;;  %v9916_v4 = vld [vmem:[#allocation6 + $0x380] sm:$0xff] }
  0x68   : > { %1335 = vmatpush.bf16.msra.mxu1 %v9882_v35  ;;  %v9893_v35 = vld [vmem:[#allocation6 + $0x2c8] sm:$0xff] }
  0x69   : > { %1253 = vmatpush.bf16.msra.mxu0 %v9873_v22  ;;  %v9888_v22 = vld [vmem:[#allocation6 + $0x2a0] sm:$0xff] }
  0x6a   : > { %1453 = vmatpush.bf16.msra.mxu2 %v9897_v20 }
  0x6b   : > { %1514 = vmatpush.bf16.msra.mxu3 %v9889_v19 }
  0x6c   : > { %1336 = vmatpush.bf16.msra.mxu1 %v9881_v40  ;;  %v9902_v40 = vld [vmem:[#allocation6 + $0x310] sm:$0xff] }
  0x6d   : > { %1254 = vmatpush.bf16.msra.mxu0 %v9872_v26  ;;  %v9887_v26 = vld [vmem:[#allocation6 + $0x298] sm:$0xff] }
  0x6e   : > { %1454 = vmatpush.bf16.msra.mxu2 %v9896_v23  ;;  %v9950_v23 = vld [vmem:[#allocation8 + $0xcc] sm:$0xf0] }
  0x6f   : > { %1515 = vmatpush.bf16.msra.mxu3 %v9888_v22  ;;  %v7622_v22 = vld [vmem:[#allocation8 + $0xc0] sm:$0xf] }
  0x70   : > { %1337 = vmatpush.bf16.msra.mxu1 %v9880_v43  ;;  %v9901_v43 = vld [vmem:[#allocation6 + $0x308] sm:$0xff] }
  0x71   : > { %1255 = vmatpush.bf16.msra.mxu0 %v9871_v30  ;;  %v9886_v30 = vld [vmem:[#allocation6 + $0x290] sm:$0xff] }
  0x72   : > { %1455 = vmatpush.bf16.msra.mxu2 %v9895_v27  ;;  %v7623_v27 = vor.u32 %v9950_v23, %v7622_v22  ;;  %v9934_v22 = vld [vmem:[#allocation8 + $0x4c] sm:$0xf0]  ;;  %v9932_v23 = vld [vmem:[#allocation8 + $0x44] sm:$0xf] }
  0x73   : > { %1516 = vmatpush.bf16.msra.mxu3 %v9887_v26 }
  0x74   : > { %1338 = vmatpush.bf16.msra.mxu1 %v9879_v45  ;;  %v9922_v45 = vld [vmem:[#allocation6 + $0x3b0] sm:$0xff] }
  0x75   : > { %1256 = vmatpush.bf16.msra.mxu0 %v9870_v34  ;;  %v9885_v34 = vld [vmem:[#allocation6 + $0x288] sm:$0xff] }
  0x76   : > { %1456 = vmatpush.bf16.msra.mxu2 %v9894_v31 }
  0x77   : > { %1517 = vmatpush.bf16.msra.mxu3 %v9886_v30  ;;  %v9951_v30 = vld [vmem:[#allocation8 + $0xd4] sm:$0xf0] }
  0x78   : > { %1339 = vmatpush.bf16.msra.mxu1 %v9878_v47  ;;  %v9909_v47 = vld [vmem:[#allocation6 + $0x348] sm:$0xff] }
  0x79   : > { %1257 = vmatpush.bf16.msra.mxu0 %v9869_v39  ;;  %v9892_v39 = vld [vmem:[#allocation6 + $0x2c0] sm:$0xff] }
  0x7a   : > { %1457 = vmatpush.bf16.msra.mxu2 %v9893_v35  ;;  %v9944_v35 = vld [vmem:[#allocation8 + $0xa4] sm:$0xf] }
  0x7b   : > { %1518 = vmatpush.bf16.msra.mxu3 %v9885_v34 }
  0x7c   : > { %1340 = vmatpush.bf16.msra.mxu1 %v9877_v51  ;;  %v9908_v51 = vld [vmem:[#allocation6 + $0x340] sm:$0xff] }
  0x7d   : > { %1258 = vmatpush.bf16.msra.mxu0 %v9868_v42  ;;  %v9923_v42 = vld [vmem:[#allocation6 + $0x3b8] sm:$0xff] }
  0x7e   : > { %1458 = vmatpush.bf16.msra.mxu2 %v9892_v39  ;;  %v9947_v39 = vld [vmem:[#allocation8 + $0xb4] sm:$0xf0] }
  0x7f   : > { %1519 = vmatpush.bf16.msra.mxu3 %v9884_v38  ;;  %v7614_v38 = vld [vmem:[#allocation8 + $0xa8] sm:$0xf] }
  0x80   : > { %1341 = vmatpush.bf16.msra.mxu1 %v9876_v56 }
  0x81   : > { %1593 = vmatpush.bf16.msrb.mxu0 %v9907_v21 }
  0x85   : > { %1594 = vmatpush.bf16.msrb.mxu0 %v9906_v24  ;;  %v9948_v24 = vld [vmem:[#allocation8 + $0xc4] sm:$0xf] }
  0x89   : > { %1595 = vmatpush.bf16.msrb.mxu0 %v9905_v28 }
  0x8d   : > { %1596 = vmatpush.bf16.msrb.mxu0 %v9904_v32  ;;  %v7606_v32 = vld [vmem:[#allocation8 + $0xa0] sm:$0xf] }
  0x91   : > { %1597 = vmatpush.bf16.msrb.mxu0 %v9903_v36  ;;  %v7608_v36 = vld [vmem:[#allocation8 + $0xb0] sm:$0xf0] }
  0x95   : > { %1598 = vmatpush.bf16.msrb.mxu0 %v9902_v40 }
  0x99   : > { %1599 = vmatpush.bf16.msrb.mxu0 %v9901_v43  ;;  %v9942_v43 = vld [vmem:[#allocation8 + $0x8c] sm:$0xf0] }
  0xbd   : > { %v590_v37 = vpop.f32.mrf.mxu0 }
  0xc0   : > { %v652_v41 = vpop.f32.mrf.mxu1 }
  0xc1   : > { %v653_v49 = vadd.f32 %v652_v41, %v590_v37  ;;  %v9912_v37 = vld [vmem:[#allocation6 + $0x360] sm:$0xff]  ;;  %v9911_v41 = vld [vmem:[#allocation6 + $0x358] sm:$0xff] }
  0xc4   : > { %v738_v44 = vpop.f32.mrf.mxu2 }
  0xc5   : > { %v592_v46 = vpop.f32.mrf.mxu0  ;;  %v830_v48 = vpop.f32.mrf.mxu3  ;;  %v743_v52 = vadd.f32 %v738_v44, %v653_v49  ;;  %v9910_v44 = vld [vmem:[#allocation6 + $0x350] sm:$0xff] }
  0xc7   : > { %v835_v57 = vadd.f32 %v830_v48, %v743_v52  ;;  %v9921_v48 = vld [vmem:[#allocation6 + $0x3a8] sm:$0xff]  ;;  %v9920_v52 = vld [vmem:[#allocation6 + $0x3a0] sm:$0xff] }
  0xc8   : > { %v654_v50 = vpop.f32.mrf.mxu1 }
  0xc9   : > { %v655_v53 = vadd.f32 %v654_v50, %v592_v46  ;;  %v9900_v46 = vld [vmem:[#allocation6 + $0x300] sm:$0xff] }
  0xca   : > { %1600 = vmatpush.bf16.msrb.mxu0 %v9900_v46  ;;  %v7611_v46 = vor.u32 %v9944_v35, %v7608_v36  ;;  %v9928_v35 = vld [vmem:[#allocation8 + $0x24] sm:$0xf] }
  0xcc   : > { %v740_v54 = vpop.f32.mrf.mxu2 }
  0xcd   : > { %v744_v58 = vadd.f32 %v740_v54, %v655_v53  ;;  %v832_v59 = vpop.f32.mrf.mxu3 }
  0xcf   : > { %v836_v62 = vadd.f32 %v832_v59, %v744_v58 }
  0xdd   : > { %v916_v55 = vpop.f32.mrf.mxu0 }
  0xde   : > { %v921_v60 = vadd.f32 %v916_v55, %v835_v57  ;;  %v9919_v55 = vld [vmem:[#allocation6 + $0x398] sm:$0xff]  ;;  %v9918_v57 = vld [vmem:[#allocation6 + $0x390] sm:$0xff] }
  0xe0   : > { %v927_v2 = vadd.f32 %v10577_v61, %v921_v60 }
  0xe2   : > { %v929_v7 = vmax.f32 %v927_v2, 0.0 }
  0xe5   : > { %v918_v1 = vpop.f32.mrf.mxu0 }
  0xe6   : > { %v922_v3 = vadd.f32 %v918_v1, %v836_v62 }
  0xe8   : > { %v928_v6 = vadd.f32 %v10577_v61, %v922_v3  ;;  %v9917_v61 = vld [vmem:[#allocation6 + $0x388] sm:$0xff] }
  0xea   : > { %v930_v8 = vmax.f32 %v928_v6, 0.0 }
  0xec   : > { %v931_v9 = vpack.c.bf16 %v930_v8, %v929_v7 }
  0xee   : > { %1092 = vmatmul.bf16.vlgmr.msrb.gmra.mxu2 %v931_v9  ;;  %v1116_v10 = vrot.slane %v931_v9, 1  ;;  %v967_v11 = vshrl.u32 %v931_v9, 16  ;;  %v969_v12 = vshll.u32 %v931_v9, 16  ;;  %v1284_v18 = vrot.slane %v931_v9, 2 }
  0xef   : > { %1757 = vmatpush.bf16.msrb.mxu2 %v9923_v42  ;;  %v7590_v42 = vld [vmem:[#allocation8 + $0x80] sm:$0xf] }
  0xf0   : > { %1174 = vmatmul.bf16.vlgmr.msrb.gmra.mxu3 %v1116_v10  ;;  %v971_v13 = vrot.slane %v969_v12, 1  ;;  %v1199_v14 = vrot.slane %v967_v11, 1  ;;  %v1200_v15 = vrot.slane %v969_v12, 2  ;;  %v9954_v12 = vld [vmem:[#allocation8 + $0xec] sm:$0xf0] }
  0xf2   : > { %v972_v16 = vor.u32 %v971_v13, %v967_v11  ;;  %v1201_v17 = vor.u32 %v1200_v15, %v1199_v14  ;;  %v7638_v11 = vld [vmem:[#allocation8 + $0xe0] sm:$0xf]  ;;  %v9952_v13 = vld [vmem:[#allocation8 + $0xe4] sm:$0xf] }
  0xf3   : > { %1758 = vmatpush.bf16.msrb.mxu2 %v9922_v45  ;;  %v7639_v15 = vor.u32 %v9954_v12, %v7638_v11  ;;  %v7648_v45 = vld [vmem:[#allocation8 + $0xf8] sm:$0xf0] }
  0xf4   : > { %1030 = vmatmul.bf16.vlgmr.msrb.gmra.mxu1 %v972_v16  ;;  %1259 = vmatmul.bf16.vlgmr.msra.gmra.mxu0 %v1201_v17  ;;  %v7640_v16 = vld [vmem:[#allocation8 + $0xf0] sm:$0xf0]  ;;  %v7646_v17 = vld [vmem:[#allocation8 + $0xe8] sm:$0xf]  ;;  %v7616_v11 = vld [vmem:[#allocation8 + $0xb8] sm:$0xf0] }
  0xf5   : > { %1676 = vmatpush.bf16.msrb.mxu1 %v9915_v25  ;;  %v7643_v20 = vor.u32 %v9952_v13, %v7640_v16  ;;  %1972 = vmatpush.bf16.msrb.mxu3 %v7639_v15  ;;  %v7624_v25 = vld [vmem:[#allocation8 + $0xd0] sm:$0xf0]  ;;  %v7600_v15 = vld [vmem:[#allocation8 + $0x98] sm:$0xf0] }
  0xf6   : > { %v7627_v28 = vor.u32 %v9948_v24, %v7624_v25  ;;  %v7560_v25 = vld [vmem:[#allocation8 + $0x50] sm:$0xf0] }
  0xf7   : > { %1759 = vmatpush.bf16.msrb.mxu2 %v9921_v48  ;;  %1985 = vmatpush.bf16.msra.mxu0 %v7643_v20 }
  0xf9   : > { %1677 = vmatpush.bf16.msrb.mxu1 %v9914_v29  ;;  %v7630_v29 = vld [vmem:[#allocation8 + $0xc8] sm:$0xf]  ;;  %1973 = vmatpush.bf16.msrb.mxu3 %v7623_v27  ;;  %v9935_v27 = vld [vmem:[#allocation8 + $0x54] sm:$0xf0] }
  0xfa   : > { %v7631_v31 = vor.u32 %v9951_v30, %v7630_v29  ;;  %v9933_v30 = vld [vmem:[#allocation8 + $0x4c] sm:$0xf] }
  0xfb   : > { %1760 = vmatpush.bf16.msrb.mxu2 %v9920_v52  ;;  %1986 = vmatpush.bf16.msra.mxu0 %v7627_v28  ;;  %v7591_v52 = vor.u32 %v9942_v43, %v7590_v42  ;;  %v7563_v28 = vor.u32 %v9932_v23, %v7560_v25  ;;  %v9929_v42 = vld [vmem:[#allocation8 + $0x2c] sm:$0xf]  ;;  %v7552_v43 = vld [vmem:[#allocation8 + $0x38] sm:$0xf0]  ;;  %v9979_v23 = vld [vmem:[#allocation8 + $0x1b4] sm:$0xf0] }
  0xfd   : > { %1678 = vmatpush.bf16.msrb.mxu1 %v9913_v33  ;;  %v9946_v33 = vld [vmem:[#allocation8 + $0xac] sm:$0xf0] }
  0xff   : > { %1761 = vmatpush.bf16.msrb.mxu2 %v9919_v55  ;;  %v7574_v55 = vld [vmem:[#allocation8 + $0x60] sm:$0xf]  ;;  %1987 = vmatpush.bf16.msra.mxu0 %v7611_v46  ;;  %v9926_v46 = vld [vmem:[#allocation8 + $0xc] sm:$0xf0] }
 0x101   : > { %1679 = vmatpush.bf16.msrb.mxu1 %v9912_v37  ;;  %v7607_v37 = vor.u32 %v9946_v33, %v7606_v32  ;;  %v7542_v33 = vld [vmem:[#allocation8 + $0x20] sm:$0xf] }
 0x103   : > { %1762 = vmatpush.bf16.msrb.mxu2 %v9918_v57  ;;  %1974 = vmatpush.bf16.msrb.mxu3 %v7607_v37  ;;  %v7544_v37 = vld [vmem:[#allocation8 + $0x30] sm:$0xf0] }
 0x104   : > { %1342 = vmatmul.bf16.vlgmr.msra.gmra.mxu1 %v1284_v18  ;;  %v9955_v18 = vld [vmem:[#allocation8 + $0xf4] sm:$0xf0] }
 0x105   : > { %1680 = vmatpush.bf16.msrb.mxu1 %v9911_v41  ;;  %v7647_v21 = vor.u32 %v9955_v18, %v7646_v17  ;;  %v7615_v41 = vor.u32 %v9947_v39, %v7614_v38  ;;  %v9937_v17 = vld [vmem:[#allocation8 + $0x6c] sm:$0xf]  ;;  %v7584_v18 = vld [vmem:[#allocation8 + $0x78] sm:$0xf0]  ;;  %v7550_v38 = vld [vmem:[#allocation8 + $0x28] sm:$0xf] }
 0x106   : > { %v9931_v39 = vld [vmem:[#allocation8 + $0x34] sm:$0xf0] }
 0x107   : > { %1763 = vmatpush.bf16.msrb.mxu2 %v9917_v61  ;;  %v9949_v61 = vld [vmem:[#allocation8 + $0xcc] sm:$0xf]  ;;  %1975 = vmatpush.bf16.msrb.mxu3 %v7591_v52 }
 0x109   : > { %1681 = vmatpush.bf16.msrb.mxu1 %v9910_v44  ;;  %v9953_v44 = vld [vmem:[#allocation8 + $0xec] sm:$0xf] }
 0x10b   : > { %1764 = vmatpush.bf16.msrb.mxu2 %v9916_v4  ;;  %v7576_v4 = vld [vmem:[#allocation8 + $0x70] sm:$0xf0] }
 0x10d   : > { %1682 = vmatpush.bf16.msrb.mxu1 %v9909_v47  ;;  %v9940_v47 = vld [vmem:[#allocation8 + $0x84] sm:$0xf] }
 0x111   : > { %1683 = vmatpush.bf16.msrb.mxu1 %v9908_v51  ;;  %v7592_v51 = vld [vmem:[#allocation8 + $0x90] sm:$0xf0] }
 0x115   : > { %1998 = vmatpush.bf16.msra.mxu1 %v7647_v21  ;;  %v7558_v21 = vld [vmem:[#allocation8 + $0x40] sm:$0xf] }
 0x116   : > { %v7559_v24 = vor.u32 %v9934_v22, %v7558_v21  ;;  %v7736_v21 = vld [vmem:[#allocation8 + $0x1b0] sm:$0xf0]  ;;  %v7742_v22 = vld [vmem:[#allocation8 + $0x1a8] sm:$0xf] }
 0x117   : > { %v7743_v25 = vor.u32 %v9979_v23, %v7742_v22 }
 0x119   : > { %1999 = vmatpush.bf16.msra.mxu1 %v7631_v31  ;;  %v7568_v31 = vld [vmem:[#allocation8 + $0x58] sm:$0xf0] }
 0x11a   : > { %v7571_v32 = vor.u32 %v9933_v30, %v7568_v31  ;;  %v9974_v30 = vld [vmem:[#allocation8 + $0x18c] sm:$0xf0]  ;;  %v9972_v31 = vld [vmem:[#allocation8 + $0x184] sm:$0xf] }
 0x11d   : > { %2000 = vmatpush.bf16.msra.mxu1 %v7615_v41  ;;  %v7551_v41 = vor.u32 %v9931_v39, %v7550_v38  ;;  %v9973_v38 = vld [vmem:[#allocation8 + $0x18c] sm:$0xf]  ;;  %v7728_v39 = vld [vmem:[#allocation8 + $0x198] sm:$0xf0] }
 0x171   : > { %v1031_v49 = vpop.f32.mrf.mxu1  ;;  %v1093_v50 = vpop.f32.mrf.mxu2 }
 0x172   : > { %v1094_v54 = vadd.f32 %v1093_v50, %v1031_v49  ;;  %v1260_v59 = vpop.f32.mrf.mxu0 }
 0x173   : > { %v1175_v53 = vpop.f32.mrf.mxu3 }
 0x174   : > { %v1180_v58 = vadd.f32 %v1175_v53, %v1094_v54  ;;  %v7598_v53 = vld [vmem:[#allocation8 + $0x88] sm:$0xf]  ;;  %v9943_v54 = vld [vmem:[#allocation8 + $0x94] sm:$0xf0] }
 0x176   : > { %v1265_v63 = vadd.f32 %v1260_v59, %v1180_v58  ;;  %v9938_v59 = vld [vmem:[#allocation8 + $0x6c] sm:$0xf0] }
 0x179   : > { %v1033_v56 = vpop.f32.mrf.mxu1  ;;  %v1095_v60 = vpop.f32.mrf.mxu2 }
 0x17a   : > { %v1096_v62 = vadd.f32 %v1095_v60, %v1033_v56  ;;  %v1262_v8 = vpop.f32.mrf.mxu0  ;;  %v7651_v60 = vor.u32 %v9953_v44, %v7648_v45  ;;  %v7555_v44 = vor.u32 %v9929_v42, %v7552_v43  ;;  %v7526_v45 = vld [vmem:[#allocation8] sm:$0xf]  ;;  %v9970_v42 = vld [vmem:[#allocation8 + $0x16c] sm:$0xf0]  ;;  %v9968_v43 = vld [vmem:[#allocation8 + $0x164] sm:$0xf] }
 0x17b   : > { %v1177_v1 = vpop.f32.mrf.mxu3 }
 0x17c   : > { %v1181_v5 = vadd.f32 %v1177_v1, %v1096_v62  ;;  %v7595_v62 = vor.u32 %v9940_v47, %v7592_v51  ;;  %v7632_v1 = vld [vmem:[#allocation8 + $0xd8] sm:$0xf0]  ;;  %v9924_v47 = vld [vmem:[#allocation8 + $0x4] sm:$0xf]  ;;  %v9927_v51 = vld [vmem:[#allocation8 + $0x14] sm:$0xf0] }
 0x17e   : > { %v1266_v10 = vadd.f32 %v1262_v8, %v1181_v5  ;;  %v7575_v5 = vor.u32 %v9938_v59, %v7574_v55  ;;  %v7635_v8 = vor.u32 %v9949_v61, %v7632_v1  ;;  %1988 = vmatpush.bf16.msra.mxu0 %v7595_v62  ;;  %v7536_v55 = vld [vmem:[#allocation8 + $0x18] sm:$0xf0]  ;;  %v9984_v59 = vld [vmem:[#allocation8 + $0x1e4] sm:$0xf]  ;;  %v9985_v1 = vld [vmem:[#allocation8 + $0x1ec] sm:$0xf] }
 0x180   : > { %1976 = vmatpush.bf16.msrb.mxu3 %v7575_v5  ;;  %v9982_v5 = vld [vmem:[#allocation8 + $0x1cc] sm:$0xf0] }
 0x181   : > { %v1343_v2 = vpop.f32.mrf.mxu1 }
 0x182   : > { %v1348_v3 = vadd.f32 %v1343_v2, %v1265_v63  ;;  %v7599_v2 = vor.u32 %v9943_v54, %v7598_v53  ;;  %v9925_v54 = vld [vmem:[#allocation8 + $0xc] sm:$0xf] }
 0x184   : > { %v1355_v6 = vadd.f32 %v10578_v0, %v1348_v3  ;;  %v9936_v3 = vld [vmem:[#allocation8 + $0x64] sm:$0xf]  ;;  %2001 = vmatpush.bf16.msra.mxu1 %v7599_v2  ;;  %1977 = vmatpush.bf16.msrb.mxu3 %v7559_v24 }
 0x186   : > { %v1357_v7 = vmax.f32 %v1355_v6, 0.0  ;;  %v7582_v6 = vld [vmem:[#allocation8 + $0x68] sm:$0xf] }
 0x188   : > { %v1359_v9 = vpack.c.bf16 %v1357_v7, %v1357_v7 }
 0x189   : > { %v1345_v14 = vpop.f32.mrf.mxu1 }
 0x18a   : > { %v1349_v19 = vadd.f32 %v1345_v14, %v1266_v10  ;;  %1520 = vmatmul.bf16.vlgmr.msra.gmra.mxu3 %v1359_v9  ;;  %v7579_v9 = vor.u32 %v9936_v3, %v7576_v4  ;;  %v9945_v10 = vld [vmem:[#allocation8 + $0xac] sm:$0xf]  ;;  %v7776_v3 = vld [vmem:[#allocation8 + $0x1f8] sm:$0xf0]  ;;  %v7750_v4 = vld [vmem:[#allocation8 + $0x1c0] sm:$0xf] }
 0x18b   : > { %v7619_v13 = vor.u32 %v9945_v10, %v7616_v11  ;;  %v9941_v14 = vld [vmem:[#allocation8 + $0x8c] sm:$0xf]  ;;  %v7758_v10 = vld [vmem:[#allocation8 + $0x1c8] sm:$0xf] }
 0x18c   : > { %v1356_v26 = vadd.f32 %v10578_v0, %v1349_v19  ;;  %1989 = vmatpush.bf16.msra.mxu0 %v7579_v9  ;;  %v7603_v16 = vor.u32 %v9941_v14, %v7600_v15  ;;  %v7587_v19 = vor.u32 %v9937_v17, %v7584_v18  ;;  %v7752_v9 = vld [vmem:[#allocation8 + $0x1d0] sm:$0xf0]  ;;  %v7760_v14 = vld [vmem:[#allocation8 + $0x1d8] sm:$0xf0]  ;;  %v7734_v17 = vld [vmem:[#allocation8 + $0x1a0] sm:$0xf] }
 0x18d   : > { %v9978_v18 = vld [vmem:[#allocation8 + $0x1ac] sm:$0xf0] }
 0x18e   : > { %v1358_v34 = vmax.f32 %v1356_v26, 0.0  ;;  %v7566_v26 = vld [vmem:[#allocation8 + $0x48] sm:$0xf] }
 0x18f   : > { %v7567_v29 = vor.u32 %v9935_v27, %v7566_v26  ;;  %v9977_v26 = vld [vmem:[#allocation8 + $0x1ac] sm:$0xf]  ;;  %v7744_v27 = vld [vmem:[#allocation8 + $0x1b8] sm:$0xf0] }
 0x190   : > { %v10937_v40 = vpack.c.bf16 %v1358_v34, %v1357_v7  ;;  %v9939_v7 = vld [vmem:[#allocation8 + $0x74] sm:$0xf0]  ;;  %1990 = vmatpush.bf16.msra.mxu0 %v7563_v28  ;;  %v9930_v34 = vld [vmem:[#allocation8 + $0x2c] sm:$0xf0]  ;;  %v7747_v28 = vor.u32 %v9977_v26, %v7744_v27 }
 0x191   : > { %v7583_v12 = vor.u32 %v9939_v7, %v7582_v6  ;;  %v7543_v36 = vor.u32 %v9930_v34, %v7542_v33  ;;  %v7779_v6 = vor.u32 %v9985_v1, %v7776_v3  ;;  %v7751_v7 = vor.u32 %v9982_v5, %v7750_v4  ;;  %v7720_v33 = vld [vmem:[#allocation8 + $0x190] sm:$0xf0]  ;;  %v7726_v34 = vld [vmem:[#allocation8 + $0x188] sm:$0xf]  ;;  %v9962_v3 = vld [vmem:[#allocation8 + $0x12c] sm:$0xf0] }
 0x192   : > { %v1543_v48 = vrot.slane %v10937_v40, 1  ;;  %v1396_v49 = vshrl.u32 %v10937_v40, 16  ;;  %v1398_v50 = vshll.u32 %v10937_v40, 16  ;;  %v1707_v20 = vrot.slane %v10937_v40, 2  ;;  %v9960_v4 = vld [vmem:[#allocation8 + $0x124] sm:$0xf] }
 0x193   : > { %2002 = vmatpush.bf16.msra.mxu1 %v7583_v12  ;;  %v7547_v40 = vor.u32 %v9928_v35, %v7544_v37  ;;  %1978 = vmatpush.bf16.msrb.mxu3 %v7543_v36  ;;  %v9983_v12 = vld [vmem:[#allocation8 + $0x1d4] sm:$0xf0]  ;;  %v7723_v36 = vor.u32 %v9972_v31, %v7720_v33 }
 0x194   : > { %1601 = vmatmul.bf16.vlgmr.msrb.gmra.mxu0 %v1543_v48  ;;  %v1400_v56 = vrot.slane %v1398_v50, 1  ;;  %v1624_v57 = vrot.slane %v1396_v49, 1  ;;  %v1625_v58 = vrot.slane %v1398_v50, 2  ;;  %v7527_v48 = vor.u32 %v9926_v46, %v7526_v45  ;;  %v7534_v50 = vld [vmem:[#allocation8 + $0x8] sm:$0xf] }
 0x195   : > { %1991 = vmatpush.bf16.msra.mxu0 %v7547_v40  ;;  %v7535_v53 = vor.u32 %v9927_v51, %v7534_v50  ;;  %v7759_v15 = vor.u32 %v9983_v12, %v7758_v10  ;;  %v9975_v35 = vld [vmem:[#allocation8 + $0x194] sm:$0xf0]  ;;  %v7702_v40 = vld [vmem:[#allocation8 + $0x160] sm:$0xf]  ;;  %v7710_v45 = vld [vmem:[#allocation8 + $0x168] sm:$0xf] }
 0x196   : > { %v1401_v63 = vor.u32 %v1400_v56, %v1396_v49  ;;  %v1626_v0 = vor.u32 %v1625_v58, %v1624_v57  ;;  %v7528_v49 = vld [vmem:[#allocation8 + $0x10] sm:$0xf0]  ;;  %v7766_v56 = vld [vmem:[#allocation8 + $0x1e0] sm:$0xf]  ;;  %v7539_v57 = vor.u32 %v9925_v54, %v7536_v55  ;;  %v9986_v58 = vld [vmem:[#allocation8 + $0x1ec] sm:$0xf0]  ;;  %v7727_v37 = vor.u32 %v9975_v35, %v7726_v34 }
 0x197   : > { %2003 = vmatpush.bf16.msra.mxu1 %v7567_v29  ;;  %v7531_v52 = vor.u32 %v9924_v47, %v7528_v49  ;;  %1979 = vmatpush.bf16.msrb.mxu3 %v7527_v48  ;;  %v7767_v61 = vor.u32 %v9986_v58, %v7766_v56  ;;  %v7718_v29 = vld [vmem:[#allocation8 + $0x180] sm:$0xf]  ;;  %v9971_v46 = vld [vmem:[#allocation8 + $0x174] sm:$0xf0]  ;;  %v9969_v47 = vld [vmem:[#allocation8 + $0x16c] sm:$0xf]  ;;  %v7703_v48 = vor.u32 %v9970_v42, %v7702_v40 }
 0x198   : > { %1459 = vmatmul.bf16.vlgmr.msra.gmra.mxu2 %v1401_v63  ;;  %1684 = vmatmul.bf16.vlgmr.msrb.gmra.mxu1 %v1626_v0  ;;  %v7774_v63 = vld [vmem:[#allocation8 + $0x1e8] sm:$0xf]  ;;  %v9987_v0 = vld [vmem:[#allocation8 + $0x1f4] sm:$0xf0]  ;;  %v7712_v50 = vld [vmem:[#allocation8 + $0x178] sm:$0xf0]  ;;  %v7711_v51 = vor.u32 %v9971_v46, %v7710_v45 }
 0x199   : > { %2011 = vmatpush.bf16.msra.mxu2 %v7651_v60  ;;  %v7768_v60 = vld [vmem:[#allocation8 + $0x1f0] sm:$0xf0]  ;;  %1992 = vmatpush.bf16.msra.mxu0 %v7531_v52  ;;  %v7775_v2 = vor.u32 %v9987_v0, %v7774_v63  ;;  %v7715_v52 = vor.u32 %v9969_v47, %v7712_v50  ;;  %v9966_v54 = vld [vmem:[#allocation8 + $0x14c] sm:$0xf0]  ;;  %v9964_v55 = vld [vmem:[#allocation8 + $0x144] sm:$0xf] }
 0x19a   : > { %v7771_v62 = vor.u32 %v9984_v59, %v7768_v60  ;;  %v7694_v58 = vld [vmem:[#allocation8 + $0x148] sm:$0xf]  ;;  %v9967_v59 = vld [vmem:[#allocation8 + $0x154] sm:$0xf0]  ;;  %v7696_v63 = vld [vmem:[#allocation8 + $0x158] sm:$0xf0] }
 0x19b   : > { %2004 = vmatpush.bf16.msra.mxu1 %v7551_v41  ;;  %2236 = vmatpush.bf16.msra.mxu3 %v7767_v61  ;;  %v7731_v41 = vor.u32 %v9973_v38, %v7728_v39  ;;  %v7695_v61 = vor.u32 %v9967_v59, %v7694_v58  ;;  %v7680_v12 = vld [vmem:[#allocation8 + $0x138] sm:$0xf0]  ;;  %v7894_v40 = vld [vmem:[#allocation8 + $0x2e0] sm:$0xf]  ;;  %v10016_v42 = vld [vmem:[#allocation8 + $0x2e4] sm:$0xf] }
 0x19c   : > { %v10019_v45 = vld [vmem:[#allocation8 + $0x2f4] sm:$0xf0]  ;;  %v10017_v47 = vld [vmem:[#allocation8 + $0x2ec] sm:$0xf]  ;;  %v7880_v58 = vld [vmem:[#allocation8 + $0x2d0] sm:$0xf0] }
 0x19d   : > { %2012 = vmatpush.bf16.msra.mxu2 %v7635_v8  ;;  %2249 = vmatpush.bf16.msrb.mxu0 %v7771_v62  ;;  %v9980_v8 = vld [vmem:[#allocation8 + $0x1c4] sm:$0xf]  ;;  %v9965_v62 = vld [vmem:[#allocation8 + $0x14c] sm:$0xf]  ;;  %v7886_v59 = vld [vmem:[#allocation8 + $0x2c8] sm:$0xf] }
 0x19e   : > { %v7755_v11 = vor.u32 %v9980_v8, %v7752_v9  ;;  %v7699_v0 = vor.u32 %v9965_v62, %v7696_v63  ;;  %v9963_v8 = vld [vmem:[#allocation8 + $0x134] sm:$0xf0]  ;;  %v7888_v62 = vld [vmem:[#allocation8 + $0x2d8] sm:$0xf0] }
 0x19f   : > { %2005 = vmatpush.bf16.msra.mxu1 %v7535_v53  ;;  %2237 = vmatpush.bf16.msra.mxu3 %v7751_v7  ;;  %v7686_v53 = vld [vmem:[#allocation8 + $0x140] sm:$0xf]  ;;  %v7678_v7 = vld [vmem:[#allocation8 + $0x128] sm:$0xf] }
 0x1a0   : > { %v7687_v56 = vor.u32 %v9966_v54, %v7686_v53  ;;  %v7679_v10 = vor.u32 %v9963_v8, %v7678_v7  ;;  %v10014_v53 = vld [vmem:[#allocation8 + $0x2cc] sm:$0xf0]  ;;  %v7870_v7 = vld [vmem:[#allocation8 + $0x2a8] sm:$0xf]  ;;  %v10011_v8 = vld [vmem:[#allocation8 + $0x2b4] sm:$0xf0] }
 0x1a1   : > { %2013 = vmatpush.bf16.msra.mxu2 %v7619_v13  ;;  %v9981_v13 = vld [vmem:[#allocation8 + $0x1cc] sm:$0xf]  ;;  %2250 = vmatpush.bf16.msrb.mxu0 %v7755_v11 }
 0x1a2   : > { %v9961_v11 = vld [vmem:[#allocation8 + $0x12c] sm:$0xf] }
 0x1a3   : > { %2262 = vmatpush.bf16.msrb.mxu1 %v7775_v2  ;;  %v7670_v2 = vld [vmem:[#allocation8 + $0x120] sm:$0xf] }
 0x1a4   : > { %v7671_v5 = vor.u32 %v9962_v3, %v7670_v2  ;;  %v10010_v2 = vld [vmem:[#allocation8 + $0x2ac] sm:$0xf0] }
 0x1a5   : > { %2014 = vmatpush.bf16.msra.mxu2 %v7603_v16  ;;  %v7763_v16 = vor.u32 %v9981_v13, %v7760_v14  ;;  %v7683_v13 = vor.u32 %v9961_v11, %v7680_v12 }
 0x1a7   : > { %2263 = vmatpush.bf16.msrb.mxu1 %v7759_v15  ;;  %v7654_v15 = vld [vmem:[#allocation8 + $0x100] sm:$0xf] }
 0x1a8   : > { %1765 = vmatmul.bf16.vlgmr.msrb.gmra.mxu2 %v1707_v20  ;;  %v7735_v20 = vor.u32 %v9978_v18, %v7734_v17  ;;  %v9956_v17 = vld [vmem:[#allocation8 + $0x104] sm:$0xf] }
 0x1a9   : > { %2015 = vmatpush.bf16.msra.mxu2 %v7587_v19  ;;  %v9976_v19 = vld [vmem:[#allocation8 + $0x1a4] sm:$0xf] }
 0x1aa   : > { %v7739_v24 = vor.u32 %v9976_v19, %v7736_v21  ;;  %2238 = vmatpush.bf16.msra.mxu3 %v7735_v20  ;;  %v7656_v19 = vld [vmem:[#allocation8 + $0x110] sm:$0xf0]  ;;  %v7662_v20 = vld [vmem:[#allocation8 + $0x108] sm:$0xf]  ;;  %v9959_v21 = vld [vmem:[#allocation8 + $0x114] sm:$0xf0] }
 0x1ab   : > { %2264 = vmatpush.bf16.msrb.mxu1 %v7743_v25  ;;  %v7659_v22 = vor.u32 %v9956_v17, %v7656_v19  ;;  %v7663_v23 = vor.u32 %v9959_v21, %v7662_v20  ;;  %v7664_v25 = vld [vmem:[#allocation8 + $0x118] sm:$0xf0]  ;;  %v10004_v17 = vld [vmem:[#allocation8 + $0x284] sm:$0xf]  ;;  %v7854_v19 = vld [vmem:[#allocation8 + $0x288] sm:$0xf] }
 0x1ac   : > { %2251 = vmatpush.bf16.msrb.mxu0 %v7739_v24  ;;  %v9957_v24 = vld [vmem:[#allocation8 + $0x10c] sm:$0xf]  ;;  %v10007_v20 = vld [vmem:[#allocation8 + $0x294] sm:$0xf0] }
 0x1ad   : > { %2016 = vmatpush.bf16.msra.mxu2 %v7571_v32  ;;  %v7719_v32 = vor.u32 %v9974_v30, %v7718_v29  ;;  %v7667_v26 = vor.u32 %v9957_v24, %v7664_v25  ;;  %v10005_v21 = vld [vmem:[#allocation8 + $0x28c] sm:$0xf]  ;;  %v7830_v25 = vld [vmem:[#allocation8 + $0x260] sm:$0xf] }
 0x1af   : > { %2239 = vmatpush.bf16.msra.mxu3 %v7719_v32  ;;  %2265 = vmatpush.bf16.msrb.mxu1 %v7727_v37 }
 0x1b0   : > { %2252 = vmatpush.bf16.msrb.mxu0 %v7723_v36  ;;  %v10579_v36 = vld [vmem:[%s11133_s2 + $0x2] ss:$0 sm:$0xff] }
 0x1b1   : > { %2017 = vmatpush.bf16.msra.mxu2 %v7555_v44  ;;  %v7704_v44 = vld [vmem:[#allocation8 + $0x170] sm:$0xf0] }
 0x1b2   : > { %v7707_v49 = vor.u32 %v9968_v43, %v7704_v44  ;;  %v7896_v43 = vld [vmem:[#allocation8 + $0x2f0] sm:$0xf0]  ;;  %v7902_v44 = vld [vmem:[#allocation8 + $0x2e8] sm:$0xf] }
 0x1b3   : > { %2240 = vmatpush.bf16.msra.mxu3 %v7703_v48  ;;  %2266 = vmatpush.bf16.msrb.mxu1 %v7711_v51  ;;  %v7904_v48 = vld [vmem:[#allocation8 + $0x2f8] sm:$0xf0]  ;;  %v7899_v51 = vor.u32 %v10016_v42, %v7896_v43  ;;  %v9996_v42 = vld [vmem:[#allocation8 + $0x244] sm:$0xf]  ;;  %v7816_v43 = vld [vmem:[#allocation8 + $0x250] sm:$0xf0] }
 0x1b4   : > { %2253 = vmatpush.bf16.msrb.mxu0 %v7707_v49 }
 0x1b5   : > { %2018 = vmatpush.bf16.msra.mxu2 %v7539_v57  ;;  %v7688_v57 = vld [vmem:[#allocation8 + $0x150] sm:$0xf0] }
 0x1b6   : > { %v7691_v60 = vor.u32 %v9964_v55, %v7688_v57  ;;  %v7903_v55 = vor.u32 %v10019_v45, %v7902_v44  ;;  %v10012_v57 = vld [vmem:[#allocation8 + $0x2c4] sm:$0xf]  ;;  %v7822_v44 = vld [vmem:[#allocation8 + $0x248] sm:$0xf]  ;;  %v9999_v45 = vld [vmem:[#allocation8 + $0x254] sm:$0xf0] }
 0x1b7   : > { %2241 = vmatpush.bf16.msra.mxu3 %v7687_v56  ;;  %2267 = vmatpush.bf16.msrb.mxu1 %v7695_v61  ;;  %v7907_v56 = vor.u32 %v10017_v47, %v7904_v48  ;;  %v10013_v61 = vld [vmem:[#allocation8 + $0x2cc] sm:$0xf]  ;;  %v7824_v47 = vld [vmem:[#allocation8 + $0x258] sm:$0xf0] }
 0x1b8   : > { %2254 = vmatpush.bf16.msrb.mxu0 %v7691_v60  ;;  %v10015_v60 = vld [vmem:[#allocation8 + $0x2d4] sm:$0xf0] }
 0x1b9   : > { %2275 = vmatpush.bf16.msrb.mxu2 %v7779_v6  ;;  %v7672_v6 = vld [vmem:[#allocation8 + $0x130] sm:$0xf0]  ;;  %v7887_v3 = vor.u32 %v10015_v60, %v7886_v59  ;;  %v9993_v59 = vld [vmem:[#allocation8 + $0x22c] sm:$0xf]  ;;  %v7808_v60 = vld [vmem:[#allocation8 + $0x238] sm:$0xf0] }
 0x1ba   : > { %v7675_v9 = vor.u32 %v9960_v4, %v7672_v6  ;;  %v7891_v4 = vor.u32 %v10013_v61, %v7888_v62  ;;  %v7864_v6 = vld [vmem:[#allocation8 + $0x2b0] sm:$0xf0]  ;;  %v7782_v61 = vld [vmem:[#allocation8 + $0x200] sm:$0xf] }
 0x1bb   : > { %2242 = vmatpush.bf16.msra.mxu3 %v7671_v5  ;;  %2268 = vmatpush.bf16.msrb.mxu1 %v7679_v10  ;;  %v10008_v5 = vld [vmem:[#allocation8 + $0x2a4] sm:$0xf]  ;;  %v7872_v10 = vld [vmem:[#allocation8 + $0x2b8] sm:$0xf0] }
 0x1bc   : > { %2255 = vmatpush.bf16.msrb.mxu0 %v7675_v9  ;;  %v10009_v9 = vld [vmem:[#allocation8 + $0x2ac] sm:$0xf]  ;;  %v7867_v12 = vor.u32 %v10008_v5, %v7864_v6  ;;  %v7790_v5 = vld [vmem:[#allocation8 + $0x208] sm:$0xf]  ;;  %v9991_v6 = vld [vmem:[#allocation8 + $0x214] sm:$0xf0] }
 0x1bd   : > { %2276 = vmatpush.bf16.msrb.mxu2 %v7763_v16  ;;  %v9958_v16 = vld [vmem:[#allocation8 + $0x10c] sm:$0xf0] }
 0x1be   : > { %v7655_v18 = vor.u32 %v9958_v16, %v7654_v15  ;;  %v7871_v15 = vor.u32 %v10011_v8, %v7870_v7  ;;  %v7875_v16 = vor.u32 %v10009_v9, %v7872_v10  ;;  %v9989_v7 = vld [vmem:[#allocation8 + $0x20c] sm:$0xf]  ;;  %v7792_v8 = vld [vmem:[#allocation8 + $0x218] sm:$0xf0]  ;;  %v8022_v9 = vld [vmem:[#allocation8 + $0x3e0] sm:$0xf] }
 0x1bf   : > { %2269 = vmatpush.bf16.msrb.mxu1 %v7663_v23  ;;  %v10050_v10 = vld [vmem:[#allocation8 + $0x3ec] sm:$0xf0] }
 0x1c0   : > { %2243 = vmatpush.bf16.msra.mxu3 %v7655_v18  ;;  %2256 = vmatpush.bf16.msrb.mxu0 %v7659_v22  ;;  %v7848_v18 = vld [vmem:[#allocation8 + $0x290] sm:$0xf0]  ;;  %v7856_v22 = vld [vmem:[#allocation8 + $0x298] sm:$0xf0] }
 0x1c1   : > { %2277 = vmatpush.bf16.msrb.mxu2 %v7747_v28  ;;  %v7851_v24 = vor.u32 %v10004_v17, %v7848_v18  ;;  %v10049_v17 = vld [vmem:[#allocation8 + $0x3ec] sm:$0xf]  ;;  %v8032_v18 = vld [vmem:[#allocation8 + $0x3f8] sm:$0xf0] }
 0x1c5   : > { %2278 = vmatpush.bf16.msrb.mxu2 %v7731_v41  ;;  %v10018_v41 = vld [vmem:[#allocation8 + $0x2ec] sm:$0xf0] }
 0x1c6   : > { %v7895_v50 = vor.u32 %v10018_v41, %v7894_v40 }
 0x1c9   : > { %2279 = vmatpush.bf16.msrb.mxu2 %v7715_v52  ;;  %v7878_v52 = vld [vmem:[#allocation8 + $0x2c0] sm:$0xf] }
 0x1ca   : > { %v7879_v63 = vor.u32 %v10014_v53, %v7878_v52  ;;  %v9994_v52 = vld [vmem:[#allocation8 + $0x22c] sm:$0xf0]  ;;  %v7823_v53 = vor.u32 %v9999_v45, %v7822_v44  ;;  %v10043_v44 = vld [vmem:[#allocation8 + $0x3b4] sm:$0xf0]  ;;  %v10041_v45 = vld [vmem:[#allocation8 + $0x3ac] sm:$0xf] }
 0x1cd   : > { %2280 = vmatpush.bf16.msrb.mxu2 %v7699_v0  ;;  %v7883_v0 = vor.u32 %v10012_v57, %v7880_v58  ;;  %v7806_v57 = vld [vmem:[#allocation8 + $0x228] sm:$0xf]  ;;  %v9995_v58 = vld [vmem:[#allocation8 + $0x234] sm:$0xf0] }
 0x1d1   : > { %2281 = vmatpush.bf16.msrb.mxu2 %v7683_v13  ;;  %v7846_v13 = vld [vmem:[#allocation8 + $0x280] sm:$0xf] }
 0x1d5   : > { %2282 = vmatpush.bf16.msrb.mxu2 %v7667_v26  ;;  %v10002_v26 = vld [vmem:[#allocation8 + $0x26c] sm:$0xf0] }
 0x20d   : > { %v1521_v1 = vpop.f32.mrf.mxu3 }
 0x211   : > { %v1602_v14 = vpop.f32.mrf.mxu0 }
 0x215   : > { %v1523_v27 = vpop.f32.mrf.mxu3  ;;  %v1685_v28 = vpop.f32.mrf.mxu1 }
 0x216   : > { %v7855_v27 = vor.u32 %v10007_v20, %v7854_v19  ;;  %v7791_v19 = vor.u32 %v9991_v6, %v7790_v5  ;;  %v7795_v20 = vor.u32 %v9989_v7, %v7792_v8  ;;  %v10035_v5 = vld [vmem:[#allocation8 + $0x374] sm:$0xf0]  ;;  %v10033_v6 = vld [vmem:[#allocation8 + $0x36c] sm:$0xf]  ;;  %v7968_v7 = vld [vmem:[#allocation8 + $0x378] sm:$0xf0] }
 0x219   : > { %v1604_v29 = vpop.f32.mrf.mxu0 }
 0x21a   : > { %v10000_v29 = vld [vmem:[#allocation8 + $0x264] sm:$0xf] }
 0x21b   : > { %v1460_v30 = vpop.f32.mrf.mxu2 }
 0x21c   : > { %v1522_v32 = vadd.f32 %v1521_v1, %v1460_v30  ;;  %v7862_v1 = vld [vmem:[#allocation8 + $0x2a0] sm:$0xf]  ;;  %v7832_v30 = vld [vmem:[#allocation8 + $0x270] sm:$0xf0] }
 0x21d   : > { %v1687_v31 = vpop.f32.mrf.mxu1  ;;  %v7863_v11 = vor.u32 %v10010_v2, %v7862_v1  ;;  %v9988_v1 = vld [vmem:[#allocation8 + $0x204] sm:$0xf]  ;;  %v7784_v2 = vld [vmem:[#allocation8 + $0x210] sm:$0xf0] }
 0x21e   : > { %v1606_v34 = vadd.f32 %v1602_v14, %v1522_v32  ;;  %v10006_v14 = vld [vmem:[#allocation8 + $0x28c] sm:$0xf0]  ;;  %v7838_v31 = vld [vmem:[#allocation8 + $0x268] sm:$0xf]  ;;  %v10003_v32 = vld [vmem:[#allocation8 + $0x274] sm:$0xf0] }
 0x21f   : > { %v7847_v23 = vor.u32 %v10006_v14, %v7846_v13  ;;  %v7839_v40 = vor.u32 %v10003_v32, %v7838_v31  ;;  %v8030_v13 = vld [vmem:[#allocation8 + $0x3e8] sm:$0xf]  ;;  %v10045_v31 = vld [vmem:[#allocation8 + $0x3cc] sm:$0xf]  ;;  %v8016_v32 = vld [vmem:[#allocation8 + $0x3d8] sm:$0xf0] }
 0x220   : > { %v1689_v35 = vadd.f32 %v1685_v28, %v1606_v34  ;;  %v7859_v28 = vor.u32 %v10005_v21, %v7856_v22  ;;  %v7840_v34 = vld [vmem:[#allocation8 + $0x278] sm:$0xf0]  ;;  %v8023_v21 = vor.u32 %v10050_v10, %v8022_v9  ;;  %v7942_v10 = vld [vmem:[#allocation8 + $0x340] sm:$0xf] }
 0x223   : > { %v1462_v33 = vpop.f32.mrf.mxu2 }
 0x224   : > { %v10001_v33 = vld [vmem:[#allocation8 + $0x26c] sm:$0xf] }
 0x225   : > { %v7843_v41 = vor.u32 %v10001_v33, %v7840_v34 }
 0x22b   : > { %v1766_v37 = vpop.f32.mrf.mxu2 }
 0x22c   : > { %v1770_v38 = vadd.f32 %v1766_v37, %v1689_v35  ;;  %v7835_v37 = vor.u32 %v10000_v29, %v7832_v30  ;;  %v8014_v29 = vld [vmem:[#allocation8 + $0x3c8] sm:$0xf]  ;;  %v10047_v30 = vld [vmem:[#allocation8 + $0x3d4] sm:$0xf0] }
 0x22e   : > { %v1776_v39 = vadd.f32 %v10579_v36, %v1770_v38  ;;  %v7831_v36 = vor.u32 %v10002_v26, %v7830_v25  ;;  %v7814_v38 = vld [vmem:[#allocation8 + $0x240] sm:$0xf]  ;;  %v8035_v26 = vor.u32 %v10049_v17, %v8032_v18  ;;  %v10031_v17 = vld [vmem:[#allocation8 + $0x354] sm:$0xf0]  ;;  %v10029_v18 = vld [vmem:[#allocation8 + $0x34c] sm:$0xf] }
 0x230   : > { %v1777_v46 = vmax.f32 %v1776_v39, 0.0  ;;  %v9998_v39 = vld [vmem:[#allocation8 + $0x24c] sm:$0xf0] }
 0x231   : > { %v7815_v48 = vor.u32 %v9998_v39, %v7814_v38  ;;  %v10042_v38 = vld [vmem:[#allocation8 + $0x3ac] sm:$0xf0]  ;;  %v8015_v39 = vor.u32 %v10047_v30, %v8014_v29  ;;  %v10027_v29 = vld [vmem:[#allocation8 + $0x334] sm:$0xf0]  ;;  %v10025_v30 = vld [vmem:[#allocation8 + $0x32c] sm:$0xf] }
 0x232   : > { %v10946_v49 = vpack.c.bf16 %v1777_v46, %v1777_v46  ;;  %v9997_v46 = vld [vmem:[#allocation8 + $0x24c] sm:$0xf] }
 0x233   : > { %v1768_v54 = vpop.f32.mrf.mxu2 }
 0x234   : > { %1980 = vmatmul.bf16.vlgmr.msrb.gmra.mxu3 %v10946_v49  ;;  %1993 = vmatmul.bf16.vlgmr.msra.gmra.mxu0 %v10946_v49  ;;  %v10953_v35 = vshrl.u32 %v10946_v49, 16  ;;  %v7827_v54 = vor.u32 %v9997_v46, %v7824_v47  ;;  %v2334_v33 = vrot.slane %v10946_v49, 1  ;;  %v8000_v46 = vld [vmem:[#allocation8 + $0x3b8] sm:$0xf0] }
 0x235   : > { %2006 = vmatmul.bf16.vlgmr.msra.gmra.mxu1 %v10946_v49  ;;  %2019 = vmatmul.bf16.vlgmr.msra.gmra.mxu2 %v10946_v49 }
 0x236   : > { %2496 = vmatpush.bf16.msrb.mxu3 %v7895_v50  ;;  %2509 = vmatpush.bf16.msra.mxu0 %v7899_v51  ;;  %v7819_v50 = vor.u32 %v9996_v42, %v7816_v43  ;;  %v7798_v51 = vld [vmem:[#allocation8 + $0x220] sm:$0xf]  ;;  %v7992_v42 = vld [vmem:[#allocation8 + $0x3b0] sm:$0xf0]  ;;  %v7998_v43 = vld [vmem:[#allocation8 + $0x3a8] sm:$0xf] }
 0x237   : > { %2522 = vmatpush.bf16.msra.mxu1 %v7903_v55  ;;  %2535 = vmatpush.bf16.msra.mxu2 %v7907_v56  ;;  %v9992_v55 = vld [vmem:[#allocation8 + $0x224] sm:$0xf]  ;;  %v7800_v56 = vld [vmem:[#allocation8 + $0x230] sm:$0xf0]  ;;  %v7799_v62 = vor.u32 %v9994_v52, %v7798_v51  ;;  %v10038_v51 = vld [vmem:[#allocation8 + $0x38c] sm:$0xf0]  ;;  %v7999_v52 = vor.u32 %v10043_v44, %v7998_v43 }
 0x238   : > { %v10021_v43 = vld [vmem:[#allocation8 + $0x30c] sm:$0xf]  ;;  %v7920_v44 = vld [vmem:[#allocation8 + $0x318] sm:$0xf0] }
 0x23a   : > { %2497 = vmatpush.bf16.msrb.mxu3 %v7879_v63  ;;  %2510 = vmatpush.bf16.msra.mxu0 %v7883_v0  ;;  %v7803_v63 = vor.u32 %v9992_v55, %v7800_v56  ;;  %v9990_v0 = vld [vmem:[#allocation8 + $0x20c] sm:$0xf0]  ;;  %v7976_v55 = vld [vmem:[#allocation8 + $0x390] sm:$0xf0]  ;;  %v7982_v56 = vld [vmem:[#allocation8 + $0x388] sm:$0xf] }
 0x23b   : > { %2523 = vmatpush.bf16.msra.mxu1 %v7887_v3  ;;  %2536 = vmatpush.bf16.msra.mxu2 %v7891_v4  ;;  %v7807_v3 = vor.u32 %v9995_v58, %v7806_v57  ;;  %v7811_v4 = vor.u32 %v9993_v59, %v7808_v60  ;;  %v7783_v14 = vor.u32 %v9990_v0, %v7782_v61  ;;  %v10039_v57 = vld [vmem:[#allocation8 + $0x394] sm:$0xf0]  ;;  %v10037_v58 = vld [vmem:[#allocation8 + $0x38c] sm:$0xf]  ;;  %v7984_v59 = vld [vmem:[#allocation8 + $0x398] sm:$0xf0] }
 0x23c   : > { %v7983_v0 = vor.u32 %v10039_v57, %v7982_v56  ;;  %v7923_v57 = vor.u32 %v10021_v43, %v7920_v44  ;;  %v8096_v43 = vld [vmem:[#allocation8 + $0x478] sm:$0xf0] }
 0x23e   : > { %2498 = vmatpush.bf16.msrb.mxu3 %v7863_v11  ;;  %2511 = vmatpush.bf16.msra.mxu0 %v7867_v12  ;;  %v10048_v11 = vld [vmem:[#allocation8 + $0x3e4] sm:$0xf]  ;;  %v8024_v12 = vld [vmem:[#allocation8 + $0x3f0] sm:$0xf0] }
 0x23f   : > { %2524 = vmatpush.bf16.msra.mxu1 %v7871_v15  ;;  %2537 = vmatpush.bf16.msra.mxu2 %v7875_v16  ;;  %v7787_v15 = vor.u32 %v9988_v1, %v7784_v2  ;;  %v10051_v16 = vld [vmem:[#allocation8 + $0x3f4] sm:$0xf0]  ;;  %v8027_v22 = vor.u32 %v10048_v11, %v8024_v12  ;;  %v7987_v1 = vor.u32 %v10037_v58, %v7984_v59  ;;  %v10032_v2 = vld [vmem:[#allocation8 + $0x364] sm:$0xf]  ;;  %v10030_v11 = vld [vmem:[#allocation8 + $0x34c] sm:$0xf0] }
 0x240   : > { %v8031_v25 = vor.u32 %v10051_v16, %v8030_v13  ;;  %v7971_v13 = vor.u32 %v10033_v6, %v7968_v7  ;;  %v7950_v16 = vld [vmem:[#allocation8 + $0x348] sm:$0xf]  ;;  %v2593_v6 = vrot.slane %v10953_v35, 1 }
 0x242   : > { %2499 = vmatpush.bf16.msrb.mxu3 %v7847_v23  ;;  %2512 = vmatpush.bf16.msra.mxu0 %v7851_v24  ;;  %v8006_v23 = vld [vmem:[#allocation8 + $0x3c0] sm:$0xf]  ;;  %v10046_v24 = vld [vmem:[#allocation8 + $0x3cc] sm:$0xf0] }
 0x243   : > { %2525 = vmatpush.bf16.msra.mxu1 %v7855_v27  ;;  %2538 = vmatpush.bf16.msra.mxu2 %v7859_v28  ;;  %v10044_v27 = vld [vmem:[#allocation8 + $0x3c4] sm:$0xf]  ;;  %v8008_v28 = vld [vmem:[#allocation8 + $0x3d0] sm:$0xf0]  ;;  %v8007_v34 = vor.u32 %v10046_v24, %v8006_v23  ;;  %v10026_v23 = vld [vmem:[#allocation8 + $0x32c] sm:$0xf0]  ;;  %v7951_v24 = vor.u32 %v10031_v17, %v7950_v16 }
 0x244   : > { %2244 = vmatmul.bf16.vlgmr.msra.gmra.mxu3 %v10953_v35  ;;  %2257 = vmatmul.bf16.vlgmr.msrb.gmra.mxu0 %v10953_v35  ;;  %v10075_v16 = vld [vmem:[#allocation8 + $0x4b4] sm:$0xf0]  ;;  %v10073_v17 = vld [vmem:[#allocation8 + $0x4ac] sm:$0xf] }
 0x245   : > { %2270 = vmatmul.bf16.vlgmr.msrb.gmra.mxu1 %v10953_v35  ;;  %2283 = vmatmul.bf16.vlgmr.msrb.gmra.mxu2 %v10953_v35 }
 0x246   : > { %2500 = vmatpush.bf16.msrb.mxu3 %v7831_v36  ;;  %2513 = vmatpush.bf16.msra.mxu0 %v7835_v37  ;;  %v8011_v36 = vor.u32 %v10044_v27, %v8008_v28  ;;  %v7990_v37 = vld [vmem:[#allocation8 + $0x3a0] sm:$0xf]  ;;  %v7928_v27 = vld [vmem:[#allocation8 + $0x330] sm:$0xf0]  ;;  %v7934_v28 = vld [vmem:[#allocation8 + $0x328] sm:$0xf] }
 0x247   : > { %2526 = vmatpush.bf16.msra.mxu1 %v7839_v40  ;;  %2539 = vmatpush.bf16.msra.mxu2 %v7843_v41  ;;  %v8019_v40 = vor.u32 %v10045_v31, %v8016_v32  ;;  %v10040_v41 = vld [vmem:[#allocation8 + $0x3a4] sm:$0xf]  ;;  %v7991_v47 = vor.u32 %v10042_v38, %v7990_v37  ;;  %v7936_v31 = vld [vmem:[#allocation8 + $0x338] sm:$0xf0]  ;;  %v7910_v32 = vld [vmem:[#allocation8 + $0x300] sm:$0xf] }
 0x248   : > { %v10020_v37 = vld [vmem:[#allocation8 + $0x304] sm:$0xf]  ;;  %v7912_v38 = vld [vmem:[#allocation8 + $0x310] sm:$0xf0] }
 0x24a   : > { %2501 = vmatpush.bf16.msrb.mxu3 %v7815_v48  ;;  %2514 = vmatpush.bf16.msra.mxu0 %v7819_v50  ;;  %v7995_v48 = vor.u32 %v10040_v41, %v7992_v42  ;;  %v7974_v50 = vld [vmem:[#allocation8 + $0x380] sm:$0xf]  ;;  %v7918_v41 = vld [vmem:[#allocation8 + $0x308] sm:$0xf]  ;;  %v10023_v42 = vld [vmem:[#allocation8 + $0x314] sm:$0xf0] }
 0x24b   : > { %2527 = vmatpush.bf16.msra.mxu1 %v7823_v53  ;;  %2540 = vmatpush.bf16.msra.mxu2 %v7827_v54  ;;  %v8003_v53 = vor.u32 %v10041_v45, %v8000_v46  ;;  %v10036_v54 = vld [vmem:[#allocation8 + $0x384] sm:$0xf]  ;;  %v7975_v60 = vor.u32 %v10038_v51, %v7974_v50  ;;  %v8150_v45 = vld [vmem:[#allocation8 + $0x4e0] sm:$0xf]  ;;  %v10082_v46 = vld [vmem:[#allocation8 + $0x4ec] sm:$0xf0]  ;;  %v7919_v56 = vor.u32 %v10023_v42, %v7918_v41 }
 0x24c   : > { %v7979_v61 = vor.u32 %v10036_v54, %v7976_v55  ;;  %v8158_v50 = vld [vmem:[#allocation8 + $0x4e8] sm:$0xf]  ;;  %v10081_v54 = vld [vmem:[#allocation8 + $0x4ec] sm:$0xf]  ;;  %v8160_v55 = vld [vmem:[#allocation8 + $0x4f8] sm:$0xf0]  ;;  %v8151_v58 = vor.u32 %v10082_v46, %v8150_v45 }
 0x24d   : > { %v10067_v41 = vld [vmem:[#allocation8 + $0x474] sm:$0xf0]  ;;  %v10065_v42 = vld [vmem:[#allocation8 + $0x46c] sm:$0xf]  ;;  %v8070_v46 = vld [vmem:[#allocation8 + $0x440] sm:$0xf] }
 0x24e   : > { %2502 = vmatpush.bf16.msrb.mxu3 %v7799_v62  ;;  %2515 = vmatpush.bf16.msra.mxu0 %v7803_v63  ;;  %v7958_v62 = vld [vmem:[#allocation8 + $0x360] sm:$0xf]  ;;  %v10034_v63 = vld [vmem:[#allocation8 + $0x36c] sm:$0xf0] }
 0x24f   : > { %2528 = vmatpush.bf16.msra.mxu1 %v7807_v3  ;;  %2541 = vmatpush.bf16.msra.mxu2 %v7811_v4  ;;  %v7960_v3 = vld [vmem:[#allocation8 + $0x370] sm:$0xf0]  ;;  %v7966_v4 = vld [vmem:[#allocation8 + $0x368] sm:$0xf]  ;;  %v7959_v8 = vor.u32 %v10034_v63, %v7958_v62  ;;  %v8163_v63 = vor.u32 %v10081_v54, %v8160_v55  ;;  %v10063_v54 = vld [vmem:[#allocation8 + $0x454] sm:$0xf0] }
 0x250   : > { %v7963_v9 = vor.u32 %v10032_v2, %v7960_v3  ;;  %v7967_v12 = vor.u32 %v10035_v5, %v7966_v4  ;;  %v8142_v2 = vld [vmem:[#allocation8 + $0x4c8] sm:$0xf]  ;;  %v10079_v3 = vld [vmem:[#allocation8 + $0x4d4] sm:$0xf0]  ;;  %v10077_v4 = vld [vmem:[#allocation8 + $0x4cc] sm:$0xf] }
 0x251   : > { %v8144_v5 = vld [vmem:[#allocation8 + $0x4d8] sm:$0xf0]  ;;  %v10061_v55 = vld [vmem:[#allocation8 + $0x44c] sm:$0xf] }
 0x252   : > { %2503 = vmatpush.bf16.msrb.mxu3 %v7783_v14  ;;  %2516 = vmatpush.bf16.msra.mxu0 %v7787_v15  ;;  %v10028_v14 = vld [vmem:[#allocation8 + $0x344] sm:$0xf]  ;;  %v7944_v15 = vld [vmem:[#allocation8 + $0x350] sm:$0xf0] }
 0x253   : > { %2529 = vmatpush.bf16.msra.mxu1 %v7791_v19  ;;  %2542 = vmatpush.bf16.msra.mxu2 %v7795_v20  ;;  %v7952_v19 = vld [vmem:[#allocation8 + $0x358] sm:$0xf0]  ;;  %v7943_v20 = vor.u32 %v10030_v11, %v7942_v10  ;;  %v10074_v10 = vld [vmem:[#allocation8 + $0x4ac] sm:$0xf0]  ;;  %v8143_v11 = vor.u32 %v10079_v3, %v8142_v2  ;;  %v10059_v2 = vld [vmem:[#allocation8 + $0x434] sm:$0xf0] }
 0x254   : > { %v10057_v3 = vld [vmem:[#allocation8 + $0x42c] sm:$0xf] }
 0x255   : > { %2504 = vmatmul.bf16.vlgmr.msrb.gmra.mxu3 %v2334_v33  ;;  %2517 = vmatmul.bf16.vlgmr.msra.gmra.mxu0 %v2334_v33 }
 0x256   : > { %2755 = vmatpush.bf16.msra.mxu3 %v8023_v21  ;;  %2768 = vmatpush.bf16.msrb.mxu0 %v8027_v22  ;;  %v7947_v21 = vor.u32 %v10028_v14, %v7944_v15  ;;  %v7926_v22 = vld [vmem:[#allocation8 + $0x320] sm:$0xf]  ;;  %v8120_v14 = vld [vmem:[#allocation8 + $0x4b0] sm:$0xf0]  ;;  %v8126_v15 = vld [vmem:[#allocation8 + $0x4a8] sm:$0xf] }
 0x257   : > { %2781 = vmatpush.bf16.msrb.mxu1 %v8031_v25  ;;  %2794 = vmatpush.bf16.msrb.mxu2 %v8035_v26  ;;  %v7955_v25 = vor.u32 %v10029_v18, %v7952_v19  ;;  %v10024_v26 = vld [vmem:[#allocation8 + $0x324] sm:$0xf]  ;;  %v8128_v18 = vld [vmem:[#allocation8 + $0x4b8] sm:$0xf0] }
 0x258   : > { %2530 = vmatmul.bf16.vlgmr.msra.gmra.mxu1 %v2334_v33  ;;  %2543 = vmatmul.bf16.vlgmr.msra.gmra.mxu2 %v2334_v33  ;;  %v7927_v33 = vor.u32 %v10026_v23, %v7926_v22  ;;  %v10070_v22 = vld [vmem:[#allocation8 + $0x48c] sm:$0xf0]  ;;  %v8127_v23 = vor.u32 %v10075_v16, %v8126_v15  ;;  %v10053_v15 = vld [vmem:[#allocation8 + $0x40c] sm:$0xf]  ;;  %v8048_v16 = vld [vmem:[#allocation8 + $0x418] sm:$0xf0] }
 0x25a   : > { %2756 = vmatpush.bf16.msra.mxu3 %v8007_v34  ;;  %2769 = vmatpush.bf16.msrb.mxu0 %v8011_v36  ;;  %v7931_v34 = vor.u32 %v10024_v26, %v7928_v27  ;;  %v10022_v36 = vld [vmem:[#allocation8 + $0x30c] sm:$0xf0]  ;;  %v8104_v26 = vld [vmem:[#allocation8 + $0x490] sm:$0xf0]  ;;  %v8110_v27 = vld [vmem:[#allocation8 + $0x488] sm:$0xf] }
 0x25b   : > { %2782 = vmatpush.bf16.msrb.mxu1 %v8015_v39  ;;  %2795 = vmatpush.bf16.msrb.mxu2 %v8019_v40  ;;  %v7935_v39 = vor.u32 %v10027_v29, %v7934_v28  ;;  %v7939_v40 = vor.u32 %v10025_v30, %v7936_v31  ;;  %v7911_v51 = vor.u32 %v10022_v36, %v7910_v32  ;;  %v10071_v28 = vld [vmem:[#allocation8 + $0x494] sm:$0xf0]  ;;  %v10069_v29 = vld [vmem:[#allocation8 + $0x48c] sm:$0xf]  ;;  %v8112_v30 = vld [vmem:[#allocation8 + $0x498] sm:$0xf0] }
 0x25c   : > { %v8111_v36 = vor.u32 %v10071_v28, %v8110_v27  ;;  %v8051_v28 = vor.u32 %v10053_v15, %v8048_v16  ;;  %v8224_v15 = vld [vmem:[#allocation8 + $0x578] sm:$0xf0] }
 0x25e   : > { %2757 = vmatpush.bf16.msra.mxu3 %v7991_v47  ;;  %2770 = vmatpush.bf16.msrb.mxu0 %v7995_v48  ;;  %v10080_v47 = vld [vmem:[#allocation8 + $0x4e4] sm:$0xf]  ;;  %v8152_v48 = vld [vmem:[#allocation8 + $0x4f0] sm:$0xf0] }
 0x25f   : > { %2783 = vmatpush.bf16.msrb.mxu1 %v7999_v52  ;;  %2796 = vmatpush.bf16.msrb.mxu2 %v8003_v53  ;;  %v7915_v52 = vor.u32 %v10020_v37, %v7912_v38  ;;  %v10083_v53 = vld [vmem:[#allocation8 + $0x4f4] sm:$0xf0]  ;;  %v8155_v59 = vor.u32 %v10080_v47, %v8152_v48  ;;  %v8115_v37 = vor.u32 %v10069_v29, %v8112_v30  ;;  %v10064_v38 = vld [vmem:[#allocation8 + $0x464] sm:$0xf]  ;;  %v10062_v47 = vld [vmem:[#allocation8 + $0x44c] sm:$0xf0] }
 0x260   : > { %v8159_v62 = vor.u32 %v10083_v53, %v8158_v50  ;;  %v8099_v50 = vor.u32 %v10065_v42, %v8096_v43  ;;  %v8078_v53 = vld [vmem:[#allocation8 + $0x448] sm:$0xf]  ;;  %v2852_v42 = vrot.slane %v10946_v49, 2 }
 0x262   : > { %2758 = vmatpush.bf16.msra.mxu3 %v7975_v60  ;;  %2771 = vmatpush.bf16.msrb.mxu0 %v7979_v61  ;;  %v8134_v60 = vld [vmem:[#allocation8 + $0x4c0] sm:$0xf]  ;;  %v10078_v61 = vld [vmem:[#allocation8 + $0x4cc] sm:$0xf0] }
 0x263   : > { %2784 = vmatpush.bf16.msrb.mxu1 %v7983_v0  ;;  %2797 = vmatpush.bf16.msrb.mxu2 %v7987_v1  ;;  %v10076_v0 = vld [vmem:[#allocation8 + $0x4c4] sm:$0xf]  ;;  %v8136_v1 = vld [vmem:[#allocation8 + $0x4d0] sm:$0xf0]  ;;  %v8135_v7 = vor.u32 %v10078_v61, %v8134_v60  ;;  %v10058_v60 = vld [vmem:[#allocation8 + $0x42c] sm:$0xf0]  ;;  %v8079_v61 = vor.u32 %v10063_v54, %v8078_v53 }
 0x264   : > { %v10107_v53 = vld [vmem:[#allocation8 + $0x5b4] sm:$0xf0]  ;;  %v10105_v54 = vld [vmem:[#allocation8 + $0x5ac] sm:$0xf] }
 0x266   : > { %2759 = vmatpush.bf16.msra.mxu3 %v7959_v8  ;;  %2772 = vmatpush.bf16.msrb.mxu0 %v7963_v9  ;;  %v8139_v8 = vor.u32 %v10076_v0, %v8136_v1  ;;  %v8118_v9 = vld [vmem:[#allocation8 + $0x4a0] sm:$0xf]  ;;  %v8056_v0 = vld [vmem:[#allocation8 + $0x430] sm:$0xf0]  ;;  %v8062_v1 = vld [vmem:[#allocation8 + $0x428] sm:$0xf] }
 0x267   : > { %2785 = vmatpush.bf16.msrb.mxu1 %v7967_v12  ;;  %2798 = vmatpush.bf16.msrb.mxu2 %v7971_v13  ;;  %v8147_v12 = vor.u32 %v10077_v4, %v8144_v5  ;;  %v10072_v13 = vld [vmem:[#allocation8 + $0x4a4] sm:$0xf]  ;;  %v8119_v19 = vor.u32 %v10074_v10, %v8118_v9  ;;  %v8064_v4 = vld [vmem:[#allocation8 + $0x438] sm:$0xf0]  ;;  %v8038_v5 = vld [vmem:[#allocation8 + $0x400] sm:$0xf] }
 0x268   : > { %v10052_v9 = vld [vmem:[#allocation8 + $0x404] sm:$0xf]  ;;  %v8040_v10 = vld [vmem:[#allocation8 + $0x410] sm:$0xf0] }
 0x26a   : > { %2760 = vmatpush.bf16.msra.mxu3 %v7943_v20  ;;  %2773 = vmatpush.bf16.msrb.mxu0 %v7947_v21  ;;  %v8123_v20 = vor.u32 %v10072_v13, %v8120_v14  ;;  %v8102_v21 = vld [vmem:[#allocation8 + $0x480] sm:$0xf]  ;;  %v8046_v13 = vld [vmem:[#allocation8 + $0x408] sm:$0xf]  ;;  %v10055_v14 = vld [vmem:[#allocation8 + $0x414] sm:$0xf0] }
 0x26b   : > { %2786 = vmatpush.bf16.msrb.mxu1 %v7951_v24  ;;  %2799 = vmatpush.bf16.msrb.mxu2 %v7955_v25  ;;  %v8131_v24 = vor.u32 %v10073_v17, %v8128_v18  ;;  %v10068_v25 = vld [vmem:[#allocation8 + $0x484] sm:$0xf]  ;;  %v8103_v31 = vor.u32 %v10070_v22, %v8102_v21  ;;  %v8278_v17 = vld [vmem:[#allocation8 + $0x5e0] sm:$0xf]  ;;  %v10114_v18 = vld [vmem:[#allocation8 + $0x5ec] sm:$0xf0]  ;;  %v8047_v27 = vor.u32 %v10055_v14, %v8046_v13 }
 0x26c   : > { %v8107_v32 = vor.u32 %v10068_v25, %v8104_v26  ;;  %v8286_v21 = vld [vmem:[#allocation8 + $0x5e8] sm:$0xf]  ;;  %v10113_v25 = vld [vmem:[#allocation8 + $0x5ec] sm:$0xf]  ;;  %v8288_v26 = vld [vmem:[#allocation8 + $0x5f8] sm:$0xf0]  ;;  %v8279_v29 = vor.u32 %v10114_v18, %v8278_v17 }
 0x26d   : > { %v10099_v13 = vld [vmem:[#allocation8 + $0x574] sm:$0xf0]  ;;  %v10097_v14 = vld [vmem:[#allocation8 + $0x56c] sm:$0xf]  ;;  %v8198_v18 = vld [vmem:[#allocation8 + $0x540] sm:$0xf] }
 0x26e   : > { %2761 = vmatpush.bf16.msra.mxu3 %v7927_v33  ;;  %2774 = vmatpush.bf16.msrb.mxu0 %v7931_v34  ;;  %v8086_v33 = vld [vmem:[#allocation8 + $0x460] sm:$0xf]  ;;  %v10066_v34 = vld [vmem:[#allocation8 + $0x46c] sm:$0xf0] }
 0x26f   : > { %2787 = vmatpush.bf16.msrb.mxu1 %v7935_v39  ;;  %2800 = vmatpush.bf16.msrb.mxu2 %v7939_v40  ;;  %v8088_v39 = vld [vmem:[#allocation8 + $0x470] sm:$0xf0]  ;;  %v8094_v40 = vld [vmem:[#allocation8 + $0x468] sm:$0xf]  ;;  %v8087_v44 = vor.u32 %v10066_v34, %v8086_v33  ;;  %v8291_v34 = vor.u32 %v10113_v25, %v8288_v26  ;;  %v10095_v25 = vld [vmem:[#allocation8 + $0x554] sm:$0xf0] }
 0x270   : > { %v8091_v45 = vor.u32 %v10064_v38, %v8088_v39  ;;  %v8095_v48 = vor.u32 %v10067_v41, %v8094_v40  ;;  %v8270_v38 = vld [vmem:[#allocation8 + $0x5c8] sm:$0xf]  ;;  %v10111_v39 = vld [vmem:[#allocation8 + $0x5d4] sm:$0xf0]  ;;  %v10109_v40 = vld [vmem:[#allocation8 + $0x5cc] sm:$0xf] }
 0x271   : > { %v8272_v41 = vld [vmem:[#allocation8 + $0x5d8] sm:$0xf0]  ;;  %v10093_v26 = vld [vmem:[#allocation8 + $0x54c] sm:$0xf] }
 0x272   : > { %2762 = vmatpush.bf16.msra.mxu3 %v7911_v51  ;;  %2775 = vmatpush.bf16.msrb.mxu0 %v7915_v52  ;;  %v10060_v51 = vld [vmem:[#allocation8 + $0x444] sm:$0xf]  ;;  %v8072_v52 = vld [vmem:[#allocation8 + $0x450] sm:$0xf0] }
 0x273   : > { %2788 = vmatpush.bf16.msrb.mxu1 %v7919_v56  ;;  %2801 = vmatpush.bf16.msrb.mxu2 %v7923_v57  ;;  %v8080_v56 = vld [vmem:[#allocation8 + $0x458] sm:$0xf0]  ;;  %v8071_v57 = vor.u32 %v10062_v47, %v8070_v46  ;;  %v10106_v46 = vld [vmem:[#allocation8 + $0x5ac] sm:$0xf0]  ;;  %v8271_v47 = vor.u32 %v10111_v39, %v8270_v38  ;;  %v10091_v38 = vld [vmem:[#allocation8 + $0x534] sm:$0xf0] }
 0x274   : > { %v10089_v39 = vld [vmem:[#allocation8 + $0x52c] sm:$0xf] }
 0x275   : > { %2763 = vmatmul.bf16.vlgmr.msra.gmra.mxu3 %v2593_v6  ;;  %2776 = vmatmul.bf16.vlgmr.msrb.gmra.mxu0 %v2593_v6 }
 0x276   : > { %3014 = vmatpush.bf16.msrb.mxu3 %v8151_v58  ;;  %3027 = vmatpush.bf16.msra.mxu0 %v8155_v59  ;;  %v8075_v58 = vor.u32 %v10060_v51, %v8072_v52  ;;  %v8054_v59 = vld [vmem:[#allocation8 + $0x420] sm:$0xf]  ;;  %v8248_v51 = vld [vmem:[#allocation8 + $0x5b0] sm:$0xf0]  ;;  %v8254_v52 = vld [vmem:[#allocation8 + $0x5a8] sm:$0xf] }
 0x277   : > { %3040 = vmatpush.bf16.msra.mxu1 %v8159_v62  ;;  %3053 = vmatpush.bf16.msra.mxu2 %v8163_v63  ;;  %v8083_v62 = vor.u32 %v10061_v55, %v8080_v56  ;;  %v10056_v63 = vld [vmem:[#allocation8 + $0x424] sm:$0xf]  ;;  %v8256_v55 = vld [vmem:[#allocation8 + $0x5b8] sm:$0xf0] }
 0x278   : > { %2789 = vmatmul.bf16.vlgmr.msrb.gmra.mxu1 %v2593_v6  ;;  %2802 = vmatmul.bf16.vlgmr.msrb.gmra.mxu2 %v2593_v6  ;;  %v8055_v6 = vor.u32 %v10058_v60, %v8054_v59  ;;  %v10102_v59 = vld [vmem:[#allocation8 + $0x58c] sm:$0xf0]  ;;  %v8255_v60 = vor.u32 %v10107_v53, %v8254_v52  ;;  %v10085_v52 = vld [vmem:[#allocation8 + $0x50c] sm:$0xf]  ;;  %v8176_v53 = vld [vmem:[#allocation8 + $0x518] sm:$0xf0] }
 0x27a   : > { %3015 = vmatpush.bf16.msrb.mxu3 %v8135_v7  ;;  %3028 = vmatpush.bf16.msra.mxu0 %v8139_v8  ;;  %v8059_v7 = vor.u32 %v10056_v63, %v8056_v0  ;;  %v10054_v8 = vld [vmem:[#allocation8 + $0x40c] sm:$0xf0]  ;;  %v8232_v63 = vld [vmem:[#allocation8 + $0x590] sm:$0xf0]  ;;  %v8238_v0 = vld [vmem:[#allocation8 + $0x588] sm:$0xf] }
 0x27b   : > { %3041 = vmatpush.bf16.msra.mxu1 %v8143_v11  ;;  %3054 = vmatpush.bf16.msra.mxu2 %v8147_v12  ;;  %v8063_v11 = vor.u32 %v10059_v2, %v8062_v1  ;;  %v8067_v12 = vor.u32 %v10057_v3, %v8064_v4  ;;  %v8039_v22 = vor.u32 %v10054_v8, %v8038_v5  ;;  %v10103_v1 = vld [vmem:[#allocation8 + $0x594] sm:$0xf0]  ;;  %v10101_v2 = vld [vmem:[#allocation8 + $0x58c] sm:$0xf]  ;;  %v8240_v3 = vld [vmem:[#allocation8 + $0x598] sm:$0xf0] }
 0x27c   : > { %v8239_v8 = vor.u32 %v10103_v1, %v8238_v0  ;;  %v8179_v1 = vor.u32 %v10085_v52, %v8176_v53  ;;  %v8344_v52 = vld [vmem:[#allocation8 + $0x670] sm:$0xf0]  ;;  %v8350_v53 = vld [vmem:[#allocation8 + $0x668] sm:$0xf] }
 0x27e   : > { %3016 = vmatpush.bf16.msrb.mxu3 %v8119_v19  ;;  %3029 = vmatpush.bf16.msra.mxu0 %v8123_v20  ;;  %v10112_v19 = vld [vmem:[#allocation8 + $0x5e4] sm:$0xf]  ;;  %v8280_v20 = vld [vmem:[#allocation8 + $0x5f0] sm:$0xf0] }
 0x27f   : > { %3042 = vmatpush.bf16.msra.mxu1 %v8127_v23  ;;  %3055 = vmatpush.bf16.msra.mxu2 %v8131_v24  ;;  %v8043_v23 = vor.u32 %v10052_v9, %v8040_v10  ;;  %v10115_v24 = vld [vmem:[#allocation8 + $0x5f4] sm:$0xf0]  ;;  %v8283_v30 = vor.u32 %v10112_v19, %v8280_v20  ;;  %v8243_v9 = vor.u32 %v10101_v2, %v8240_v3  ;;  %v10096_v10 = vld [vmem:[#allocation8 + $0x564] sm:$0xf]  ;;  %v10094_v19 = vld [vmem:[#allocation8 + $0x54c] sm:$0xf0] }
 0x280   : > { %v8287_v33 = vor.u32 %v10115_v24, %v8286_v21  ;;  %v8227_v21 = vor.u32 %v10097_v14, %v8224_v15  ;;  %v8206_v24 = vld [vmem:[#allocation8 + $0x548] sm:$0xf]  ;;  %v3111_v14 = vrot.slane %v10953_v35, 2 }
 0x282   : > { %3017 = vmatpush.bf16.msrb.mxu3 %v8103_v31  ;;  %3030 = vmatpush.bf16.msra.mxu0 %v8107_v32  ;;  %v8262_v31 = vld [vmem:[#allocation8 + $0x5c0] sm:$0xf]  ;;  %v10110_v32 = vld [vmem:[#allocation8 + $0x5cc] sm:$0xf0] }
 0x283   : > { %3043 = vmatpush.bf16.msra.mxu1 %v8111_v36  ;;  %3056 = vmatpush.bf16.msra.mxu2 %v8115_v37  ;;  %v10108_v36 = vld [vmem:[#allocation8 + $0x5c4] sm:$0xf]  ;;  %v8264_v37 = vld [vmem:[#allocation8 + $0x5d0] sm:$0xf0]  ;;  %v8263_v43 = vor.u32 %v10110_v32, %v8262_v31  ;;  %v10090_v31 = vld [vmem:[#allocation8 + $0x52c] sm:$0xf0]  ;;  %v8207_v32 = vor.u32 %v10095_v25, %v8206_v24 }
 0x284   : > { %v10139_v24 = vld [vmem:[#allocation8 + $0x6b4] sm:$0xf0]  ;;  %v10137_v25 = vld [vmem:[#allocation8 + $0x6ac] sm:$0xf] }
 0x286   : > { %3018 = vmatpush.bf16.msrb.mxu3 %v8087_v44  ;;  %3031 = vmatpush.bf16.msra.mxu0 %v8091_v45  ;;  %v8267_v44 = vor.u32 %v10108_v36, %v8264_v37  ;;  %v8246_v45 = vld [vmem:[#allocation8 + $0x5a0] sm:$0xf]  ;;  %v8184_v36 = vld [vmem:[#allocation8 + $0x530] sm:$0xf0]  ;;  %v8190_v37 = vld [vmem:[#allocation8 + $0x528] sm:$0xf] }
 0x287   : > { %3044 = vmatpush.bf16.msra.mxu1 %v8095_v48  ;;  %3057 = vmatpush.bf16.msra.mxu2 %v8099_v50  ;;  %v8275_v48 = vor.u32 %v10109_v40, %v8272_v41  ;;  %v10104_v50 = vld [vmem:[#allocation8 + $0x5a4] sm:$0xf]  ;;  %v8247_v56 = vor.u32 %v10106_v46, %v8246_v45  ;;  %v8192_v40 = vld [vmem:[#allocation8 + $0x538] sm:$0xf0]  ;;  %v8166_v41 = vld [vmem:[#allocation8 + $0x500] sm:$0xf] }
 0x288   : > { %v10084_v45 = vld [vmem:[#allocation8 + $0x504] sm:$0xf]  ;;  %v8168_v46 = vld [vmem:[#allocation8 + $0x510] sm:$0xf0] }
 0x28a   : > { %3019 = vmatpush.bf16.msrb.mxu3 %v8071_v57  ;;  %3032 = vmatpush.bf16.msra.mxu0 %v8075_v58  ;;  %v8251_v57 = vor.u32 %v10104_v50, %v8248_v51  ;;  %v8230_v58 = vld [vmem:[#allocation8 + $0x580] sm:$0xf]  ;;  %v8174_v50 = vld [vmem:[#allocation8 + $0x508] sm:$0xf]  ;;  %v10087_v51 = vld [vmem:[#allocation8 + $0x514] sm:$0xf0] }
 0x28b   : > { %3045 = vmatpush.bf16.msra.mxu1 %v8079_v61  ;;  %3058 = vmatpush.bf16.msra.mxu2 %v8083_v62  ;;  %v8259_v61 = vor.u32 %v10105_v54, %v8256_v55  ;;  %v10100_v62 = vld [vmem:[#allocation8 + $0x584] sm:$0xf]  ;;  %v8231_v4 = vor.u32 %v10102_v59, %v8230_v58  ;;  %v8406_v54 = vld [vmem:[#allocation8 + $0x6e0] sm:$0xf]  ;;  %v10146_v55 = vld [vmem:[#allocation8 + $0x6ec] sm:$0xf0]  ;;  %v8175_v0 = vor.u32 %v10087_v51, %v8174_v50 }
 0x28c   : > { %v8235_v5 = vor.u32 %v10100_v62, %v8232_v63  ;;  %v8414_v58 = vld [vmem:[#allocation8 + $0x6e8] sm:$0xf]  ;;  %v10145_v62 = vld [vmem:[#allocation8 + $0x6ec] sm:$0xf]  ;;  %v8416_v63 = vld [vmem:[#allocation8 + $0x6f8] sm:$0xf0]  ;;  %v8407_v2 = vor.u32 %v10146_v55, %v8406_v54 }
 0x28d   : > { %v10128_v51 = vld [vmem:[#allocation8 + $0x664] sm:$0xf] }
 0x28e   : > { %3020 = vmatpush.bf16.msrb.mxu3 %v8055_v6  ;;  %3033 = vmatpush.bf16.msra.mxu0 %v8059_v7  ;;  %v8214_v6 = vld [vmem:[#allocation8 + $0x560] sm:$0xf]  ;;  %v10098_v7 = vld [vmem:[#allocation8 + $0x56c] sm:$0xf0] }
 0x28f   : > { %3046 = vmatpush.bf16.msra.mxu1 %v8063_v11  ;;  %3059 = vmatpush.bf16.msra.mxu2 %v8067_v12  ;;  %v8216_v11 = vld [vmem:[#allocation8 + $0x570] sm:$0xf0]  ;;  %v8222_v12 = vld [vmem:[#allocation8 + $0x568] sm:$0xf]  ;;  %v8215_v16 = vor.u32 %v10098_v7, %v8214_v6  ;;  %v8419_v7 = vor.u32 %v10145_v62, %v8416_v63  ;;  %v8347_v63 = vor.u32 %v10128_v51, %v8344_v52  ;;  %v10177_v52 = vld [vmem:[#allocation8 + $0x7ec] sm:$0xf] }
 0x290   : > { %v8219_v17 = vor.u32 %v10096_v10, %v8216_v11  ;;  %v8223_v20 = vor.u32 %v10099_v13, %v8222_v12  ;;  %v8398_v10 = vld [vmem:[#allocation8 + $0x6c8] sm:$0xf]  ;;  %v10143_v11 = vld [vmem:[#allocation8 + $0x6d4] sm:$0xf0]  ;;  %v10141_v12 = vld [vmem:[#allocation8 + $0x6cc] sm:$0xf] }
 0x291   : > { %v8400_v13 = vld [vmem:[#allocation8 + $0x6d8] sm:$0xf0] }
 0x292   : > { %3021 = vmatpush.bf16.msrb.mxu3 %v8039_v22  ;;  %3034 = vmatpush.bf16.msra.mxu0 %v8043_v23  ;;  %v10092_v22 = vld [vmem:[#allocation8 + $0x544] sm:$0xf]  ;;  %v8200_v23 = vld [vmem:[#allocation8 + $0x550] sm:$0xf0] }
 0x293   : > { %3047 = vmatpush.bf16.msra.mxu1 %v8047_v27  ;;  %3060 = vmatpush.bf16.msra.mxu2 %v8051_v28  ;;  %v8208_v27 = vld [vmem:[#allocation8 + $0x558] sm:$0xf0]  ;;  %v8199_v28 = vor.u32 %v10094_v19, %v8198_v18  ;;  %v10138_v18 = vld [vmem:[#allocation8 + $0x6ac] sm:$0xf0]  ;;  %v8399_v19 = vor.u32 %v10143_v11, %v8398_v10  ;;  %v10127_v10 = vld [vmem:[#allocation8 + $0x654] sm:$0xf0] }
 0x294   : > { %v10125_v11 = vld [vmem:[#allocation8 + $0x64c] sm:$0xf] }
 0x295   : > { %3022 = vmatmul.bf16.vlgmr.msrb.gmra.mxu3 %v2852_v42  ;;  %3035 = vmatmul.bf16.vlgmr.msra.gmra.mxu0 %v2852_v42 }
 0x296   : > { %3273 = vmatpush.bf16.msra.mxu3 %v8279_v29  ;;  %3286 = vmatpush.bf16.msrb.mxu0 %v8283_v30  ;;  %v8203_v29 = vor.u32 %v10092_v22, %v8200_v23  ;;  %v8182_v30 = vld [vmem:[#allocation8 + $0x520] sm:$0xf]  ;;  %v8376_v22 = vld [vmem:[#allocation8 + $0x6b0] sm:$0xf0]  ;;  %v8382_v23 = vld [vmem:[#allocation8 + $0x6a8] sm:$0xf] }
 0x297   : > { %3299 = vmatpush.bf16.msrb.mxu1 %v8287_v33  ;;  %3312 = vmatpush.bf16.msrb.mxu2 %v8291_v34  ;;  %v8211_v33 = vor.u32 %v10093_v26, %v8208_v27  ;;  %v10088_v34 = vld [vmem:[#allocation8 + $0x524] sm:$0xf]  ;;  %v8384_v26 = vld [vmem:[#allocation8 + $0x6b8] sm:$0xf0] }
 0x298   : > { %3048 = vmatmul.bf16.vlgmr.msra.gmra.mxu1 %v2852_v42  ;;  %3061 = vmatmul.bf16.vlgmr.msra.gmra.mxu2 %v2852_v42  ;;  %v8183_v42 = vor.u32 %v10090_v31, %v8182_v30  ;;  %v8358_v31 = vld [vmem:[#allocation8 + $0x680] sm:$0xf] }
 0x29a   : > { %3274 = vmatpush.bf16.msra.mxu3 %v8263_v43  ;;  %3287 = vmatpush.bf16.msrb.mxu0 %v8267_v44  ;;  %v8187_v43 = vor.u32 %v10088_v34, %v8184_v36  ;;  %v10086_v44 = vld [vmem:[#allocation8 + $0x50c] sm:$0xf0]  ;;  %v8387_v34 = vor.u32 %v10137_v25, %v8384_v26  ;;  %v10132_v36 = vld [vmem:[#allocation8 + $0x684] sm:$0xf]  ;;  %v10121_v25 = vld [vmem:[#allocation8 + $0x62c] sm:$0xf] }
 0x29b   : > { %3300 = vmatpush.bf16.msrb.mxu1 %v8271_v47  ;;  %3313 = vmatpush.bf16.msrb.mxu2 %v8275_v48  ;;  %v8191_v47 = vor.u32 %v10091_v38, %v8190_v37  ;;  %v8195_v48 = vor.u32 %v10089_v39, %v8192_v40  ;;  %v8167_v59 = vor.u32 %v10086_v44, %v8166_v41  ;;  %v8360_v37 = vld [vmem:[#allocation8 + $0x690] sm:$0xf0]  ;;  %v8366_v38 = vld [vmem:[#allocation8 + $0x688] sm:$0xf]  ;;  %v10135_v39 = vld [vmem:[#allocation8 + $0x694] sm:$0xf0] }
 0x29c   : > { %v10133_v40 = vld [vmem:[#allocation8 + $0x68c] sm:$0xf]  ;;  %v8368_v41 = vld [vmem:[#allocation8 + $0x698] sm:$0xf0]  ;;  %v8363_v44 = vor.u32 %v10132_v36, %v8360_v37  ;;  %v8302_v36 = vld [vmem:[#allocation8 + $0x608] sm:$0xf] }
 0x29d   : > { %v8320_v26 = vld [vmem:[#allocation8 + $0x638] sm:$0xf0] }
 0x29e   : > { %3275 = vmatpush.bf16.msra.mxu3 %v8247_v56  ;;  %3288 = vmatpush.bf16.msrb.mxu0 %v8251_v57  ;;  %v10144_v56 = vld [vmem:[#allocation8 + $0x6e4] sm:$0xf]  ;;  %v8408_v57 = vld [vmem:[#allocation8 + $0x6f0] sm:$0xf0] }
 0x29f   : > { %3301 = vmatpush.bf16.msrb.mxu1 %v8255_v60  ;;  %3314 = vmatpush.bf16.msrb.mxu2 %v8259_v61  ;;  %v8171_v60 = vor.u32 %v10084_v45, %v8168_v46  ;;  %v10147_v61 = vld [vmem:[#allocation8 + $0x6f4] sm:$0xf0]  ;;  %v8411_v3 = vor.u32 %v10144_v56, %v8408_v57  ;;  %v8342_v45 = vld [vmem:[#allocation8 + $0x660] sm:$0xf]  ;;  %v10130_v46 = vld [vmem:[#allocation8 + $0x66c] sm:$0xf0] }
 0x2a0   : > { %v8415_v6 = vor.u32 %v10147_v61, %v8414_v58  ;;  %v10131_v56 = vld [vmem:[#allocation8 + $0x674] sm:$0xf0]  ;;  %v10129_v57 = vld [vmem:[#allocation8 + $0x66c] sm:$0xf]  ;;  %v8352_v58 = vld [vmem:[#allocation8 + $0x678] sm:$0xf0]  ;;  %v8343_v62 = vor.u32 %v10130_v46, %v8342_v45 }
 0x2a1   : > { %v8536_v45 = vld [vmem:[#allocation8 + $0x7f0] sm:$0xf0]  ;;  %v8542_v46 = vld [vmem:[#allocation8 + $0x7e8] sm:$0xf] }
 0x2a2   : > { %3276 = vmatpush.bf16.msra.mxu3 %v8231_v4  ;;  %3289 = vmatpush.bf16.msrb.mxu0 %v8235_v5  ;;  %v8390_v4 = vld [vmem:[#allocation8 + $0x6c0] sm:$0xf]  ;;  %v10142_v5 = vld [vmem:[#allocation8 + $0x6cc] sm:$0xf0] }
 0x2a3   : > { %3302 = vmatpush.bf16.msrb.mxu1 %v8239_v8  ;;  %3315 = vmatpush.bf16.msrb.mxu2 %v8243_v9  ;;  %v10140_v8 = vld [vmem:[#allocation8 + $0x6c4] sm:$0xf]  ;;  %v8392_v9 = vld [vmem:[#allocation8 + $0x6d0] sm:$0xf0]  ;;  %v8391_v15 = vor.u32 %v10142_v5, %v8390_v4  ;;  %v8351_v4 = vor.u32 %v10131_v56, %v8350_v53  ;;  %v8355_v5 = vor.u32 %v10129_v57, %v8352_v58  ;;  %v8544_v53 = vld [vmem:[#allocation8 + $0x7f8] sm:$0xf0] }
 0x2a6   : > { %3277 = vmatpush.bf16.msra.mxu3 %v8215_v16  ;;  %3290 = vmatpush.bf16.msrb.mxu0 %v8219_v17  ;;  %v8395_v16 = vor.u32 %v10140_v8, %v8392_v9  ;;  %v8374_v17 = vld [vmem:[#allocation8 + $0x6a0] sm:$0xf]  ;;  %v8334_v8 = vld [vmem:[#allocation8 + $0x648] sm:$0xf] }
 0x2a7   : > { %3303 = vmatpush.bf16.msrb.mxu1 %v8223_v20  ;;  %3316 = vmatpush.bf16.msrb.mxu2 %v8227_v21  ;;  %v8403_v20 = vor.u32 %v10141_v12, %v8400_v13  ;;  %v10136_v21 = vld [vmem:[#allocation8 + $0x6a4] sm:$0xf]  ;;  %v8336_v12 = vld [vmem:[#allocation8 + $0x658] sm:$0xf0] }
 0x2aa   : > { %3278 = vmatpush.bf16.msra.mxu3 %v8199_v28  ;;  %3291 = vmatpush.bf16.msrb.mxu0 %v8203_v29  ;;  %v8375_v28 = vor.u32 %v10138_v18, %v8374_v17  ;;  %v8379_v29 = vor.u32 %v10136_v21, %v8376_v22  ;;  %v8335_v17 = vor.u32 %v10127_v10, %v8334_v8  ;;  %v8312_v21 = vld [vmem:[#allocation8 + $0x630] sm:$0xf0]  ;;  %v8318_v22 = vld [vmem:[#allocation8 + $0x628] sm:$0xf]  ;;  %v10175_v10 = vld [vmem:[#allocation8 + $0x7d4] sm:$0xf0] }
 0x2ab   : > { %3304 = vmatpush.bf16.msrb.mxu1 %v8207_v32  ;;  %3317 = vmatpush.bf16.msrb.mxu2 %v8211_v33  ;;  %v10134_v32 = vld [vmem:[#allocation8 + $0x68c] sm:$0xf0]  ;;  %v8383_v33 = vor.u32 %v10139_v24, %v8382_v23  ;;  %v8339_v18 = vor.u32 %v10125_v11, %v8336_v12  ;;  %v10123_v24 = vld [vmem:[#allocation8 + $0x634] sm:$0xf0]  ;;  %v10173_v11 = vld [vmem:[#allocation8 + $0x7cc] sm:$0xf] }
 0x2ac   : > { %v8319_v37 = vor.u32 %v10123_v24, %v8318_v22  ;;  %v8528_v12 = vld [vmem:[#allocation8 + $0x7d8] sm:$0xf0]  ;;  %v8504_v24 = vld [vmem:[#allocation8 + $0x7b0] sm:$0xf0] }
 0x2ae   : > { %3279 = vmatpush.bf16.msra.mxu3 %v8183_v42  ;;  %3292 = vmatpush.bf16.msrb.mxu0 %v8187_v43  ;;  %v8359_v43 = vor.u32 %v10134_v32, %v8358_v31 }
 0x2af   : > { %3305 = vmatpush.bf16.msrb.mxu1 %v8191_v47  ;;  %3318 = vmatpush.bf16.msrb.mxu2 %v8195_v48  ;;  %v8367_v47 = vor.u32 %v10135_v39, %v8366_v38  ;;  %v8371_v48 = vor.u32 %v10133_v40, %v8368_v41  ;;  %v8323_v38 = vor.u32 %v10121_v25, %v8320_v26  ;;  %v10119_v39 = vld [vmem:[#allocation8 + $0x614] sm:$0xf0]  ;;  %v10117_v40 = vld [vmem:[#allocation8 + $0x60c] sm:$0xf]  ;;  %v8304_v41 = vld [vmem:[#allocation8 + $0x618] sm:$0xf0] }
 0x2b0   : > { %v8307_v56 = vor.u32 %v10117_v40, %v8304_v41  ;;  %v8510_v25 = vld [vmem:[#allocation8 + $0x7a8] sm:$0xf]  ;;  %v10171_v26 = vld [vmem:[#allocation8 + $0x7b4] sm:$0xf0]  ;;  %v10165_v41 = vld [vmem:[#allocation8 + $0x78c] sm:$0xf] }
 0x2b1   : > { %v1994_v27 = vpop.f32.mrf.mxu0  ;;  %v10167_v40 = vld [vmem:[#allocation8 + $0x794] sm:$0xf0] }
 0x2b2   : > { %3280 = vmatpush.bf16.msra.mxu3 %v8167_v59  ;;  %3293 = vmatpush.bf16.msrb.mxu0 %v8171_v60  ;;  %v2007_v30 = vpop.f32.mrf.mxu1  ;;  %v2028_v42 = vrot.slane %v1994_v27, 7 }
 0x2b3   : > { %3306 = vmatpush.bf16.msrb.mxu1 %v8175_v0  ;;  %3319 = vmatpush.bf16.msrb.mxu2 %v8179_v1  ;;  %v2029_v59 = vrot.slane %v2007_v30, 6  ;;  %v8326_v1 = vld [vmem:[#allocation8 + $0x640] sm:$0xf] }
 0x2b5   : > { %3281 = vmatmul.bf16.vlgmr.msra.gmra.mxu3 %v3111_v14  ;;  %3294 = vmatmul.bf16.vlgmr.msrb.gmra.mxu0 %v3111_v14 }
 0x2b6   : > { %3532 = vmatpush.bf16.msrb.mxu3 %v8407_v2  ;;  %3545 = vmatpush.bf16.msra.mxu0 %v8411_v3  ;;  %v10126_v2 = vld [vmem:[#allocation8 + $0x64c] sm:$0xf0] }
 0x2b7   : > { %3558 = vmatpush.bf16.msra.mxu1 %v8415_v6  ;;  %3571 = vmatpush.bf16.msra.mxu2 %v8419_v7  ;;  %v1981_v50 = vpop.f32.mrf.mxu3  ;;  %v10124_v6 = vld [vmem:[#allocation8 + $0x644] sm:$0xf]  ;;  %v8328_v7 = vld [vmem:[#allocation8 + $0x650] sm:$0xf0]  ;;  %v8327_v13 = vor.u32 %v10126_v2, %v8326_v1 }
 0x2b8   : > { %3307 = vmatmul.bf16.vlgmr.msrb.gmra.mxu1 %v3111_v14  ;;  %3320 = vmatmul.bf16.vlgmr.msrb.gmra.mxu2 %v3111_v14  ;;  %v2032_v54 = vsel %vm2031_vm6, %v1981_v50, %v2028_v42  ;;  %v2020_v55 = vpop.f32.mrf.mxu2  ;;  %v8331_v14 = vor.u32 %v10124_v6, %v8328_v7  ;;  %v8534_v42 = vld [vmem:[#allocation8 + $0x7e0] sm:$0xf]  ;;  %v8520_v6 = vld [vmem:[#allocation8 + $0x7d0] sm:$0xf0]  ;;  %v8526_v7 = vld [vmem:[#allocation8 + $0x7c8] sm:$0xf] }
 0x2b9   : > { %v2030_v60 = vrot.slane %v2020_v55, 5  ;;  %v1996_v61 = vpop.f32.mrf.mxu0  ;;  %v8303_v55 = vor.u32 %v10119_v39, %v8302_v36  ;;  %v8527_v22 = vor.u32 %v10175_v10, %v8526_v7  ;;  %v8494_v39 = vld [vmem:[#allocation8 + $0x788] sm:$0xf]  ;;  %v10159_v7 = vld [vmem:[#allocation8 + $0x754] sm:$0xf0] }
 0x2ba   : > { %3533 = vmatpush.bf16.msrb.mxu3 %v8391_v15  ;;  %3546 = vmatpush.bf16.msra.mxu0 %v8395_v16  ;;  %v2009_v0 = vpop.f32.mrf.mxu1  ;;  %v8310_v15 = vld [vmem:[#allocation8 + $0x620] sm:$0xf]  ;;  %v10122_v16 = vld [vmem:[#allocation8 + $0x62c] sm:$0xf0]  ;;  %v8464_v10 = vld [vmem:[#allocation8 + $0x758] sm:$0xf0] }
 0x2bb   : > { %3559 = vmatpush.bf16.msra.mxu1 %v8399_v19  ;;  %3572 = vmatpush.bf16.msra.mxu2 %v8403_v20  ;;  %v2034_v3 = vsel %vm2033_vm7, %v2029_v59, %v2030_v60  ;;  %v10120_v20 = vld [vmem:[#allocation8 + $0x624] sm:$0xf]  ;;  %v8311_v30 = vor.u32 %v10122_v16, %v8310_v15  ;;  %v3370_v16 = vrot.slane %v10946_v49, 3 }
 0x2bc   : > { %v10966_v9 = vsel %vm2035_vm8, %v2032_v54, %v2034_v3  ;;  %v8315_v31 = vor.u32 %v10120_v20, %v8312_v21  ;;  %v1778_v54 = vld [vmem:[%s11135_s4] sm:$0xf]  ;;  %v10172_v0 = vld [vmem:[#allocation8 + $0x7c4] sm:$0xf]  ;;  %v8547_v3 = vor.u32 %v10177_v52, %v8544_v53  ;;  %v10170_v20 = vld [vmem:[#allocation8 + $0x7ac] sm:$0xf0] }
 0x2bd   : > { %v10160_v52 = vld [vmem:[#allocation8 + $0x764] sm:$0xf]  ;;  %v8472_v53 = vld [vmem:[#allocation8 + $0x770] sm:$0xf0] }
 0x2be   : > { %3534 = vmatpush.bf16.msrb.mxu3 %v8375_v28  ;;  %3547 = vmatpush.bf16.msra.mxu0 %v8379_v29  ;;  %v8294_v28 = vld [vmem:[#allocation8 + $0x600] sm:$0xf]  ;;  %v10118_v29 = vld [vmem:[#allocation8 + $0x60c] sm:$0xf0] }
 0x2bf   : > { %3560 = vmatpush.bf16.msra.mxu1 %v8383_v33  ;;  %3573 = vmatpush.bf16.msra.mxu2 %v8387_v34  ;;  %v1983_v19 = vpop.f32.mrf.mxu3  ;;  %v10116_v33 = vld [vmem:[#allocation8 + $0x604] sm:$0xf]  ;;  %v8296_v34 = vld [vmem:[#allocation8 + $0x610] sm:$0xf0]  ;;  %v8295_v50 = vor.u32 %v10118_v29, %v8294_v28  ;;  %v8512_v28 = vld [vmem:[#allocation8 + $0x7b8] sm:$0xf0] }
 0x2c0   : > { %v2022_v23 = vpop.f32.mrf.mxu2  ;;  %v8299_v51 = vor.u32 %v10116_v33, %v8296_v34  ;;  %v8502_v19 = vld [vmem:[#allocation8 + $0x7a0] sm:$0xf]  ;;  %v10166_v33 = vld [vmem:[#allocation8 + $0x78c] sm:$0xf0]  ;;  %v8511_v34 = vor.u32 %v10171_v26, %v8510_v25  ;;  %v10155_v26 = vld [vmem:[#allocation8 + $0x734] sm:$0xf0] }
 0x2c1   : > { %v2258_v27 = vpop.f32.mrf.mxu0  ;;  %v10168_v23 = vld [vmem:[#allocation8 + $0x7a4] sm:$0xf]  ;;  %v8503_v29 = vor.u32 %v10170_v20, %v8502_v19 }
 0x2c2   : > { %3535 = vmatpush.bf16.msrb.mxu3 %v8359_v43  ;;  %3548 = vmatpush.bf16.msra.mxu0 %v8363_v44  ;;  %v2271_v32 = vpop.f32.mrf.mxu1  ;;  %v10178_v43 = vld [vmem:[#allocation8 + $0x7ec] sm:$0xf0]  ;;  %v10176_v44 = vld [vmem:[#allocation8 + $0x7e4] sm:$0xf] }
 0x2c3   : > { %3561 = vmatpush.bf16.msra.mxu1 %v8367_v47  ;;  %3574 = vmatpush.bf16.msra.mxu2 %v8371_v48  ;;  %v10179_v47 = vld [vmem:[#allocation8 + $0x7f4] sm:$0xf0]  ;;  %v2292_v48 = vrot.slane %v2258_v27, 7  ;;  %v8535_v58 = vor.u32 %v10178_v43, %v8534_v42  ;;  %v8539_v59 = vor.u32 %v10176_v44, %v8536_v45  ;;  %v2293_v1 = vrot.slane %v2271_v32, 6  ;;  %v10169_v27 = vld [vmem:[#allocation8 + $0x7ac] sm:$0xf] }
 0x2c4   : > { %v8543_v2 = vor.u32 %v10179_v47, %v8542_v46  ;;  %v8486_v32 = vld [vmem:[#allocation8 + $0x780] sm:$0xf]  ;;  %v8515_v36 = vor.u32 %v10169_v27, %v8512_v28  ;;  %v8496_v42 = vld [vmem:[#allocation8 + $0x798] sm:$0xf0]  ;;  %v10153_v27 = vld [vmem:[#allocation8 + $0x72c] sm:$0xf] }
 0x2c5   : > { %v8487_v45 = vor.u32 %v10166_v33, %v8486_v32  ;;  %v8470_v47 = vld [vmem:[#allocation8 + $0x760] sm:$0xf]  ;;  %v8448_v28 = vld [vmem:[#allocation8 + $0x738] sm:$0xf0]  ;;  %v10150_v32 = vld [vmem:[#allocation8 + $0x70c] sm:$0xf0] }
 0x2c6   : > { %3536 = vmatpush.bf16.msrb.mxu3 %v8343_v62  ;;  %3549 = vmatpush.bf16.msra.mxu0 %v8347_v63  ;;  %v8518_v62 = vld [vmem:[#allocation8 + $0x7c0] sm:$0xf]  ;;  %v10174_v63 = vld [vmem:[#allocation8 + $0x7cc] sm:$0xf0] }
 0x2c7   : > { %3562 = vmatpush.bf16.msra.mxu1 %v8351_v4  ;;  %3575 = vmatpush.bf16.msra.mxu2 %v8355_v5  ;;  %v2245_v57 = vpop.f32.mrf.mxu3 }
 0x2c8   : > { %v2295_v60 = vsel %vm2031_vm6, %v2245_v57, %v2292_v48  ;;  %v2284_v61 = vpop.f32.mrf.mxu2  ;;  %v10162_v48 = vld [vmem:[#allocation8 + $0x76c] sm:$0xf0]  ;;  %v8480_v57 = vld [vmem:[#allocation8 + $0x778] sm:$0xf0] }
 0x2c9   : > { %v2294_v4 = vrot.slane %v2284_v61, 5  ;;  %v2260_v5 = vpop.f32.mrf.mxu0  ;;  %v8454_v61 = vld [vmem:[#allocation8 + $0x740] sm:$0xf] }
 0x2ca   : > { %3537 = vmatpush.bf16.msrb.mxu3 %v8327_v13  ;;  %3550 = vmatpush.bf16.msra.mxu0 %v8331_v14  ;;  %v2273_v8 = vpop.f32.mrf.mxu1  ;;  %v2038_v13 = vadd.f32 %v10966_v9, %v1778_v54  ;;  %v8531_v9 = vor.u32 %v10173_v11, %v8528_v12  ;;  %v8478_v54 = vld [vmem:[#allocation8 + $0x768] sm:$0xf] }
 0x2cb   : > { %3563 = vmatpush.bf16.msra.mxu1 %v8335_v17  ;;  %3576 = vmatpush.bf16.msra.mxu2 %v8339_v18  ;;  %v2296_v14 = vsel %vm2033_vm7, %v2293_v1, %v2294_v4  ;;  %v8519_v17 = vor.u32 %v10174_v63, %v8518_v62  ;;  %v8523_v18 = vor.u32 %v10172_v0, %v8520_v6  ;;  %v10158_v62 = vld [vmem:[#allocation8 + $0x74c] sm:$0xf0]  ;;  %v8462_v4 = vld [vmem:[#allocation8 + $0x748] sm:$0xf]  ;;  %v10157_v8 = vld [vmem:[#allocation8 + $0x74c] sm:$0xf] }
 0x2cc   : > { %v2297_v15 = vsel %vm2035_vm8, %v2295_v60, %v2296_v14  ;;  %v8475_v60 = vor.u32 %v10160_v52, %v8472_v53  ;;  %v8463_v20 = vor.u32 %v10159_v7, %v8462_v4 }
 0x2cd   : > { %v10976_v21 = vadd.f32 %v2297_v15, %v2038_v13  ;;  %v8455_v15 = vor.u32 %v10158_v62, %v8454_v61 }
 0x2ce   : > { %3538 = vmatpush.bf16.msrb.mxu3 %v8311_v30  ;;  %3551 = vmatpush.bf16.msra.mxu0 %v8315_v31  ;;  %v8507_v30 = vor.u32 %v10168_v23, %v8504_v24  ;;  %v8440_v23 = vld [vmem:[#allocation8 + $0x730] sm:$0xf0]  ;;  %v8446_v24 = vld [vmem:[#allocation8 + $0x728] sm:$0xf] }
 0x2cf   : > { %3564 = vmatpush.bf16.msra.mxu1 %v8319_v37  ;;  %3577 = vmatpush.bf16.msra.mxu2 %v8323_v38  ;;  %v2247_v49 = vpop.f32.mrf.mxu3  ;;  %v10164_v37 = vld [vmem:[#allocation8 + $0x784] sm:$0xf]  ;;  %v8488_v38 = vld [vmem:[#allocation8 + $0x790] sm:$0xf0]  ;;  %v8447_v33 = vor.u32 %v10155_v26, %v8446_v24 }
 0x2d0   : > { %v2286_v31 = vpop.f32.mrf.mxu2  ;;  %v8491_v46 = vor.u32 %v10164_v37, %v8488_v38  ;;  %v10148_v37 = vld [vmem:[#allocation8 + $0x704] sm:$0xf]  ;;  %v8424_v38 = vld [vmem:[#allocation8 + $0x710] sm:$0xf0] }
 0x2d1   : > { %v8422_v31 = vld [vmem:[#allocation8 + $0x700] sm:$0xf] }
 0x2d2   : > { %3539 = vmatpush.bf16.msrb.mxu3 %v8295_v50  ;;  %3552 = vmatpush.bf16.msra.mxu0 %v8299_v51  ;;  %v2518_v43 = vpop.f32.mrf.mxu0  ;;  %v8495_v50 = vor.u32 %v10167_v40, %v8494_v39  ;;  %v8499_v51 = vor.u32 %v10165_v41, %v8496_v42  ;;  %v8430_v39 = vld [vmem:[#allocation8 + $0x708] sm:$0xf]  ;;  %v10151_v41 = vld [vmem:[#allocation8 + $0x714] sm:$0xf0]  ;;  %v10149_v42 = vld [vmem:[#allocation8 + $0x70c] sm:$0xf] }
 0x2d3   : > { %3565 = vmatpush.bf16.msra.mxu1 %v8303_v55  ;;  %3578 = vmatpush.bf16.msra.mxu2 %v8307_v56  ;;  %v10163_v55 = vld [vmem:[#allocation8 + $0x774] sm:$0xf0]  ;;  %v10161_v56 = vld [vmem:[#allocation8 + $0x76c] sm:$0xf] }
 0x2d4   : > { %v8479_v63 = vor.u32 %v10163_v55, %v8478_v54  ;;  %v8483_v0 = vor.u32 %v10161_v56, %v8480_v57 }
 0x2d5   : > { %3540 = vmatmul.bf16.vlgmr.msrb.gmra.mxu3 %v3370_v16  ;;  %3553 = vmatmul.bf16.vlgmr.msra.gmra.mxu0 %v3370_v16  ;;  %v2531_v44 = vpop.f32.mrf.mxu1 }
 0x2d6   : > { %3791 = vmatpush.bf16.msra.mxu3 %v8535_v58  ;;  %3804 = vmatpush.bf16.msrb.mxu0 %v8539_v59  ;;  %v2552_v58 = vrot.slane %v2518_v43, 7  ;;  %v8471_v59 = vor.u32 %v10162_v48, %v8470_v47  ;;  %v2553_v11 = vrot.slane %v2531_v44, 6  ;;  %v8432_v43 = vld [vmem:[#allocation8 + $0x718] sm:$0xf0]  ;;  %v8427_v44 = vor.u32 %v10148_v37, %v8424_v38  ;;  %v10200_v37 = vld [vmem:[#allocation10 + $0xa0] sm:$0xff] }
 0x2d7   : > { %3817 = vmatpush.bf16.msrb.mxu1 %v8543_v2  ;;  %3830 = vmatpush.bf16.msrb.mxu2 %v8547_v3  ;;  %v10156_v2 = vld [vmem:[#allocation8 + $0x744] sm:$0xf]  ;;  %v8456_v3 = vld [vmem:[#allocation8 + $0x750] sm:$0xf0]  ;;  %v3629_v47 = vrot.slane %v10953_v35, 3 }
 0x2d8   : > { %3566 = vmatmul.bf16.vlgmr.msra.gmra.mxu1 %v3370_v16  ;;  %3579 = vmatmul.bf16.vlgmr.msra.gmra.mxu2 %v3370_v16  ;;  %v2505_v1 = vpop.f32.mrf.mxu3  ;;  %v8459_v16 = vor.u32 %v10156_v2, %v8456_v3  ;;  %v10208_v38 = vld [vmem:[#allocation10 + $0xe0] sm:$0xff] }
 0x2d9   : > { %v2555_v5 = vsel %vm2031_vm6, %v2505_v1, %v2552_v58 }
 0x2da   : > { %3792 = vmatpush.bf16.msra.mxu3 %v8519_v17  ;;  %3805 = vmatpush.bf16.msrb.mxu0 %v8523_v18  ;;  %v2520_v13 = vpop.f32.mrf.mxu0  ;;  %v8438_v17 = vld [vmem:[#allocation8 + $0x720] sm:$0xf]  ;;  %v10154_v18 = vld [vmem:[#allocation8 + $0x72c] sm:$0xf0] }
 0x2db   : > { %3818 = vmatpush.bf16.msrb.mxu1 %v8527_v22  ;;  %3831 = vmatpush.bf16.msrb.mxu2 %v8531_v9  ;;  %v2544_v6 = vpop.f32.mrf.mxu2  ;;  %v8467_v22 = vor.u32 %v10157_v8, %v8464_v10  ;;  %v10152_v9 = vld [vmem:[#allocation8 + $0x724] sm:$0xf] }
 0x2dc   : > { %v2554_v12 = vrot.slane %v2544_v6, 5 }
 0x2dd   : > { %v2533_v14 = vpop.f32.mrf.mxu1 }
 0x2de   : > { %3793 = vmatpush.bf16.msra.mxu3 %v8503_v29  ;;  %3806 = vmatpush.bf16.msrb.mxu0 %v8507_v30  ;;  %v2556_v19 = vsel %vm2033_vm7, %v2553_v11, %v2554_v12  ;;  %v8439_v29 = vor.u32 %v10154_v18, %v8438_v17  ;;  %v8443_v30 = vor.u32 %v10152_v9, %v8440_v23  ;;  %v10195_v9 = vld [vmem:[#allocation10 + $0x78] sm:$0xff] }
 0x2df   : > { %3819 = vmatpush.bf16.msrb.mxu1 %v8511_v34  ;;  %3832 = vmatpush.bf16.msrb.mxu2 %v8515_v36  ;;  %v2557_v25 = vsel %vm2035_vm8, %v2555_v5, %v2556_v19  ;;  %v8451_v34 = vor.u32 %v10153_v27, %v8448_v28  ;;  %v10203_v23 = vld [vmem:[#allocation10 + $0xb8] sm:$0xff]  ;;  %v10186_v27 = vld [vmem:[#allocation10 + $0x30] sm:$0xff] }
 0x2e0   : > { %v2559_v49 = vadd.f32 %v2557_v25, %v10976_v21  ;;  %v2507_v36 = vpop.f32.mrf.mxu3  ;;  %v8423_v21 = vor.u32 %v10150_v32, %v8422_v31  ;;  %v10211_v25 = vld [vmem:[#allocation10 + $0xf8] sm:$0xff]  ;;  %v10194_v28 = vld [vmem:[#allocation10 + $0x70] sm:$0xff]  ;;  %v10193_v31 = vld [vmem:[#allocation10 + $0x68] sm:$0xff] }
 0x2e1   : > { %v10201_v32 = vld [vmem:[#allocation10 + $0xa8] sm:$0xff]  ;;  %v10192_v36 = vld [vmem:[#allocation10 + $0x60] sm:$0xff] }
 0x2e2   : > { %3794 = vmatpush.bf16.msra.mxu3 %v8487_v45  ;;  %3807 = vmatpush.bf16.msrb.mxu0 %v8491_v46  ;;  %v8431_v45 = vor.u32 %v10151_v41, %v8430_v39  ;;  %v8435_v46 = vor.u32 %v10149_v42, %v8432_v43  ;;  %v10183_v39 = vld [vmem:[#allocation10 + $0x18] sm:$0xff] }
 0x2e3   : > { %3820 = vmatpush.bf16.msrb.mxu1 %v8495_v50  ;;  %3833 = vmatpush.bf16.msrb.mxu2 %v8499_v51  ;;  %v2546_v40 = vpop.f32.mrf.mxu2  ;;  %v10199_v41 = vld [vmem:[#allocation10 + $0x98] sm:$0xff] }
 0x2e4   : > { %v10191_v40 = vld [vmem:[#allocation10 + $0x58] sm:$0xff] }
 0x2e5   : > { %v10207_v43 = vld [vmem:[#allocation10 + $0xd8] sm:$0xff] }
 0x2e6   : > { %3795 = vmatpush.bf16.msra.mxu3 %v8471_v59  ;;  %3808 = vmatpush.bf16.msrb.mxu0 %v8475_v60 }
 0x2e7   : > { %3821 = vmatpush.bf16.msrb.mxu1 %v8479_v63  ;;  %3834 = vmatpush.bf16.msrb.mxu2 %v8483_v0 }
 0x2ea   : > { %3796 = vmatpush.bf16.msra.mxu3 %v8455_v15  ;;  %3809 = vmatpush.bf16.msrb.mxu0 %v8459_v16 }
 0x2eb   : > { %3822 = vmatpush.bf16.msrb.mxu1 %v8463_v20  ;;  %3835 = vmatpush.bf16.msrb.mxu2 %v8467_v22  ;;  %v10187_v22 = vld [vmem:[#allocation10 + $0x38] sm:$0xff] }
 0x2ee   : > { %3797 = vmatpush.bf16.msra.mxu3 %v8439_v29  ;;  %3810 = vmatpush.bf16.msrb.mxu0 %v8443_v30  ;;  %v10210_v29 = vld [vmem:[#allocation10 + $0xf0] sm:$0xff]  ;;  %v10185_v30 = vld [vmem:[#allocation10 + $0x28] sm:$0xff] }
 0x2ef   : > { %3823 = vmatpush.bf16.msrb.mxu1 %v8447_v33  ;;  %3836 = vmatpush.bf16.msrb.mxu2 %v8451_v34  ;;  %v10209_v33 = vld [vmem:[#allocation10 + $0xe8] sm:$0xff]  ;;  %v10184_v34 = vld [vmem:[#allocation10 + $0x20] sm:$0xff] }
 0x2f2   : > { %3798 = vmatpush.bf16.msra.mxu3 %v8423_v21  ;;  %3811 = vmatpush.bf16.msrb.mxu0 %v8427_v44  ;;  %v2777_v48 = vpop.f32.mrf.mxu0  ;;  %v10182_v44 = vld [vmem:[#allocation10 + $0x10] sm:$0xff] }
 0x2f3   : > { %3824 = vmatpush.bf16.msrb.mxu1 %v8431_v45  ;;  %3837 = vmatpush.bf16.msrb.mxu2 %v8435_v46  ;;  %v2811_v51 = vrot.slane %v2777_v48, 7  ;;  %v10190_v45 = vld [vmem:[#allocation10 + $0x50] sm:$0xff] }
 0x2f4   : > { %v10198_v46 = vld [vmem:[#allocation10 + $0x90] sm:$0xff] }
 0x2f5   : > { %3799 = vmatmul.bf16.vlgmr.msra.gmra.mxu3 %v3629_v47  ;;  %3812 = vmatmul.bf16.vlgmr.msrb.gmra.mxu0 %v3629_v47  ;;  %v2790_v50 = vpop.f32.mrf.mxu1 }
 0x2f6   : > { %3825 = vmatmul.bf16.vlgmr.msrb.gmra.mxu1 %v3629_v47  ;;  %3838 = vmatmul.bf16.vlgmr.msrb.gmra.mxu2 %v3629_v47  ;;  %v2812_v55 = vrot.slane %v2790_v50, 6  ;;  %v10206_v47 = vld [vmem:[#allocation10 + $0xd0] sm:$0xff] }
 0x2f7   : > { %4126 = vmatpush.bf16.msrb.mxu3 %v10187_v22  ;;  %4139 = vmatpush.bf16.msra.mxu0 %v10195_v9 }
 0x2f8   : > { %v2764_v52 = vpop.f32.mrf.mxu3  ;;  %4152 = vmatpush.bf16.msra.mxu1 %v10203_v23  ;;  %4165 = vmatpush.bf16.msra.mxu2 %v10211_v25  ;;  %v8782_v23 = vld [vmem:[#allocation11 + $0xc8] sm:$0xf]  ;;  %v10237_v25 = vld [vmem:[#allocation11 + $0xcc] sm:$0xf] }
 0x2f9   : > { %v2814_v53 = vsel %vm2031_vm6, %v2764_v52, %v2811_v51  ;;  %v10181_v52 = vld [vmem:[#allocation10 + $0x8] sm:$0xff] }
 0x2fa   : > { %v2779_v57 = vpop.f32.mrf.mxu0 }
 0x2fb   : > { %v2803_v54 = vpop.f32.mrf.mxu2  ;;  %4127 = vmatpush.bf16.msrb.mxu3 %v10186_v27  ;;  %4140 = vmatpush.bf16.msra.mxu0 %v10194_v28  ;;  %v10180_v57 = vld [vmem:[#allocation10] sm:$0xff]  ;;  %v8784_v27 = vld [vmem:[#allocation11 + $0xd8] sm:$0xf0] }
 0x2fc   : > { %v2813_v56 = vrot.slane %v2803_v54, 5  ;;  %4166 = vmatpush.bf16.msra.mxu2 %v10210_v29  ;;  %v10197_v54 = vld [vmem:[#allocation10 + $0x88] sm:$0xff]  ;;  %v8758_v28 = vld [vmem:[#allocation11 + $0xa0] sm:$0xf]  ;;  %v8787_v29 = vor.u32 %v10237_v25, %v8784_v27  ;;  %v10226_v27 = vld [vmem:[#allocation11 + $0x6c] sm:$0xf0] }
 0x2fd   : > { %v2792_v58 = vpop.f32.mrf.mxu1 }
 0x2fe   : > { %v2815_v59 = vsel %vm2033_vm7, %v2812_v55, %v2813_v56  ;;  %v10205_v56 = vld [vmem:[#allocation10 + $0xc8] sm:$0xff]  ;;  %v10188_v58 = vld [vmem:[#allocation10 + $0x40] sm:$0xff] }
 0x2ff   : > { %v2816_v60 = vsel %vm2035_vm8, %v2814_v53, %v2815_v59  ;;  %4128 = vmatpush.bf16.msrb.mxu3 %v10185_v30  ;;  %4141 = vmatpush.bf16.msra.mxu0 %v10193_v31  ;;  %v10189_v53 = vld [vmem:[#allocation10 + $0x48] sm:$0xff]  ;;  %v10196_v59 = vld [vmem:[#allocation10 + $0x80] sm:$0xff]  ;;  %v8760_v31 = vld [vmem:[#allocation11 + $0xb0] sm:$0xf0] }
 0x300   : > { %v2818_v35 = vadd.f32 %v2816_v60, %v2559_v49  ;;  %v2766_v61 = vpop.f32.mrf.mxu3  ;;  %v10202_v49 = vld [vmem:[#allocation10 + $0xb0] sm:$0xff]  ;;  %4167 = vmatpush.bf16.msra.mxu2 %v10209_v33  ;;  %v10204_v60 = vld [vmem:[#allocation10 + $0xc0] sm:$0xff] }
 0x301   : > { %4153 = vmatpush.bf16.msra.mxu1 %v10202_v49  ;;  %v10234_v49 = vld [vmem:[#allocation11 + $0xac] sm:$0xf0]  ;;  %v10232_v30 = vld [vmem:[#allocation11 + $0xa4] sm:$0xf] }
 0x302   : > { %v8759_v33 = vor.u32 %v10234_v49, %v8758_v28  ;;  %v10224_v28 = vld [vmem:[#allocation11 + $0x64] sm:$0xf] }
 0x303   : > { %v2805_v62 = vpop.f32.mrf.mxu2  ;;  %4129 = vmatpush.bf16.msrb.mxu3 %v10184_v34  ;;  %4142 = vmatpush.bf16.msra.mxu0 %v10192_v36  ;;  %v10235_v34 = vld [vmem:[#allocation11 + $0xb4] sm:$0xf0]  ;;  %v10233_v36 = vld [vmem:[#allocation11 + $0xac] sm:$0xf] }
 0x304   : > { %4168 = vmatpush.bf16.msra.mxu2 %v10208_v38  ;;  %v8763_v38 = vor.u32 %v10232_v30, %v8760_v31  ;;  %v8734_v30 = vld [vmem:[#allocation11 + $0x68] sm:$0xf]  ;;  %v10227_v31 = vld [vmem:[#allocation11 + $0x74] sm:$0xf0] }
 0x305   : > { %4154 = vmatpush.bf16.msra.mxu1 %v10201_v32  ;;  %v8766_v32 = vld [vmem:[#allocation11 + $0xa8] sm:$0xf] }
 0x307   : > { %4130 = vmatpush.bf16.msrb.mxu3 %v10183_v39  ;;  %4143 = vmatpush.bf16.msra.mxu0 %v10191_v40  ;;  %v8767_v39 = vor.u32 %v10235_v34, %v8766_v32  ;;  %v8742_v40 = vld [vmem:[#allocation11 + $0x80] sm:$0xf]  ;;  %v10225_v34 = vld [vmem:[#allocation11 + $0x6c] sm:$0xf] }
 0x308   : > { %4169 = vmatpush.bf16.msra.mxu2 %v10207_v43  ;;  %v10228_v43 = vld [vmem:[#allocation11 + $0x84] sm:$0xf] }
 0x309   : > { %4155 = vmatpush.bf16.msra.mxu1 %v10200_v37  ;;  %v8768_v37 = vld [vmem:[#allocation11 + $0xb8] sm:$0xf0] }
 0x30b   : > { %4131 = vmatpush.bf16.msrb.mxu3 %v10182_v44  ;;  %4144 = vmatpush.bf16.msra.mxu0 %v10190_v45  ;;  %v8771_v44 = vor.u32 %v10233_v36, %v8768_v37  ;;  %v8744_v45 = vld [vmem:[#allocation11 + $0x90] sm:$0xf0]  ;;  %v8736_v36 = vld [vmem:[#allocation11 + $0x78] sm:$0xf0] }
 0x30c   : > { %4170 = vmatpush.bf16.msra.mxu2 %v10206_v47  ;;  %v10231_v47 = vld [vmem:[#allocation11 + $0x94] sm:$0xf0]  ;;  %v8739_v37 = vor.u32 %v10225_v34, %v8736_v36  ;;  %v9286_v34 = vld [vmem:[#allocation13 + $0x3c0] sm:$0xf]  ;;  %v10366_v36 = vld [vmem:[#allocation13 + $0x3cc] sm:$0xf0] }
 0x30d   : > { %4156 = vmatpush.bf16.msra.mxu1 %v10199_v41  ;;  %v10230_v41 = vld [vmem:[#allocation11 + $0x8c] sm:$0xf0] }
 0x30f   : > { %4132 = vmatpush.bf16.msrb.mxu3 %v10181_v52  ;;  %4145 = vmatpush.bf16.msra.mxu0 %v10189_v53  ;;  %v8752_v52 = vld [vmem:[#allocation11 + $0x98] sm:$0xf0] }
 0x310   : > { %4171 = vmatpush.bf16.msra.mxu2 %v10205_v56  ;;  %v8743_v56 = vor.u32 %v10230_v41, %v8742_v40  ;;  %v10220_v40 = vld [vmem:[#allocation11 + $0x44] sm:$0xf] }
 0x311   : > { %4157 = vmatpush.bf16.msra.mxu1 %v10198_v46  ;;  %v8750_v46 = vld [vmem:[#allocation11 + $0x88] sm:$0xf] }
 0x312   : > { %v3036_v63 = vpop.f32.mrf.mxu0 }
 0x313   : > { %v3070_v1 = vrot.slane %v3036_v63, 7  ;;  %4133 = vmatpush.bf16.msrb.mxu3 %v10180_v57  ;;  %4146 = vmatpush.bf16.msra.mxu0 %v10188_v58  ;;  %v8790_v63 = vld [vmem:[#allocation11 + $0xe0] sm:$0xf]  ;;  %v8747_v58 = vor.u32 %v10228_v43, %v8744_v45  ;;  %v8712_v43 = vld [vmem:[#allocation11 + $0x50] sm:$0xf0] }
 0x314   : > { %4172 = vmatpush.bf16.msra.mxu2 %v10204_v60  ;;  %v10223_v45 = vld [vmem:[#allocation11 + $0x54] sm:$0xf0] }
 0x315   : > { %v3049_v0 = vpop.f32.mrf.mxu1  ;;  %4158 = vmatpush.bf16.msra.mxu1 %v10197_v54 }
 0x316   : > { %v3071_v5 = vrot.slane %v3049_v0, 6  ;;  %v10242_v0 = vld [vmem:[#allocation11 + $0xec] sm:$0xf0] }
 0x318   : > { %v3023_v2 = vpop.f32.mrf.mxu3 }
 0x319   : > { %v3073_v3 = vsel %vm2031_vm6, %v3023_v2, %v3070_v1  ;;  %4159 = vmatpush.bf16.msra.mxu1 %v10196_v59  ;;  %v10240_v1 = vld [vmem:[#allocation11 + $0xe4] sm:$0xf]  ;;  %v8791_v2 = vor.u32 %v10242_v0, %v8790_v63  ;;  %v8751_v59 = vor.u32 %v10231_v47, %v8750_v46  ;;  %v8715_v46 = vor.u32 %v10220_v40, %v8712_v43  ;;  %v10294_v40 = vld [vmem:[#allocation13 + $0x18c] sm:$0xf0]  ;;  %v8886_v43 = vld [vmem:[#allocation13 + $0xa0] sm:$0xf] }
 0x31a   : > { %v3038_v7 = vpop.f32.mrf.mxu0 }
 0x31b   : > { %v3062_v4 = vpop.f32.mrf.mxu2  ;;  %4381 = vmatpush.bf16.msra.mxu3 %v8791_v2 }
 0x31c   : > { %v3072_v6 = vrot.slane %v3062_v4, 5  ;;  %v8798_v4 = vld [vmem:[#allocation11 + $0xe8] sm:$0xf] }
 0x31d   : > { %v3051_v8 = vpop.f32.mrf.mxu1 }
 0x31e   : > { %v3074_v10 = vsel %vm2033_vm7, %v3071_v5, %v3072_v6  ;;  %v10243_v5 = vld [vmem:[#allocation11 + $0xf4] sm:$0xf0]  ;;  %v10241_v8 = vld [vmem:[#allocation11 + $0xec] sm:$0xf] }
 0x31f   : > { %v3075_v11 = vsel %vm2035_vm8, %v3073_v3, %v3074_v10  ;;  %v8792_v3 = vld [vmem:[#allocation11 + $0xf0] sm:$0xf0]  ;;  %v8799_v7 = vor.u32 %v10243_v5, %v8798_v4  ;;  %v8800_v10 = vld [vmem:[#allocation11 + $0xf8] sm:$0xf0] }
 0x320   : > { %v10989_v12 = vadd.f32 %v3075_v11, %v2818_v35  ;;  %v3025_v13 = vpop.f32.mrf.mxu3  ;;  %v8795_v6 = vor.u32 %v10240_v1, %v8792_v3  ;;  %v8774_v11 = vld [vmem:[#allocation11 + $0xc0] sm:$0xf] }
 0x321   : > { %v8803_v13 = vor.u32 %v10241_v8, %v8800_v10  ;;  %4407 = vmatpush.bf16.msrb.mxu1 %v8799_v7 }
 0x322   : > { %4394 = vmatpush.bf16.msrb.mxu0 %v8795_v6 }
 0x323   : > { %v3064_v14 = vpop.f32.mrf.mxu2  ;;  %4420 = vmatpush.bf16.msrb.mxu2 %v8803_v13 }
 0x324   : > { %v10238_v14 = vld [vmem:[#allocation11 + $0xcc] sm:$0xf0] }
 0x325   : > { %v8775_v22 = vor.u32 %v10238_v14, %v8774_v11 }
 0x327   : > { %4382 = vmatpush.bf16.msra.mxu3 %v8775_v22  ;;  %4421 = vmatpush.bf16.msrb.mxu2 %v8787_v29  ;;  %v8728_v29 = vld [vmem:[#allocation11 + $0x70] sm:$0xf0] }
 0x328   : > { %v8731_v32 = vor.u32 %v10224_v28, %v8728_v29  ;;  %v9014_v28 = vld [vmem:[#allocation13 + $0x1a0] sm:$0xf] }
 0x329   : > { %v9142_v29 = vld [vmem:[#allocation13 + $0x2a0] sm:$0xf] }
 0x32b   : > { %4383 = vmatpush.bf16.msra.mxu3 %v8759_v33  ;;  %4422 = vmatpush.bf16.msrb.mxu2 %v8771_v44  ;;  %v8735_v33 = vor.u32 %v10227_v31, %v8734_v30  ;;  %v8718_v44 = vld [vmem:[#allocation11 + $0x48] sm:$0xf]  ;;  %v10330_v30 = vld [vmem:[#allocation13 + $0x2ac] sm:$0xf0]  ;;  %v8902_v31 = vld [vmem:[#allocation13 + $0xc0] sm:$0xf] }
 0x32c   : > { %v8719_v47 = vor.u32 %v10223_v45, %v8718_v44  ;;  %v10266_v44 = vld [vmem:[#allocation13 + $0xac] sm:$0xf0]  ;;  %v9270_v45 = vld [vmem:[#allocation13 + $0x3a0] sm:$0xf] }
 0x32f   : > { %4384 = vmatpush.bf16.msra.mxu3 %v8743_v56  ;;  %v10216_v56 = vld [vmem:[#allocation11 + $0x24] sm:$0xf] }
 0x332   : > { %v10991_v15 = vpop.f32.mrf.mxu0 }
 0x333   : > { %v3329_v60 = vrot.slane %v10991_v15, 7 }
 0x335   : > { %v10993_v16 = vpop.f32.mrf.mxu1 }
 0x336   : > { %v3330_v53 = vrot.slane %v10993_v16, 6 }
 0x338   : > { %v10995_v17 = vpop.f32.mrf.mxu3 }
 0x33a   : > { %v3297_v19 = vpop.f32.mrf.mxu0 }
 0x33b   : > { %v10997_v18 = vpop.f32.mrf.mxu2  ;;  %v10236_v19 = vld [vmem:[#allocation11 + $0xc4] sm:$0xf] }
 0x33c   : > { %v3331_v62 = vrot.slane %v10997_v18, 5 }
 0x33d   : > { %v3310_v20 = vpop.f32.mrf.mxu1 }
 0x33e   : > { %v8776_v20 = vld [vmem:[#allocation11 + $0xd0] sm:$0xf0] }
 0x33f   : > { %v8779_v9 = vor.u32 %v10236_v19, %v8776_v20 }
 0x340   : > { %v3284_v24 = vpop.f32.mrf.mxu3 }
 0x341   : > { %v10239_v24 = vld [vmem:[#allocation11 + $0xd4] sm:$0xf0]  ;;  %4395 = vmatpush.bf16.msrb.mxu0 %v8779_v9 }
 0x343   : > { %v3323_v26 = vpop.f32.mrf.mxu2 }
 0x344   : > { %v8783_v26 = vor.u32 %v10239_v24, %v8782_v23 }
 0x345   : > { %4396 = vmatpush.bf16.msrb.mxu0 %v8763_v38  ;;  %v8710_v38 = vld [vmem:[#allocation11 + $0x40] sm:$0xf] }
 0x346   : > { %4408 = vmatpush.bf16.msrb.mxu1 %v8783_v26  ;;  %v8726_v26 = vld [vmem:[#allocation11 + $0x60] sm:$0xf] }
 0x347   : > { %v8727_v49 = vor.u32 %v10226_v27, %v8726_v26 }
 0x349   : > { %4397 = vmatpush.bf16.msrb.mxu0 %v8747_v58  ;;  %4385 = vmatpush.bf16.msra.mxu3 %v8727_v49  ;;  %v8696_v58 = vld [vmem:[#allocation11 + $0x30] sm:$0xf0]  ;;  %v10298_v49 = vld [vmem:[#allocation13 + $0x1ac] sm:$0xf0] }
 0x34a   : > { %4409 = vmatpush.bf16.msrb.mxu1 %v8767_v39  ;;  %v10222_v39 = vld [vmem:[#allocation11 + $0x4c] sm:$0xf0] }
 0x34b   : > { %v8711_v41 = vor.u32 %v10222_v39, %v8710_v38  ;;  %v9287_v38 = vor.u32 %v10366_v36, %v9286_v34  ;;  %v8998_v39 = vld [vmem:[#allocation13 + $0x180] sm:$0xf]  ;;  %v10346_v34 = vld [vmem:[#allocation13 + $0x32c] sm:$0xf0] }
 0x34d   : > { %4398 = vmatpush.bf16.msrb.mxu0 %v8731_v32  ;;  %4386 = vmatpush.bf16.msra.mxu3 %v8711_v41  ;;  %v10270_v32 = vld [vmem:[#allocation13 + $0xcc] sm:$0xf0]  ;;  %v9143_v41 = vor.u32 %v10330_v30, %v9142_v29 }
 0x34e   : > { %4410 = vmatpush.bf16.msrb.mxu1 %v8751_v59  ;;  %v8702_v59 = vld [vmem:[#allocation11 + $0x28] sm:$0xf] }
 0x351   : > { %4399 = vmatpush.bf16.msrb.mxu0 %v8715_v46  ;;  %v9126_v46 = vld [vmem:[#allocation13 + $0x280] sm:$0xf] }
 0x352   : > { %v10999_v42 = vpop.f32.mrf.mxu0  ;;  %4411 = vmatpush.bf16.msrb.mxu1 %v8735_v33  ;;  %v8903_v33 = vor.u32 %v10270_v32, %v8902_v31  ;;  %v10250_v32 = vld [vmem:[#allocation13 + $0x2c] sm:$0xf0] }
 0x353   : > { %v3588_v63 = vrot.slane %v10999_v42, 7 }
 0x355   : > { %v11001_v21 = vpop.f32.mrf.mxu1 }
 0x356   : > { %4412 = vmatpush.bf16.msrb.mxu1 %v8719_v47  ;;  %v10326_v47 = vld [vmem:[#allocation13 + $0x28c] sm:$0xf0] }
 0x358   : > { %v11003_v48 = vpop.f32.mrf.mxu3 }
 0x359   : > { %v3591_v15 = vsel %vm2031_vm6, %v11003_v48, %v3588_v63 }
 0x35a   : > { %v3556_v51 = vpop.f32.mrf.mxu0 }
 0x35b   : > { %v11005_v50 = vpop.f32.mrf.mxu2  ;;  %v10229_v51 = vld [vmem:[#allocation11 + $0x8c] sm:$0xf] }
 0x35c   : > { %v3590_v54 = vrot.slane %v11005_v50, 5  ;;  %v8755_v16 = vor.u32 %v10229_v51, %v8752_v52  ;;  %v3332_v50 = vsel %vm2031_vm6, %v10995_v17, %v3329_v60  ;;  %v10221_v51 = vld [vmem:[#allocation11 + $0x4c] sm:$0xf]  ;;  %v8720_v52 = vld [vmem:[#allocation11 + $0x58] sm:$0xf0] }
 0x35d   : > { %v3569_v55 = vpop.f32.mrf.mxu1  ;;  %v10219_v60 = vld [vmem:[#allocation11 + $0x34] sm:$0xf0] }
 0x35e   : > { %4423 = vmatpush.bf16.msrb.mxu2 %v8755_v16  ;;  %v10217_v16 = vld [vmem:[#allocation11 + $0x2c] sm:$0xf] }
 0x360   : > { %v3543_v35 = vpop.f32.mrf.mxu3 }
 0x361   : > { %v3333_v35 = vsel %vm2033_vm7, %v3330_v53, %v3331_v62  ;;  %v8723_v53 = vor.u32 %v10221_v51, %v8720_v52  ;;  %v10362_v51 = vld [vmem:[#allocation13 + $0x3ac] sm:$0xf0]  ;;  %v8887_v52 = vor.u32 %v10266_v44, %v8886_v43  ;;  %v10304_v43 = vld [vmem:[#allocation13 + $0x1e4] sm:$0xf]  ;;  %v9048_v44 = vld [vmem:[#allocation13 + $0x1f0] sm:$0xf0] }
 0x362   : > { %v3334_v1 = vsel %vm2035_vm8, %v3332_v50, %v3333_v35  ;;  %4424 = vmatpush.bf16.msrb.mxu2 %v8739_v37  ;;  %v8699_v35 = vor.u32 %v10216_v56, %v8696_v58  ;;  %v8704_v50 = vld [vmem:[#allocation11 + $0x38] sm:$0xf0]  ;;  %v9015_v37 = vor.u32 %v10298_v49, %v9014_v28  ;;  %v10262_v56 = vld [vmem:[#allocation13 + $0x8c] sm:$0xf0]  ;;  %v8822_v49 = vld [vmem:[#allocation13 + $0x20] sm:$0xf] }
 0x363   : > { %v3582_v61 = vpop.f32.mrf.mxu2  ;;  %v3336_v2 = vadd.f32 %v3334_v1, %v10989_v12  ;;  %v8707_v63 = vor.u32 %v10217_v16, %v8704_v50  ;;  %v10214_v1 = vld [vmem:[#allocation11 + $0xc] sm:$0xf0] }
 0x364   : > { %v3589_v61 = vrot.slane %v11001_v21, 6  ;;  %4400 = vmatpush.bf16.msrb.mxu0 %v8699_v35  ;;  %v10358_v58 = vld [vmem:[#allocation13 + $0x38c] sm:$0xf0] }
 0x365   : > { %v10290_v35 = vld [vmem:[#allocation13 + $0x16c] sm:$0xf0] }
 0x366   : > { %v3592_v0 = vsel %vm2033_vm7, %v3589_v61, %v3590_v54  ;;  %v8694_v54 = vld [vmem:[#allocation11 + $0x20] sm:$0xf]  ;;  %4425 = vmatpush.bf16.msrb.mxu2 %v8723_v53  ;;  %v8703_v61 = vor.u32 %v10219_v60, %v8702_v59  ;;  %v9271_v53 = vor.u32 %v10362_v51, %v9270_v45  ;;  %v9127_v59 = vor.u32 %v10326_v47, %v9126_v46  ;;  %v10322_v16 = vld [vmem:[#allocation13 + $0x26c] sm:$0xf0]  ;;  %v10336_v45 = vld [vmem:[#allocation13 + $0x2e4] sm:$0xf] }
 0x367   : > { %v3593_v21 = vsel %vm2035_vm8, %v3591_v15, %v3592_v0  ;;  %v8678_v0 = vld [vmem:[#allocation11] sm:$0xf]  ;;  %v10212_v15 = vld [vmem:[#allocation11 + $0x4] sm:$0xf]  ;;  %v8823_v46 = vor.u32 %v10250_v32, %v8822_v49  ;;  %v9128_v49 = vld [vmem:[#allocation13 + $0x290] sm:$0xf0] }
 0x368   : > { %v3595_v6 = vadd.f32 %v3593_v21, %v3336_v2  ;;  %4413 = vmatpush.bf16.msrb.mxu1 %v8703_v61  ;;  %v8680_v21 = vld [vmem:[#allocation11 + $0x10] sm:$0xf0]  ;;  %v10215_v2 = vld [vmem:[#allocation11 + $0x14] sm:$0xf0]  ;;  %v8982_v60 = vld [vmem:[#allocation13 + $0x160] sm:$0xf] }
 0x369   : > { %v9110_v61 = vld [vmem:[#allocation13 + $0x260] sm:$0xf]  ;;  %v8872_v32 = vld [vmem:[#allocation13 + $0x90] sm:$0xf0] }
 0x36a   : > { %4426 = vmatpush.bf16.msrb.mxu2 %v8707_v63 }
 0x372   : > { %v3813_v55 = vpop.f32.mrf.mxu0 }
 0x373   : > { %v3826_v57 = vpop.f32.mrf.mxu1  ;;  %v3847_v17 = vrot.slane %v3813_v55, 7  ;;  %v10218_v55 = vld [vmem:[#allocation11 + $0x2c] sm:$0xf0] }
 0x374   : > { %v3848_v3 = vrot.slane %v3826_v57, 6  ;;  %v8695_v57 = vor.u32 %v10218_v55, %v8694_v54  ;;  %v8870_v54 = vld [vmem:[#allocation13 + $0x80] sm:$0xf]  ;;  %v8999_v55 = vor.u32 %v10294_v40, %v8998_v39  ;;  %v10278_v39 = vld [vmem:[#allocation13 + $0x10c] sm:$0xf0] }
 0x375   : > { %v8871_v63 = vor.u32 %v10262_v56, %v8870_v54  ;;  %v9062_v40 = vld [vmem:[#allocation13 + $0x200] sm:$0xf]  ;;  %v10246_v54 = vld [vmem:[#allocation13 + $0xc] sm:$0xf0] }
 0x376   : > { %4387 = vmatpush.bf16.msra.mxu3 %v8695_v57  ;;  %v9254_v57 = vld [vmem:[#allocation13 + $0x380] sm:$0xf] }
 0x377   : > { %v9190_v56 = vld [vmem:[#allocation13 + $0x300] sm:$0xf] }
 0x378   : > { %v3800_v18 = vpop.f32.mrf.mxu3 }
 0x379   : > { %v3839_v62 = vpop.f32.mrf.mxu2  ;;  %v3850_v7 = vsel %vm2031_vm6, %v3800_v18, %v3847_v17  ;;  %v8679_v18 = vor.u32 %v10214_v1, %v8678_v0  ;;  %v8683_v17 = vor.u32 %v10212_v15, %v8680_v21  ;;  %v9255_v0 = vor.u32 %v10358_v58, %v9254_v57  ;;  %v8854_v1 = vld [vmem:[#allocation13 + $0x60] sm:$0xf]  ;;  %v10258_v21 = vld [vmem:[#allocation13 + $0x6c] sm:$0xf0]  ;;  %v10272_v58 = vld [vmem:[#allocation13 + $0xe4] sm:$0xf] }
 0x37a   : > { %v3849_v42 = vrot.slane %v3839_v62, 5  ;;  %v3815_v4 = vpop.f32.mrf.mxu0  ;;  %v8686_v62 = vld [vmem:[#allocation11 + $0x8] sm:$0xf]  ;;  %v10342_v57 = vld [vmem:[#allocation13 + $0x30c] sm:$0xf0] }
 0x37b   : > { %v3828_v5 = vpop.f32.mrf.mxu1  ;;  %v8688_v4 = vld [vmem:[#allocation11 + $0x18] sm:$0xf0]  ;;  %4388 = vmatpush.bf16.msra.mxu3 %v8679_v18  ;;  %4401 = vmatpush.bf16.msrb.mxu0 %v8683_v17  ;;  %v8983_v18 = vor.u32 %v10290_v35, %v8982_v60  ;;  %v9111_v17 = vor.u32 %v10322_v16, %v9110_v61  ;;  %v8920_v16 = vld [vmem:[#allocation13 + $0xf0] sm:$0xf0] }
 0x37c   : > { %v3851_v8 = vsel %vm2033_vm7, %v3848_v3, %v3849_v42  ;;  %v8687_v3 = vor.u32 %v10215_v2, %v8686_v62  ;;  %v10213_v42 = vld [vmem:[#allocation11 + $0xc] sm:$0xf]  ;;  %v9238_v62 = vld [vmem:[#allocation13 + $0x360] sm:$0xf]  ;;  %v10354_v2 = vld [vmem:[#allocation13 + $0x36c] sm:$0xf0] }
 0x37d   : > { %v3852_v10 = vsel %vm2035_vm8, %v3850_v7, %v3851_v8  ;;  %v8691_v5 = vor.u32 %v10213_v42, %v8688_v4  ;;  %v10306_v7 = vld [vmem:[#allocation13 + $0x1ec] sm:$0xf0]  ;;  %v9174_v8 = vld [vmem:[#allocation13 + $0x2e0] sm:$0xf] }
 0x37e   : > { %v3854_v48 = vadd.f32 %v3852_v10, %v3595_v6  ;;  %4414 = vmatpush.bf16.msrb.mxu1 %v8687_v3  ;;  %v9046_v6 = vld [vmem:[#allocation13 + $0x1e0] sm:$0xf]  ;;  %v10286_v42 = vld [vmem:[#allocation13 + $0x14c] sm:$0xf0] }
 0x37f   : > { %4427 = vmatpush.bf16.msrb.mxu2 %v8691_v5  ;;  %v9047_v10 = vor.u32 %v10306_v7, %v9046_v6  ;;  %v8966_v3 = vld [vmem:[#allocation13 + $0x140] sm:$0xf]  ;;  %v10318_v5 = vld [vmem:[#allocation13 + $0x24c] sm:$0xf0]  ;;  %v3933_v6 = vld [vmem:[%s11137_s6] sm:$0x1]  ;;  %v8855_v7 = vor.u32 %v10258_v21, %v8854_v1 }
 0x380   : > { %v3855_v11 = vmax.f32 %v3854_v48, 0.0  ;;  %v3802_v13 = vpop.f32.mrf.mxu3  ;;  %v10338_v48 = vld [vmem:[#allocation13 + $0x2ec] sm:$0xf0]  ;;  %v9094_v4 = vld [vmem:[#allocation13 + $0x240] sm:$0xf] }
 0x381   : > { %v3841_v14 = vpop.f32.mrf.mxu2  ;;  %v10302_v13 = vld [vmem:[#allocation13 + $0x1cc] sm:$0xf0]  ;;  %v10332_v21 = vld [vmem:[#allocation13 + $0x2c4] sm:$0xf] }
 0x382   : > { %v3857_v19 = vperm.slane %v3855_v11, 0  ;;  %v3858_v20 = vperm.slane %v3855_v11, 1  ;;  %v3859_v22 = vperm.slane %v3855_v11, 2  ;;  %v3860_v12 = vperm.slane %v3855_v11, 3  ;;  %v9030_v11 = vld [vmem:[#allocation13 + $0x1c0] sm:$0xf] }
 0x383   : > { %v9175_v14 = vor.u32 %v10338_v48, %v9174_v8  ;;  %v9239_v8 = vor.u32 %v10354_v2, %v9238_v62  ;;  %v8967_v48 = vor.u32 %v10286_v42, %v8966_v3  ;;  %v9160_v62 = vld [vmem:[#allocation13 + $0x2d0] sm:$0xf0]  ;;  %v8923_v3 = vor.u32 %v10272_v58, %v8920_v16  ;;  %v10352_v58 = vld [vmem:[#allocation13 + $0x364] sm:$0xf] }
 0x384   : > { %v3865_v9 = vpack.c.bf16 %v3857_v19, %v3857_v19  ;;  %v3866_v23 = vpack.c.bf16 %v3858_v20, %v3858_v20  ;;  %v3867_v24 = vpack.c.bf16 %v3859_v22, %v3859_v22  ;;  %v3868_v25 = vpack.c.bf16 %v3860_v12, %v3860_v12  ;;  %v9158_v19 = vld [vmem:[#allocation13 + $0x2c0] sm:$0xf]  ;;  %v10334_v20 = vld [vmem:[#allocation13 + $0x2cc] sm:$0xf0]  ;;  %v8952_v16 = vld [vmem:[#allocation13 + $0x130] sm:$0xf0] }
 0x385   : > { %v8918_v22 = vld [vmem:[#allocation13 + $0xe0] sm:$0xf]  ;;  %v9031_v12 = vor.u32 %v10302_v13, %v9030_v11  ;;  %v10254_v11 = vld [vmem:[#allocation13 + $0x4c] sm:$0xf0] }
 0x386   : > { %4134 = vmatmul.bf16.vlgmr.msrb.gmra.mxu3 %v3865_v9  ;;  %4147 = vmatmul.bf16.vlgmr.msra.gmra.mxu0 %v3866_v23  ;;  %v10274_v9 = vld [vmem:[#allocation13 + $0xec] sm:$0xf0]  ;;  %v9302_v23 = vld [vmem:[#allocation13 + $0x3e0] sm:$0xf] }
 0x387   : > { %4160 = vmatmul.bf16.vlgmr.msra.gmra.mxu1 %v3867_v24  ;;  %4173 = vmatmul.bf16.vlgmr.msra.gmra.mxu2 %v3868_v25  ;;  %v10370_v24 = vld [vmem:[#allocation13 + $0x3ec] sm:$0xf0]  ;;  %v9159_v25 = vor.u32 %v10334_v20, %v9158_v19  ;;  %v8919_v26 = vor.u32 %v10274_v9, %v8918_v22  ;;  %v9222_v13 = vld [vmem:[#allocation13 + $0x340] sm:$0xf]  ;;  %v9095_v20 = vor.u32 %v10318_v5, %v9094_v4  ;;  %v10268_v4 = vld [vmem:[#allocation13 + $0xc4] sm:$0xf] }
 0x388   : > { %5222 = vmatpush.bf16.msra.mxu0 %v9047_v10  ;;  %5235 = vmatpush.bf16.msra.mxu1 %v9175_v14  ;;  %v9303_v27 = vor.u32 %v10370_v24, %v9302_v23  ;;  %v8838_v10 = vld [vmem:[#allocation13 + $0x40] sm:$0xf]  ;;  %v10350_v14 = vld [vmem:[#allocation13 + $0x34c] sm:$0xf0]  ;;  %v8904_v5 = vld [vmem:[#allocation13 + $0xd0] sm:$0xf0] }
 0x389   : > { %5209 = vmatpush.bf16.msrb.mxu3 %v8919_v26  ;;  %v8950_v22 = vld [vmem:[#allocation13 + $0x120] sm:$0xf]  ;;  %v9223_v28 = vor.u32 %v10350_v14, %v9222_v13  ;;  %v10328_v13 = vld [vmem:[#allocation13 + $0x2a4] sm:$0xf]  ;;  %v9144_v14 = vld [vmem:[#allocation13 + $0x2b0] sm:$0xf0] }
 0x38a   : > { %5248 = vmatpush.bf16.msra.mxu2 %v9303_v27  ;;  %v9078_v24 = vld [vmem:[#allocation13 + $0x220] sm:$0xf]  ;;  %v8839_v27 = vor.u32 %v10254_v11, %v8838_v10  ;;  %v9163_v10 = vor.u32 %v10332_v21, %v9160_v62  ;;  %v9016_v11 = vld [vmem:[#allocation13 + $0x1b0] sm:$0xf0]  ;;  %v10348_v21 = vld [vmem:[#allocation13 + $0x344] sm:$0xf] }
 0x38c   : > { %5223 = vmatpush.bf16.msra.mxu0 %v9031_v12  ;;  %5236 = vmatpush.bf16.msra.mxu1 %v9159_v25  ;;  %v10282_v12 = vld [vmem:[#allocation13 + $0x12c] sm:$0xf0] }
 0x38d   : > { %5210 = vmatpush.bf16.msrb.mxu3 %v8903_v33  ;;  %v10314_v25 = vld [vmem:[#allocation13 + $0x22c] sm:$0xf0]  ;;  %v8951_v31 = vor.u32 %v10282_v12, %v8950_v22  ;;  %v9206_v33 = vld [vmem:[#allocation13 + $0x320] sm:$0xf]  ;;  %v10264_v22 = vld [vmem:[#allocation13 + $0xa4] sm:$0xf] }
 0x38e   : > { %5249 = vmatpush.bf16.msra.mxu2 %v9287_v38  ;;  %v9079_v36 = vor.u32 %v10314_v25, %v9078_v24  ;;  %v9207_v47 = vor.u32 %v10346_v34, %v9206_v33  ;;  %v8888_v12 = vld [vmem:[#allocation13 + $0xb0] sm:$0xf0]  ;;  %v9147_v25 = vor.u32 %v10328_v13, %v9144_v14  ;;  %v10356_v33 = vld [vmem:[#allocation13 + $0x384] sm:$0xf] }
 0x38f   : > { %v9256_v34 = vld [vmem:[#allocation13 + $0x390] sm:$0xf0] }
 0x390   : > { %5224 = vmatpush.bf16.msra.mxu0 %v9015_v37  ;;  %5237 = vmatpush.bf16.msra.mxu1 %v9143_v41  ;;  %v8934_v37 = vld [vmem:[#allocation13 + $0x100] sm:$0xf]  ;;  %v10310_v41 = vld [vmem:[#allocation13 + $0x20c] sm:$0xf0]  ;;  %v9208_v13 = vld [vmem:[#allocation13 + $0x330] sm:$0xf0] }
 0x391   : > { %5211 = vmatpush.bf16.msrb.mxu3 %v8887_v52  ;;  %v9176_v52 = vld [vmem:[#allocation13 + $0x2f0] sm:$0xf0]  ;;  %v8935_v35 = vor.u32 %v10278_v39, %v8934_v37  ;;  %v9063_v61 = vor.u32 %v10310_v41, %v9062_v40  ;;  %v10320_v40 = vld [vmem:[#allocation13 + $0x264] sm:$0xf] }
 0x392   : > { %5250 = vmatpush.bf16.msra.mxu2 %v9271_v53  ;;  %v8806_v53 = vld [vmem:[#allocation13] sm:$0xf]  ;;  %v9179_v1 = vor.u32 %v10336_v45, %v9176_v52  ;;  %v8984_v39 = vld [vmem:[#allocation13 + $0x170] sm:$0xf0]  ;;  %v10316_v52 = vld [vmem:[#allocation13 + $0x244] sm:$0xf] }
 0x393   : > { %v8807_v2 = vor.u32 %v10246_v54, %v8806_v53  ;;  %v9112_v41 = vld [vmem:[#allocation13 + $0x270] sm:$0xf0] }
 0x394   : > { %5225 = vmatpush.bf16.msra.mxu0 %v8999_v55  ;;  %5238 = vmatpush.bf16.msra.mxu1 %v9127_v59  ;;  %v9096_v53 = vld [vmem:[#allocation13 + $0x250] sm:$0xf0] }
 0x395   : > { %5212 = vmatpush.bf16.msrb.mxu3 %v8871_v63  ;;  %v9304_v63 = vld [vmem:[#allocation13 + $0x3f0] sm:$0xf0] }
 0x396   : > { %5251 = vmatpush.bf16.msra.mxu2 %v9255_v0  ;;  %v9051_v0 = vor.u32 %v10304_v43, %v9048_v44  ;;  %v9259_v44 = vor.u32 %v10356_v33, %v9256_v34  ;;  %v10339_v33 = vld [vmem:[#allocation13 + $0x2f4] sm:$0xf0] }
 0x398   : > { %5226 = vmatpush.bf16.msra.mxu0 %v8983_v18  ;;  %5239 = vmatpush.bf16.msra.mxu1 %v9111_v17  ;;  %v9032_v18 = vld [vmem:[#allocation13 + $0x1d0] sm:$0xf0]  ;;  %v9191_v17 = vor.u32 %v10342_v57, %v9190_v56  ;;  %v10256_v56 = vld [vmem:[#allocation13 + $0x64] sm:$0xf] }
 0x399   : > { %5213 = vmatpush.bf16.msrb.mxu3 %v8855_v7  ;;  %v9288_v7 = vld [vmem:[#allocation13 + $0x3d0] sm:$0xf0] }
 0x39a   : > { %5252 = vmatpush.bf16.msra.mxu2 %v9239_v8  ;;  %v8856_v57 = vld [vmem:[#allocation13 + $0x70] sm:$0xf0] }
 0x39c   : > { %5227 = vmatpush.bf16.msra.mxu0 %v8967_v48  ;;  %5240 = vmatpush.bf16.msra.mxu1 %v9095_v20  ;;  %v10296_v48 = vld [vmem:[#allocation13 + $0x1a4] sm:$0xf] }
 0x39d   : > { %5214 = vmatpush.bf16.msrb.mxu3 %v8839_v27  ;;  %v9019_v24 = vor.u32 %v10296_v48, %v9016_v11  ;;  %v9000_v27 = vld [vmem:[#allocation13 + $0x190] sm:$0xf0]  ;;  %v10344_v48 = vld [vmem:[#allocation13 + $0x324] sm:$0xf] }
 0x39e   : > { %5253 = vmatpush.bf16.msra.mxu2 %v9223_v28  ;;  %v10324_v28 = vld [vmem:[#allocation13 + $0x284] sm:$0xf]  ;;  %v9211_v14 = vor.u32 %v10344_v48, %v9208_v13  ;;  %v10327_v13 = vld [vmem:[#allocation13 + $0x294] sm:$0xf0] }
 0x39f   : > { %v9131_v37 = vor.u32 %v10324_v28, %v9128_v49 }
 0x3a0   : > { %5228 = vmatpush.bf16.msra.mxu0 %v8951_v31  ;;  %5241 = vmatpush.bf16.msra.mxu1 %v9079_v36  ;;  %v10260_v31 = vld [vmem:[#allocation13 + $0x84] sm:$0xf] }
 0x3a1   : > { %5215 = vmatpush.bf16.msrb.mxu3 %v8823_v46  ;;  %v8875_v43 = vor.u32 %v10260_v31, %v8872_v32  ;;  %v9115_v46 = vor.u32 %v10320_v40, %v9112_v41  ;;  %v9182_v32 = vld [vmem:[#allocation13 + $0x2e8] sm:$0xf] }
 0x3a2   : > { %5254 = vmatpush.bf16.msra.mxu2 %v9207_v47  ;;  %v10284_v47 = vld [vmem:[#allocation13 + $0x144] sm:$0xf]  ;;  %v9183_v41 = vor.u32 %v10339_v33, %v9182_v32  ;;  %v9262_v33 = vld [vmem:[#allocation13 + $0x388] sm:$0xf] }
 0x3a4   : > { %5229 = vmatpush.bf16.msra.mxu0 %v8935_v35  ;;  %5242 = vmatpush.bf16.msra.mxu1 %v9063_v61  ;;  %v10280_v61 = vld [vmem:[#allocation13 + $0x124] sm:$0xf] }
 0x3a5   : > { %5216 = vmatpush.bf16.msrb.mxu3 %v8807_v2  ;;  %v9224_v2 = vld [vmem:[#allocation13 + $0x350] sm:$0xf0] }
 0x3a6   : > { %5255 = vmatpush.bf16.msra.mxu2 %v9191_v17  ;;  %v9227_v17 = vor.u32 %v10348_v21, %v9224_v2  ;;  %v8910_v2 = vld [vmem:[#allocation13 + $0xc8] sm:$0xf] }
 0x403   : > { %v4148_v50 = vpop.f32.mrf.mxu0 }
 0x404   : > { %v4161_v15 = vpop.f32.mrf.mxu1 }
 0x409   : > { %v4135_v19 = vpop.f32.mrf.mxu3 }
 0x40a   : > { %v4136_v9 = vadd.f32 %v4135_v19, %v3933_v6  ;;  %v4174_v23 = vpop.f32.mrf.mxu2  ;;  %v10364_v6 = vld [vmem:[#allocation13 + $0x3c4] sm:$0xf]  ;;  %v8907_v19 = vor.u32 %v10268_v4, %v8904_v5 }
 0x40b   : > { %v4150_v26 = vpop.f32.mrf.mxu0  ;;  %v9291_v20 = vor.u32 %v10364_v6, %v9288_v7  ;;  %v10308_v4 = vld [vmem:[#allocation13 + $0x204] sm:$0xf]  ;;  %v9064_v6 = vld [vmem:[#allocation13 + $0x210] sm:$0xf0] }
 0x40c   : > { %v4149_v29 = vadd.f32 %v4148_v50, %v4136_v9  ;;  %v4163_v30 = vpop.f32.mrf.mxu1  ;;  %v10368_v50 = vld [vmem:[#allocation13 + $0x3e4] sm:$0xf]  ;;  %v9067_v7 = vor.u32 %v10308_v4, %v9064_v6  ;;  %v9294_v4 = vld [vmem:[#allocation13 + $0x3c8] sm:$0xf] }
 0x40d   : > { %v9307_v42 = vor.u32 %v10368_v50, %v9304_v63  ;;  %v10360_v9 = vld [vmem:[#allocation13 + $0x3a4] sm:$0xf]  ;;  %v8955_v50 = vor.u32 %v10280_v61, %v8952_v16 }
 0x40e   : > { %v4162_v38 = vadd.f32 %v4161_v15, %v4149_v29  ;;  %v10300_v15 = vld [vmem:[#allocation13 + $0x1c4] sm:$0xf]  ;;  %v8891_v29 = vor.u32 %v10264_v22, %v8888_v12 }
 0x40f   : > { %v9035_v8 = vor.u32 %v10300_v15, %v9032_v18  ;;  %v10292_v26 = vld [vmem:[#allocation13 + $0x184] sm:$0xf]  ;;  %v8840_v18 = vld [vmem:[#allocation13 + $0x50] sm:$0xf0] }
 0x410   : > { %v4175_v51 = vadd.f32 %v4174_v23, %v4162_v38  ;;  %v9272_v23 = vld [vmem:[#allocation13 + $0x3b0] sm:$0xf0]  ;;  %v9003_v36 = vor.u32 %v10292_v26, %v9000_v27  ;;  %v10288_v38 = vld [vmem:[#allocation13 + $0x164] sm:$0xf] }
 0x411   : > { %v4137_v55 = vpop.f32.mrf.mxu3  ;;  %v9275_v30 = vor.u32 %v10360_v9, %v9272_v23  ;;  %v8987_v45 = vor.u32 %v10288_v38, %v8984_v39  ;;  %v10312_v63 = vld [vmem:[#allocation13 + $0x224] sm:$0xf]  ;;  %v9192_v9 = vld [vmem:[#allocation13 + $0x310] sm:$0xf0] }
 0x412   : > { %v4178_v59 = vpack.c.bf16 %v4175_v51, %v4175_v51  ;;  %v4176_v60 = vpop.f32.mrf.mxu2  ;;  %v8968_v51 = vld [vmem:[#allocation13 + $0x150] sm:$0xf0]  ;;  %v9099_v55 = vor.u32 %v10316_v52, %v9096_v53  ;;  %v10252_v15 = vld [vmem:[#allocation13 + $0x44] sm:$0xf] }
 0x413   : > { %v8971_v54 = vor.u32 %v10284_v47, %v8968_v51  ;;  %v9240_v60 = vld [vmem:[#allocation13 + $0x370] sm:$0xf0]  ;;  %v8843_v62 = vor.u32 %v10252_v15, %v8840_v18  ;;  %v10340_v12 = vld [vmem:[#allocation13 + $0x304] sm:$0xf]  ;;  %v9166_v47 = vld [vmem:[#allocation13 + $0x2c8] sm:$0xf] }
 0x414   : > { %4389 = vmatmul.bf16.vlgmr.msra.gmra.mxu3 %v4178_v59  ;;  %4402 = vmatmul.bf16.vlgmr.msrb.gmra.mxu0 %v4178_v59  ;;  %v9243_v35 = vor.u32 %v10352_v58, %v9240_v60  ;;  %v9195_v23 = vor.u32 %v10340_v12, %v9192_v9  ;;  %v10335_v51 = vld [vmem:[#allocation13 + $0x2d4] sm:$0xf0]  ;;  %v9150_v15 = vld [vmem:[#allocation13 + $0x2a8] sm:$0xf] }
 0x415   : > { %4415 = vmatmul.bf16.vlgmr.msrb.gmra.mxu1 %v4178_v59  ;;  %4428 = vmatmul.bf16.vlgmr.msrb.gmra.mxu2 %v4178_v59  ;;  %v8859_v59 = vor.u32 %v10256_v56, %v8856_v57  ;;  %v10371_v60 = vld [vmem:[#allocation13 + $0x3f4] sm:$0xf0]  ;;  %v9167_v16 = vor.u32 %v10335_v51, %v9166_v47  ;;  %v9278_v9 = vld [vmem:[#allocation13 + $0x3a8] sm:$0xf] }
 0x416   : > { %5274 = vmatpush.bf16.msrb.mxu0 %v9051_v0  ;;  %5287 = vmatpush.bf16.msrb.mxu1 %v9179_v1  ;;  %v9080_v0 = vld [vmem:[#allocation13 + $0x230] sm:$0xf0]  ;;  %v10331_v18 = vld [vmem:[#allocation13 + $0x2b4] sm:$0xf0]  ;;  %v8862_v51 = vld [vmem:[#allocation13 + $0x68] sm:$0xf] }
 0x417   : > { %5261 = vmatpush.bf16.msra.mxu3 %v8923_v3  ;;  %5300 = vmatpush.bf16.msrb.mxu2 %v9307_v42  ;;  %v9083_v1 = vor.u32 %v10312_v63, %v9080_v0  ;;  %v10276_v3 = vld [vmem:[#allocation13 + $0x104] sm:$0xf]  ;;  %v8936_v42 = vld [vmem:[#allocation13 + $0x110] sm:$0xf0]  ;;  %v10299_v63 = vld [vmem:[#allocation13 + $0x1b4] sm:$0xf0]  ;;  %v9151_v6 = vor.u32 %v10331_v18, %v9150_v15 }
 0x418   : > { %v8939_v5 = vor.u32 %v10276_v3, %v8936_v42  ;;  %v9230_v15 = vld [vmem:[#allocation13 + $0x348] sm:$0xf]  ;;  %v10351_v18 = vld [vmem:[#allocation13 + $0x354] sm:$0xf0] }
 0x41a   : > { %5275 = vmatpush.bf16.msrb.mxu0 %v9035_v8  ;;  %5288 = vmatpush.bf16.msrb.mxu1 %v9163_v10  ;;  %v10248_v8 = vld [vmem:[#allocation13 + $0x24] sm:$0xf]  ;;  %v8824_v10 = vld [vmem:[#allocation13 + $0x30] sm:$0xf0] }
 0x41b   : > { %5262 = vmatpush.bf16.msra.mxu3 %v8907_v19  ;;  %5301 = vmatpush.bf16.msrb.mxu2 %v9291_v20  ;;  %v8827_v11 = vor.u32 %v10248_v8, %v8824_v10  ;;  %v10244_v19 = vld [vmem:[#allocation13 + $0x4] sm:$0xf]  ;;  %v8808_v20 = vld [vmem:[#allocation13 + $0x10] sm:$0xf0]  ;;  %v10295_v8 = vld [vmem:[#allocation13 + $0x194] sm:$0xf0] }
 0x41c   : > { %v8811_v22 = vor.u32 %v10244_v19, %v8808_v20  ;;  %v8894_v20 = vld [vmem:[#allocation13 + $0xa8] sm:$0xf] }
 0x41e   : > { %5276 = vmatpush.bf16.msrb.mxu0 %v9019_v24  ;;  %5289 = vmatpush.bf16.msrb.mxu1 %v9147_v25  ;;  %v4211_v24 = vld [vmem:[%s11139_s8] sm:$0xf] }
 0x41f   : > { %5263 = vmatpush.bf16.msra.mxu3 %v8891_v29  ;;  %5302 = vmatpush.bf16.msrb.mxu2 %v9275_v30  ;;  %v4374_v25 = vperm.slane %v4211_v24, 1  ;;  %v4375_v26 = vperm.slane %v4211_v24, 2  ;;  %v9054_v29 = vld [vmem:[#allocation13 + $0x1e8] sm:$0xf]  ;;  %v10307_v30 = vld [vmem:[#allocation13 + $0x1f4] sm:$0xf0] }
 0x420   : > { %v4376_v38 = vperm.slane %v4211_v24, 3  ;;  %v9055_v39 = vor.u32 %v10307_v30, %v9054_v29  ;;  %v8878_v30 = vld [vmem:[#allocation13 + $0x88] sm:$0xf] }
 0x422   : > { %5277 = vmatpush.bf16.msrb.mxu0 %v9003_v36  ;;  %5290 = vmatpush.bf16.msrb.mxu1 %v9131_v37  ;;  %v4373_v36 = vperm.slane %v4211_v24, 0 }
 0x423   : > { %5264 = vmatpush.bf16.msra.mxu3 %v8875_v43  ;;  %5303 = vmatpush.bf16.msrb.mxu2 %v9259_v44  ;;  %v9038_v43 = vld [vmem:[#allocation13 + $0x1c8] sm:$0xf]  ;;  %v10303_v44 = vld [vmem:[#allocation13 + $0x1d4] sm:$0xf0] }
 0x424   : > { %v9039_v58 = vor.u32 %v10303_v44, %v9038_v43  ;;  %v9102_v44 = vld [vmem:[#allocation13 + $0x248] sm:$0xf] }
 0x426   : > { %5278 = vmatpush.bf16.msrb.mxu0 %v8987_v45  ;;  %5291 = vmatpush.bf16.msrb.mxu1 %v9115_v46 }
 0x427   : > { %5265 = vmatpush.bf16.msra.mxu3 %v8859_v59  ;;  %5304 = vmatpush.bf16.msrb.mxu2 %v9243_v35  ;;  %v9310_v59 = vld [vmem:[#allocation13 + $0x3e8] sm:$0xf] }
 0x42a   : > { %5279 = vmatpush.bf16.msrb.mxu0 %v8971_v54  ;;  %5292 = vmatpush.bf16.msrb.mxu1 %v9099_v55  ;;  %v8926_v54 = vld [vmem:[#allocation13 + $0xe8] sm:$0xf]  ;;  %v10275_v55 = vld [vmem:[#allocation13 + $0xf4] sm:$0xf0] }
 0x42b   : > { %5266 = vmatpush.bf16.msra.mxu3 %v8843_v62  ;;  %5305 = vmatpush.bf16.msrb.mxu2 %v9227_v17  ;;  %v9311_v62 = vor.u32 %v10371_v60, %v9310_v59  ;;  %v10271_v17 = vld [vmem:[#allocation13 + $0xd4] sm:$0xf0]  ;;  %v9086_v60 = vld [vmem:[#allocation13 + $0x228] sm:$0xf] }
 0x42c   : > { %v8911_v48 = vor.u32 %v10271_v17, %v8910_v2  ;;  %v10279_v17 = vld [vmem:[#allocation13 + $0x114] sm:$0xf0] }
 0x42e   : > { %5280 = vmatpush.bf16.msrb.mxu0 %v8955_v50  ;;  %5293 = vmatpush.bf16.msrb.mxu1 %v9083_v1  ;;  %v9022_v50 = vld [vmem:[#allocation13 + $0x1a8] sm:$0xf]  ;;  %v8927_v1 = vor.u32 %v10275_v55, %v8926_v54  ;;  %v10355_v55 = vld [vmem:[#allocation13 + $0x374] sm:$0xf0] }
 0x42f   : > { %5267 = vmatpush.bf16.msra.mxu3 %v8827_v11  ;;  %5306 = vmatpush.bf16.msrb.mxu2 %v9211_v14  ;;  %v9023_v42 = vor.u32 %v10299_v63, %v9022_v50  ;;  %v9134_v11 = vld [vmem:[#allocation13 + $0x288] sm:$0xf]  ;;  %v10255_v63 = vld [vmem:[#allocation13 + $0x54] sm:$0xf0] }
 0x430   : > { %v9135_v24 = vor.u32 %v10327_v13, %v9134_v11  ;;  %v9246_v54 = vld [vmem:[#allocation13 + $0x368] sm:$0xf]  ;;  %v10251_v13 = vld [vmem:[#allocation13 + $0x34] sm:$0xf0] }
 0x431   : > { %v8846_v50 = vld [vmem:[#allocation13 + $0x48] sm:$0xf] }
 0x432   : > { %5281 = vmatpush.bf16.msrb.mxu0 %v8939_v5  ;;  %5294 = vmatpush.bf16.msrb.mxu1 %v9067_v7  ;;  %v10367_v5 = vld [vmem:[#allocation13 + $0x3d4] sm:$0xf0]  ;;  %v9006_v7 = vld [vmem:[#allocation13 + $0x188] sm:$0xf] }
 0x433   : > { %5268 = vmatpush.bf16.msra.mxu3 %v8811_v22  ;;  %5307 = vmatpush.bf16.msrb.mxu2 %v9195_v23  ;;  %v9295_v19 = vor.u32 %v10367_v5, %v9294_v4  ;;  %v10267_v22 = vld [vmem:[#allocation13 + $0xb4] sm:$0xf0]  ;;  %v9007_v12 = vor.u32 %v10295_v8, %v9006_v7  ;;  %v8847_v5 = vor.u32 %v10255_v63, %v8846_v50  ;;  %v9056_v7 = vld [vmem:[#allocation13 + $0x1f8] sm:$0xf0]  ;;  %v10337_v8 = vld [vmem:[#allocation13 + $0x2ec] sm:$0xf] }
 0x434   : > { %v10363_v23 = vld [vmem:[#allocation13 + $0x3b4] sm:$0xf0]  ;;  %v8830_v11 = vld [vmem:[#allocation13 + $0x28] sm:$0xf]  ;;  %v10325_v63 = vld [vmem:[#allocation13 + $0x28c] sm:$0xf] }
 0x435   : > { %v9279_v29 = vor.u32 %v10363_v23, %v9278_v9  ;;  %v10311_v4 = vld [vmem:[#allocation13 + $0x214] sm:$0xf0]  ;;  %v10301_v9 = vld [vmem:[#allocation13 + $0x1cc] sm:$0xf] }
 0x491   : > { %v4403_v27 = vpop.f32.mrf.mxu0 }
 0x492   : > { %v4404_v28 = vadd.f32 %v4403_v27, %v4374_v25  ;;  %v4416_v49 = vpop.f32.mrf.mxu1  ;;  %v8990_v25 = vld [vmem:[#allocation13 + $0x168] sm:$0xf]  ;;  %v8895_v27 = vor.u32 %v10267_v22, %v8894_v20  ;;  %v10347_v20 = vld [vmem:[#allocation13 + $0x334] sm:$0xf0] }
 0x493   : > { %v4417_v31 = vadd.f32 %v4416_v49, %v4375_v26  ;;  %v10291_v26 = vld [vmem:[#allocation13 + $0x174] sm:$0xf0] }
 0x494   : > { %v11033_v34 = vmax.f32 %v4404_v28, 0.0  ;;  %v9118_v28 = vld [vmem:[#allocation13 + $0x268] sm:$0xf]  ;;  %v10323_v49 = vld [vmem:[#allocation13 + $0x274] sm:$0xf0]  ;;  %v8991_v32 = vor.u32 %v10291_v26, %v8990_v25 }
 0x495   : > { %v11035_v37 = vmax.f32 %v4417_v31, 0.0  ;;  %v10263_v31 = vld [vmem:[#allocation13 + $0x94] sm:$0xf0]  ;;  %v9040_v25 = vld [vmem:[#allocation13 + $0x1d8] sm:$0xf0] }
 0x496   : > { %v11039_v40 = vpack.c.bf16 %v11033_v34, %v11033_v34  ;;  %v8879_v43 = vor.u32 %v10263_v31, %v8878_v30  ;;  %v10333_v26 = vld [vmem:[#allocation13 + $0x2cc] sm:$0xf]  ;;  %v9198_v30 = vld [vmem:[#allocation13 + $0x308] sm:$0xf]  ;;  %v10343_v31 = vld [vmem:[#allocation13 + $0x314] sm:$0xf0] }
 0x497   : > { %v11043_v45 = vpack.c.bf16 %v11035_v37, %v11035_v37  ;;  %v4390_v46 = vpop.f32.mrf.mxu3 }
 0x498   : > { %v4391_v52 = vadd.f32 %v4390_v46, %v4373_v36  ;;  %v4429_v53 = vpop.f32.mrf.mxu2  ;;  %5230 = vmatmul.bf16.vlgmr.msra.gmra.mxu0 %v11039_v40  ;;  %v10359_v36 = vld [vmem:[#allocation13 + $0x394] sm:$0xf0] }
 0x499   : > { %v4430_v56 = vadd.f32 %v4429_v53, %v4376_v38  ;;  %5243 = vmatmul.bf16.vlgmr.msra.gmra.mxu1 %v11043_v45  ;;  %5326 = vmatpush.bf16.msra.mxu0 %v9055_v39  ;;  %v4405_v57 = vpop.f32.mrf.mxu0  ;;  %v9119_v38 = vor.u32 %v10323_v49, %v9118_v28  ;;  %v8974_v39 = vld [vmem:[#allocation13 + $0x148] sm:$0xf]  ;;  %v10319_v46 = vld [vmem:[#allocation13 + $0x254] sm:$0xf0]  ;;  %v9263_v47 = vor.u32 %v10359_v36, %v9262_v33  ;;  %v8928_v33 = vld [vmem:[#allocation13 + $0xf8] sm:$0xf0] }
 0x49a   : > { %v11047_v35 = vmax.f32 %v4391_v52, 0.0  ;;  %5339 = vmatpush.bf16.msra.mxu1 %v9183_v41  ;;  %v4418_v61 = vpop.f32.mrf.mxu1  ;;  %v10287_v41 = vld [vmem:[#allocation13 + $0x154] sm:$0xf0]  ;;  %v8958_v57 = vld [vmem:[#allocation13 + $0x128] sm:$0xf]  ;;  %v9043_v36 = vor.u32 %v10301_v9, %v9040_v25 }
 0x49b   : > { %v11049_v0 = vmax.f32 %v4430_v56, 0.0  ;;  %v10259_v52 = vld [vmem:[#allocation13 + $0x74] sm:$0xf0]  ;;  %v8975_v53 = vor.u32 %v10287_v41, %v8974_v39  ;;  %v9103_v56 = vor.u32 %v10319_v46, %v9102_v44  ;;  %v8814_v49 = vld [vmem:[#allocation13 + $0x8] sm:$0xf] }
 0x49c   : > { %v11053_v21 = vpack.c.bf16 %v11047_v35, %v11047_v35  ;;  %v8863_v59 = vor.u32 %v10259_v52, %v8862_v51  ;;  %v10315_v61 = vld [vmem:[#allocation13 + $0x234] sm:$0xf0]  ;;  %v9312_v39 = vld [vmem:[#allocation13 + $0x3f8] sm:$0xf0]  ;;  %v10297_v44 = vld [vmem:[#allocation13 + $0x1ac] sm:$0xf] }
 0x49d   : > { %v11057_v3 = vpack.c.bf16 %v11049_v0, %v11049_v0  ;;  %5327 = vmatpush.bf16.msra.mxu0 %v9039_v58  ;;  %v10283_v58 = vld [vmem:[#allocation13 + $0x134] sm:$0xf0]  ;;  %v9087_v2 = vor.u32 %v10315_v61, %v9086_v60  ;;  %v9024_v46 = vld [vmem:[#allocation13 + $0x1b8] sm:$0xf0]  ;;  %v10329_v52 = vld [vmem:[#allocation13 + $0x2ac] sm:$0xf] }
 0x49e   : > { %5340 = vmatpush.bf16.msra.mxu1 %v9167_v16  ;;  %5217 = vmatmul.bf16.vlgmr.msrb.gmra.mxu3 %v11053_v21  ;;  %v9247_v16 = vor.u32 %v10355_v55, %v9246_v54  ;;  %v10269_v55 = vld [vmem:[#allocation13 + $0xcc] sm:$0xf]  ;;  %v8976_v9 = vld [vmem:[#allocation13 + $0x158] sm:$0xf0] }
 0x49f   : > { %5256 = vmatmul.bf16.vlgmr.msra.gmra.mxu2 %v11057_v3  ;;  %5313 = vmatpush.bf16.msrb.mxu3 %v8927_v1  ;;  %v4392_v10 = vpop.f32.mrf.mxu3  ;;  %v8959_v1 = vor.u32 %v10283_v58, %v8958_v57  ;;  %v9027_v57 = vor.u32 %v10297_v44, %v9024_v46  ;;  %v10365_v58 = vld [vmem:[#allocation13 + $0x3cc] sm:$0xf]  ;;  %v9104_v25 = vld [vmem:[#allocation13 + $0x258] sm:$0xf0] }
 0x4a0   : > { %5352 = vmatpush.bf16.msra.mxu2 %v9311_v62  ;;  %v4431_v14 = vpop.f32.mrf.mxu2  ;;  %v8942_v62 = vld [vmem:[#allocation13 + $0x108] sm:$0xf]  ;;  %v9231_v10 = vor.u32 %v10351_v18, %v9230_v15  ;;  %v10293_v61 = vld [vmem:[#allocation13 + $0x18c] sm:$0xf]  ;;  %v8848_v44 = vld [vmem:[#allocation13 + $0x58] sm:$0xf0] }
 0x4a1   : > { %5328 = vmatpush.bf16.msra.mxu0 %v9023_v42  ;;  %v9070_v42 = vld [vmem:[#allocation13 + $0x208] sm:$0xf]  ;;  %v8943_v14 = vor.u32 %v10279_v17, %v8942_v62  ;;  %v10265_v18 = vld [vmem:[#allocation13 + $0xac] sm:$0xf]  ;;  %v8896_v62 = vld [vmem:[#allocation13 + $0xb8] sm:$0xf0] }
 0x4a2   : > { %5341 = vmatpush.bf16.msra.mxu1 %v9151_v6  ;;  %v10305_v6 = vld [vmem:[#allocation13 + $0x1ec] sm:$0xf]  ;;  %v9071_v22 = vor.u32 %v10311_v4, %v9070_v42  ;;  %v9280_v42 = vld [vmem:[#allocation13 + $0x3b8] sm:$0xf0] }
 0x4a3   : > { %5314 = vmatpush.bf16.msrb.mxu3 %v8911_v48  ;;  %v9184_v48 = vld [vmem:[#allocation13 + $0x2f8] sm:$0xf0]  ;;  %v10361_v17 = vld [vmem:[#allocation13 + $0x3ac] sm:$0xf] }
 0x4a4   : > { %5353 = vmatpush.bf16.msra.mxu2 %v9295_v19  ;;  %v9214_v19 = vld [vmem:[#allocation13 + $0x328] sm:$0xf]  ;;  %v9187_v23 = vor.u32 %v10337_v8, %v9184_v48  ;;  %v10321_v8 = vld [vmem:[#allocation13 + $0x26c] sm:$0xf]  ;;  %v9283_v48 = vor.u32 %v10361_v17, %v9280_v42  ;;  %v9200_v17 = vld [vmem:[#allocation13 + $0x318] sm:$0xf0] }
 0x4a5   : > { %5329 = vmatpush.bf16.msra.mxu0 %v9007_v12  ;;  %v9059_v12 = vor.u32 %v10305_v6, %v9056_v7  ;;  %v9215_v28 = vor.u32 %v10347_v20, %v9214_v19  ;;  %v8992_v6 = vld [vmem:[#allocation13 + $0x178] sm:$0xf0]  ;;  %v8899_v7 = vor.u32 %v10265_v18, %v8896_v62  ;;  %v10357_v19 = vld [vmem:[#allocation13 + $0x38c] sm:$0xf] }
 0x4a6   : > { %5342 = vmatpush.bf16.msra.mxu1 %v9135_v24  ;;  %v8831_v24 = vor.u32 %v10251_v13, %v8830_v11  ;;  %v10261_v11 = vld [vmem:[#allocation13 + $0x8c] sm:$0xf]  ;;  %v8880_v13 = vld [vmem:[#allocation13 + $0x98] sm:$0xf0] }
 0x4a7   : > { %5315 = vmatpush.bf16.msrb.mxu3 %v8895_v27  ;;  %v9168_v27 = vld [vmem:[#allocation13 + $0x2d8] sm:$0xf0]  ;;  %v10245_v18 = vld [vmem:[#allocation13 + $0xc] sm:$0xf] }
 0x4a8   : > { %5354 = vmatpush.bf16.msra.mxu2 %v9279_v29  ;;  %5282 = vmatmul.bf16.vlgmr.msrb.gmra.mxu0 %v11039_v40  ;;  %v10247_v29 = vld [vmem:[#allocation13 + $0x14] sm:$0xf0]  ;;  %v9171_v41 = vor.u32 %v10333_v26, %v9168_v27  ;;  %v9264_v20 = vld [vmem:[#allocation13 + $0x398] sm:$0xf0]  ;;  %v10257_v27 = vld [vmem:[#allocation13 + $0x6c] sm:$0xf] }
 0x4a9   : > { %5295 = vmatmul.bf16.vlgmr.msrb.gmra.mxu1 %v11043_v45  ;;  %5330 = vmatpush.bf16.msra.mxu0 %v8991_v32  ;;  %v10273_v32 = vld [vmem:[#allocation13 + $0xec] sm:$0xf]  ;;  %v9267_v26 = vor.u32 %v10357_v19, %v9264_v20  ;;  %v8816_v62 = vld [vmem:[#allocation13 + $0x18] sm:$0xf0] }
 0x4aa   : > { %5343 = vmatpush.bf16.msra.mxu1 %v9119_v38  ;;  %v10369_v38 = vld [vmem:[#allocation13 + $0x3ec] sm:$0xf]  ;;  %v8931_v51 = vor.u32 %v10273_v32, %v8928_v33  ;;  %v8960_v33 = vld [vmem:[#allocation13 + $0x138] sm:$0xf0]  ;;  %v8819_v42 = vor.u32 %v10245_v18, %v8816_v62 }
 0x4ab   : > { %5316 = vmatpush.bf16.msrb.mxu3 %v8879_v43  ;;  %v8815_v43 = vor.u32 %v10247_v29, %v8814_v49  ;;  %v9315_v54 = vor.u32 %v10369_v38, %v9312_v39  ;;  %v10353_v29 = vld [vmem:[#allocation13 + $0x36c] sm:$0xf]  ;;  %v9088_v39 = vld [vmem:[#allocation13 + $0x238] sm:$0xf0] }
 0x4ac   : > { %5355 = vmatpush.bf16.msra.mxu2 %v9263_v47  ;;  %v9199_v47 = vor.u32 %v10343_v31, %v9198_v30  ;;  %v9248_v30 = vld [vmem:[#allocation13 + $0x378] sm:$0xf0]  ;;  %v10281_v32 = vld [vmem:[#allocation13 + $0x12c] sm:$0xf] }
 0x4ad   : > { %5331 = vmatpush.bf16.msra.mxu0 %v8975_v53  ;;  %v9152_v53 = vld [vmem:[#allocation13 + $0x2b8] sm:$0xf0]  ;;  %v10313_v38 = vld [vmem:[#allocation13 + $0x22c] sm:$0xf]  ;;  %v8963_v46 = vor.u32 %v10281_v32, %v8960_v33 }
 0x4ae   : > { %5344 = vmatpush.bf16.msra.mxu1 %v9103_v56  ;;  %5269 = vmatmul.bf16.vlgmr.msra.gmra.mxu3 %v11053_v21  ;;  %v8912_v56 = vld [vmem:[#allocation13 + $0xd8] sm:$0xf0]  ;;  %v9155_v60 = vor.u32 %v10329_v52, %v9152_v53  ;;  %v9091_v52 = vor.u32 %v10313_v38, %v9088_v39  ;;  %v10277_v53 = vld [vmem:[#allocation13 + $0x10c] sm:$0xf] }
 0x4af   : > { %5308 = vmatmul.bf16.vlgmr.msrb.gmra.mxu2 %v11057_v3  ;;  %5317 = vmatpush.bf16.msrb.mxu3 %v8863_v59  ;;  %v9296_v59 = vld [vmem:[#allocation13 + $0x3d8] sm:$0xf0]  ;;  %v8915_v50 = vor.u32 %v10269_v55, %v8912_v56  ;;  %v10309_v56 = vld [vmem:[#allocation13 + $0x20c] sm:$0xf] }
 0x4b0   : > { %5356 = vmatpush.bf16.msra.mxu2 %v9247_v16  ;;  %v9008_v16 = vld [vmem:[#allocation13 + $0x198] sm:$0xf0]  ;;  %v9299_v15 = vor.u32 %v10365_v58, %v9296_v59  ;;  %v10249_v59 = vld [vmem:[#allocation13 + $0x2c] sm:$0xf] }
 0x4b1   : > { %5332 = vmatpush.bf16.msra.mxu0 %v8959_v1  ;;  %v9136_v1 = vld [vmem:[#allocation13 + $0x298] sm:$0xf0] }
 0x4b2   : > { %5345 = vmatpush.bf16.msra.mxu1 %v9087_v2  ;;  %v9011_v2 = vor.u32 %v10293_v61, %v9008_v16  ;;  %v9139_v4 = vor.u32 %v10325_v63, %v9136_v1  ;;  %v10345_v16 = vld [vmem:[#allocation13 + $0x32c] sm:$0xf] }
 0x4b3   : > { %5318 = vmatpush.bf16.msrb.mxu3 %v8847_v5  ;;  %v10289_v5 = vld [vmem:[#allocation13 + $0x16c] sm:$0xf] }
 0x4b4   : > { %5357 = vmatpush.bf16.msra.mxu2 %v9231_v10  ;;  %v9120_v10 = vld [vmem:[#allocation13 + $0x278] sm:$0xf0] }
 0x4b5   : > { %5333 = vmatpush.bf16.msra.mxu0 %v8943_v14  ;;  %v8995_v14 = vor.u32 %v10289_v5, %v8992_v6 }
 0x4b6   : > { %5346 = vmatpush.bf16.msra.mxu1 %v9071_v22  ;;  %v9123_v22 = vor.u32 %v10321_v8, %v9120_v10 }
 0x4b7   : > { %5319 = vmatpush.bf16.msrb.mxu3 %v8831_v24  ;;  %v10317_v24 = vld [vmem:[#allocation13 + $0x24c] sm:$0xf] }
 0x4b8   : > { %5358 = vmatpush.bf16.msra.mxu2 %v9215_v28  ;;  %5334 = vmatmul.bf16.vlgmr.msra.gmra.mxu0 %v11039_v40  ;;  %v8864_v28 = vld [vmem:[#allocation13 + $0x78] sm:$0xf0]  ;;  %v9107_v31 = vor.u32 %v10317_v24, %v9104_v25 }
 0x4b9   : > { %5378 = vmatpush.bf16.msrb.mxu0 %v9059_v12  ;;  %5347 = vmatmul.bf16.vlgmr.msra.gmra.mxu1 %v11043_v45  ;;  %v10285_v12 = vld [vmem:[#allocation13 + $0x14c] sm:$0xf] }
 0x4ba   : > { %5391 = vmatpush.bf16.msrb.mxu1 %v9187_v23  ;;  %v8883_v23 = vor.u32 %v10261_v11, %v8880_v13  ;;  %v8979_v49 = vor.u32 %v10285_v12, %v8976_v9 }
 0x4bb   : > { %5320 = vmatpush.bf16.msrb.mxu3 %v8815_v43  ;;  %v10253_v43 = vld [vmem:[#allocation13 + $0x4c] sm:$0xf] }
 0x4bc   : > { %5359 = vmatpush.bf16.msra.mxu2 %v9199_v47  ;;  %v10349_v47 = vld [vmem:[#allocation13 + $0x34c] sm:$0xf]  ;;  %v8851_v55 = vor.u32 %v10253_v43, %v8848_v44 }
 0x4bd   : > { %5379 = vmatpush.bf16.msrb.mxu0 %v9043_v36  ;;  %v8867_v36 = vor.u32 %v10257_v27, %v8864_v28 }
 0x4be   : > { %5392 = vmatpush.bf16.msrb.mxu1 %v9171_v41  ;;  %5321 = vmatmul.bf16.vlgmr.msrb.gmra.mxu3 %v11053_v21  ;;  %v9251_v41 = vor.u32 %v10353_v29, %v9248_v30 }
 0x4bf   : > { %5365 = vmatpush.bf16.msra.mxu3 %v8931_v51  ;;  %5360 = vmatmul.bf16.vlgmr.msra.gmra.mxu2 %v11057_v3  ;;  %v9232_v51 = vld [vmem:[#allocation13 + $0x358] sm:$0xf0] }
 0x4c0   : > { %5404 = vmatpush.bf16.msrb.mxu2 %v9315_v54  ;;  %v8944_v54 = vld [vmem:[#allocation13 + $0x118] sm:$0xf0]  ;;  %v9235_v58 = vor.u32 %v10349_v47, %v9232_v51 }
 0x4c1   : > { %5380 = vmatpush.bf16.msrb.mxu0 %v9027_v57  ;;  %v9072_v57 = vld [vmem:[#allocation13 + $0x218] sm:$0xf0]  ;;  %v8947_v61 = vor.u32 %v10277_v53, %v8944_v54 }
 0x4c2   : > { %5393 = vmatpush.bf16.msrb.mxu1 %v9155_v60  ;;  %v8832_v60 = vld [vmem:[#allocation13 + $0x38] sm:$0xf0]  ;;  %v9075_v63 = vor.u32 %v10309_v56, %v9072_v57 }
 0x4c3   : > { %5366 = vmatpush.bf16.msra.mxu3 %v8915_v50  ;;  %v9216_v50 = vld [vmem:[#allocation13 + $0x338] sm:$0xf0]  ;;  %v8835_v1 = vor.u32 %v10249_v59, %v8832_v60 }
 0x4c4   : > { %5405 = vmatpush.bf16.msrb.mxu2 %v9299_v15  ;;  %v9219_v15 = vor.u32 %v10345_v16, %v9216_v50 }
 0x4c5   : > { %5381 = vmatpush.bf16.msrb.mxu0 %v9011_v2  ;;  %v10341_v2 = vld [vmem:[#allocation13 + $0x30c] sm:$0xf] }
 0x4c6   : > { %5394 = vmatpush.bf16.msrb.mxu1 %v9139_v4  ;;  %v9203_v4 = vor.u32 %v10341_v2, %v9200_v17 }
 0x4c7   : > { %5367 = vmatpush.bf16.msra.mxu3 %v8899_v7 }
 0x4c8   : > { %5406 = vmatpush.bf16.msrb.mxu2 %v9283_v48 }
 0x4c9   : > { %5382 = vmatpush.bf16.msrb.mxu0 %v8995_v14 }
 0x4ca   : > { %5395 = vmatpush.bf16.msrb.mxu1 %v9123_v22 }
 0x4cb   : > { %5368 = vmatpush.bf16.msra.mxu3 %v8883_v23 }
 0x4cc   : > { %5407 = vmatpush.bf16.msrb.mxu2 %v9267_v26 }
 0x4cd   : > { %5383 = vmatpush.bf16.msrb.mxu0 %v8979_v49 }
 0x4ce   : > { %5396 = vmatpush.bf16.msrb.mxu1 %v9107_v31 }
 0x4cf   : > { %5369 = vmatpush.bf16.msra.mxu3 %v8867_v36 }
 0x4d0   : > { %5408 = vmatpush.bf16.msrb.mxu2 %v9251_v41 }
 0x4d1   : > { %5384 = vmatpush.bf16.msrb.mxu0 %v8963_v46 }
 0x4d2   : > { %5397 = vmatpush.bf16.msrb.mxu1 %v9091_v52 }
 0x4d3   : > { %5370 = vmatpush.bf16.msra.mxu3 %v8851_v55 }
 0x4d4   : > { %5409 = vmatpush.bf16.msrb.mxu2 %v9235_v58 }
 0x4d5   : > { %5385 = vmatpush.bf16.msrb.mxu0 %v8947_v61 }
 0x4d6   : > { %5398 = vmatpush.bf16.msrb.mxu1 %v9075_v63 }
 0x4d7   : > { %5371 = vmatpush.bf16.msra.mxu3 %v8835_v1 }
 0x4d8   : > { %5410 = vmatpush.bf16.msrb.mxu2 %v9219_v15  ;;  %5386 = vmatmul.bf16.vlgmr.msrb.gmra.mxu0 %v11039_v40  ;;  %v5421_v40 = vld [vmem:[%s11141_s10] sm:$0xf] }
 0x4d9   : > { %5399 = vmatmul.bf16.vlgmr.msrb.gmra.mxu1 %v11043_v45  ;;  %v5423_v20 = vperm.slane %v5421_v40, 0  ;;  %v5425_v52 = vperm.slane %v5421_v40, 2  ;;  %v5426_v15 = vperm.slane %v5421_v40, 3 }
 0x4db   : > { %5372 = vmatpush.bf16.msra.mxu3 %v8819_v42  ;;  %v10387_v42 = vld [vmem:[#allocation6 + $0x438] sm:$0xff] }
 0x4dc   : > { %5411 = vmatpush.bf16.msrb.mxu2 %v9203_v4  ;;  %v10379_v4 = vld [vmem:[#allocation6 + $0x3f8] sm:$0xff] }
 0x4dd   : > { %5633 = vmatpush.bf16.msra.mxu0 %v10379_v4 }
 0x4de   : > { %5373 = vmatmul.bf16.vlgmr.msra.gmra.mxu3 %v11053_v21 }
 0x4df   : > { %5412 = vmatmul.bf16.vlgmr.msrb.gmra.mxu2 %v11057_v3  ;;  %5571 = vmatpush.bf16.msrb.mxu3 %v10387_v42 }
 0x515   : > { %v5231_v5 = vpop.f32.mrf.mxu0 }
 0x516   : > { %v5244_v6 = vpop.f32.mrf.mxu1 }
 0x51d   : > { %v5233_v7 = vpop.f32.mrf.mxu0 }
 0x51e   : > { %v5246_v8 = vpop.f32.mrf.mxu1  ;;  %v10378_v7 = vld [vmem:[#allocation6 + $0x3f0] sm:$0xff] }
 0x51f   : > { %v10403_v8 = vld [vmem:[#allocation6 + $0x4b8] sm:$0xff]  ;;  %5634 = vmatpush.bf16.msra.mxu0 %v10378_v7 }
 0x520   : > { %5800 = vmatpush.bf16.msra.mxu2 %v10403_v8 }
 0x521   : > { %v5218_v10 = vpop.f32.mrf.mxu3 }
 0x522   : > { %v5232_v48 = vadd.f32 %v5231_v5, %v5218_v10  ;;  %v5257_v11 = vpop.f32.mrf.mxu2  ;;  %v10395_v5 = vld [vmem:[#allocation6 + $0x478] sm:$0xff]  ;;  %v10394_v10 = vld [vmem:[#allocation6 + $0x470] sm:$0xff] }
 0x523   : > { %5715 = vmatpush.bf16.msra.mxu1 %v10395_v5 }
 0x524   : > { %v5245_v13 = vadd.f32 %v5244_v6, %v5232_v48  ;;  %v10386_v6 = vld [vmem:[#allocation6 + $0x430] sm:$0xff]  ;;  %v10385_v48 = vld [vmem:[#allocation6 + $0x428] sm:$0xff] }
 0x525   : > { %v5283_v14 = vpop.f32.mrf.mxu0  ;;  %5572 = vmatpush.bf16.msrb.mxu3 %v10386_v6 }
 0x526   : > { %v5258_v45 = vadd.f32 %v5257_v11, %v5245_v13  ;;  %v5296_v19 = vpop.f32.mrf.mxu1  ;;  %v10377_v11 = vld [vmem:[#allocation6 + $0x3e8] sm:$0xff] }
 0x527   : > { %5716 = vmatpush.bf16.msra.mxu1 %v10394_v10  ;;  %v10393_v13 = vld [vmem:[#allocation6 + $0x468] sm:$0xff]  ;;  %5635 = vmatpush.bf16.msra.mxu0 %v10377_v11 }
 0x528   : > { %v5417_v21 = vadd.f32 %v5258_v45, %v11047_v35  ;;  %v5424_v35 = vperm.slane %v5421_v40, 1  ;;  %v10384_v45 = vld [vmem:[#allocation6 + $0x420] sm:$0xff]  ;;  %v10580_v10 = vld [vmem:[%s11133_s2 + $0x3] ss:$0 sm:$0xff] }
 0x529   : > { %v5220_v22 = vpop.f32.mrf.mxu3  ;;  %5573 = vmatpush.bf16.msrb.mxu3 %v10385_v48 }
 0x52a   : > { %v5259_v3 = vpop.f32.mrf.mxu2  ;;  %v5431_v12 = vadd.f32 %v5423_v20, %v5417_v21  ;;  %v10392_v20 = vld [vmem:[#allocation6 + $0x460] sm:$0xff]  ;;  %v10383_v22 = vld [vmem:[#allocation6 + $0x418] sm:$0xff] }
 0x52b   : > { %5717 = vmatpush.bf16.msra.mxu1 %v10393_v13  ;;  %v10400_v21 = vld [vmem:[#allocation6 + $0x4a0] sm:$0xff]  ;;  %v10375_v3 = vld [vmem:[#allocation6 + $0x3d8] sm:$0xff] }
 0x52c   : > { %v5435_v9 = vmax.f32 %v5431_v12, 0.0 }
 0x52d   : > { %v5285_v23 = vpop.f32.mrf.mxu0  ;;  %5574 = vmatpush.bf16.msrb.mxu3 %v10384_v45 }
 0x52e   : > { %v5298_v24 = vpop.f32.mrf.mxu1  ;;  %5442 = vrot.lane.b32.xlu0 %v5435_v9, %s10775_s22  ;;  %v10391_v23 = vld [vmem:[#allocation6 + $0x458] sm:$0xff] }
 0x52f   : > { %5718 = vmatpush.bf16.msra.mxu1 %v10392_v20  ;;  %v10382_v24 = vld [vmem:[#allocation6 + $0x410] sm:$0xff] }
 0x531   : > { %v5270_v25 = vpop.f32.mrf.mxu3  ;;  %5575 = vmatpush.bf16.msrb.mxu3 %v10383_v22 }
 0x532   : > { %v5284_v26 = vadd.f32 %v5283_v14, %v5270_v25  ;;  %v5309_v27 = vpop.f32.mrf.mxu2  ;;  %v10401_v14 = vld [vmem:[#allocation6 + $0x4a8] sm:$0xff]  ;;  %v10374_v25 = vld [vmem:[#allocation6 + $0x3d0] sm:$0xff] }
 0x533   : > { %5719 = vmatpush.bf16.msra.mxu1 %v10391_v23  ;;  %v10435_v23 = vld [vmem:[#allocation6 + $0x5b8] sm:$0xff] }
 0x534   : > { %v5297_v28 = vadd.f32 %v5296_v19, %v5284_v26  ;;  %v10376_v19 = vld [vmem:[#allocation6 + $0x3e0] sm:$0xff]  ;;  %v10381_v26 = vld [vmem:[#allocation6 + $0x408] sm:$0xff] }
 0x535   : > { %v5335_v49 = vpop.f32.mrf.mxu0  ;;  %5636 = vmatpush.bf16.msra.mxu0 %v10376_v19  ;;  %5576 = vmatpush.bf16.msrb.mxu3 %v10382_v24  ;;  %v10426_v24 = vld [vmem:[#allocation6 + $0x570] sm:$0xff] }
 0x536   : > { %v5310_v29 = vadd.f32 %v5309_v27, %v5297_v28  ;;  %v5348_v30 = vpop.f32.mrf.mxu1  ;;  %5447 = vrot.lane.b32.xlu0 %v5435_v9, %s10776_s28 }
 0x538   : > { %v5418_v31 = vadd.f32 %v5310_v29, %v11033_v34  ;;  %v10380_v29 = vld [vmem:[#allocation6 + $0x400] sm:$0xff] }
 0x539   : > { %v5272_v32 = vpop.f32.mrf.mxu3  ;;  %5637 = vmatpush.bf16.msra.mxu0 %v10375_v3  ;;  %5577 = vmatpush.bf16.msrb.mxu3 %v10381_v26  ;;  %v10443_v26 = vld [vmem:[#allocation6 + $0x5f8] sm:$0xff] }
 0x53a   : > { %v5311_v33 = vpop.f32.mrf.mxu2  ;;  %v5432_v36 = vadd.f32 %v5424_v35, %v5418_v31  ;;  %v10399_v35 = vld [vmem:[#allocation6 + $0x498] sm:$0xff]  ;;  %v10373_v32 = vld [vmem:[#allocation6 + $0x3c8] sm:$0xff] }
 0x53b   : > { %v10411_v31 = vld [vmem:[#allocation6 + $0x4f8] sm:$0xff]  ;;  %v10389_v33 = vld [vmem:[#allocation6 + $0x448] sm:$0xff] }
 0x53c   : > { %v5436_v38 = vmax.f32 %v5432_v36, 0.0  ;;  %v10398_v36 = vld [vmem:[#allocation6 + $0x490] sm:$0xff] }
 0x53d   : > { %v5337_v39 = vpop.f32.mrf.mxu0  ;;  %5638 = vmatpush.bf16.msra.mxu0 %v10374_v25  ;;  %5578 = vmatpush.bf16.msrb.mxu3 %v10380_v29  ;;  %v10418_v25 = vld [vmem:[#allocation6 + $0x530] sm:$0xff]  ;;  %v10417_v29 = vld [vmem:[#allocation6 + $0x528] sm:$0xff] }
 0x53e   : > { %v5350_v41 = vpop.f32.mrf.mxu1  ;;  %5452 = vrot.lane.b32.xlu1 %v5436_v38, %s10775_s22  ;;  %v10372_v39 = vld [vmem:[#allocation6 + $0x3c0] sm:$0xff] }
 0x53f   : > { %v10388_v41 = vld [vmem:[#allocation6 + $0x440] sm:$0xff] }
 0x541   : > { %v5322_v43 = vpop.f32.mrf.mxu3  ;;  %5883 = vmatpush.bf16.msra.mxu3 %v10411_v31  ;;  %5639 = vmatpush.bf16.msra.mxu0 %v10373_v32  ;;  %v10424_v31 = vld [vmem:[#allocation6 + $0x560] sm:$0xff] }
 0x542   : > { %v5336_v44 = vadd.f32 %v5335_v49, %v5322_v43  ;;  %v5361_v46 = vpop.f32.mrf.mxu2  ;;  %v10397_v43 = vld [vmem:[#allocation6 + $0x488] sm:$0xff]  ;;  %v10416_v32 = vld [vmem:[#allocation6 + $0x520] sm:$0xff] }
 0x544   : > { %v5349_v47 = vadd.f32 %v5348_v30, %v5336_v44  ;;  %v10390_v30 = vld [vmem:[#allocation6 + $0x450] sm:$0xff]  ;;  %v10409_v44 = vld [vmem:[#allocation6 + $0x4e8] sm:$0xff] }
 0x545   : > { %5720 = vmatpush.bf16.msra.mxu1 %v10390_v30  ;;  %5640 = vmatpush.bf16.msra.mxu0 %v10372_v39  ;;  %v10433_v30 = vld [vmem:[#allocation6 + $0x5a8] sm:$0xff]  ;;  %v10415_v39 = vld [vmem:[#allocation6 + $0x518] sm:$0xff] }
 0x546   : > { %v5362_v51 = vadd.f32 %v5361_v46, %v5349_v47  ;;  %5456 = vrot.lane.b32.xlu1 %v5436_v38, %s10776_s28  ;;  %v10410_v38 = vld [vmem:[#allocation6 + $0x4f0] sm:$0xff]  ;;  %v10396_v46 = vld [vmem:[#allocation6 + $0x480] sm:$0xff] }
 0x547   : > { %5884 = vmatpush.bf16.msra.mxu3 %v10410_v38  ;;  %v10408_v47 = vld [vmem:[#allocation6 + $0x4e0] sm:$0xff]  ;;  %v10423_v38 = vld [vmem:[#allocation6 + $0x558] sm:$0xff] }
 0x548   : > { %v5419_v53 = vadd.f32 %v5362_v51, %v11035_v37  ;;  %v10407_v51 = vld [vmem:[#allocation6 + $0x4d8] sm:$0xff] }
 0x549   : > { %v5324_v54 = vpop.f32.mrf.mxu3  ;;  %5721 = vmatpush.bf16.msra.mxu1 %v10389_v33  ;;  %v10432_v33 = vld [vmem:[#allocation6 + $0x5a0] sm:$0xff] }
 0x54a   : > { %v5363_v34 = vpop.f32.mrf.mxu2  ;;  %v5433_v55 = vadd.f32 %v5425_v52, %v5419_v53  ;;  %v10406_v52 = vld [vmem:[#allocation6 + $0x4d0] sm:$0xff]  ;;  %v10405_v53 = vld [vmem:[#allocation6 + $0x4c8] sm:$0xff]  ;;  %v10404_v54 = vld [vmem:[#allocation6 + $0x4c0] sm:$0xff] }
 0x54b   : > { %5885 = vmatpush.bf16.msra.mxu3 %v10409_v44  ;;  %v10414_v44 = vld [vmem:[#allocation6 + $0x510] sm:$0xff] }
 0x54c   : > { %v5437_v56 = vmax.f32 %v5433_v55, 0.0 }
 0x54d   : > { %5722 = vmatpush.bf16.msra.mxu1 %v10388_v41  ;;  %v10431_v41 = vld [vmem:[#allocation6 + $0x598] sm:$0xff] }
 0x54e   : > { %5461 = vrot.lane.b32.xlu2 %v5437_v56, %s10775_s22 }
 0x54f   : > { %5886 = vmatpush.bf16.msra.mxu3 %v10408_v47 }
 0x553   : > { %5887 = vmatpush.bf16.msra.mxu3 %v10407_v51  ;;  %v10420_v51 = vld [vmem:[#allocation6 + $0x540] sm:$0xff] }
 0x555   : > { %v5387_v57 = vpop.f32.mrf.mxu0 }
 0x556   : > { %v5400_v58 = vpop.f32.mrf.mxu1  ;;  %5465 = vrot.lane.b32.xlu2 %v5437_v56, %s10776_s28 }
 0x557   : > { %5888 = vmatpush.bf16.msra.mxu3 %v10406_v52  ;;  %v10430_v52 = vld [vmem:[#allocation6 + $0x590] sm:$0xff] }
 0x55b   : > { %5889 = vmatpush.bf16.msra.mxu3 %v10405_v53  ;;  %v10439_v53 = vld [vmem:[#allocation6 + $0x5d8] sm:$0xff] }
 0x55d   : > { %v5389_v59 = vpop.f32.mrf.mxu0 }
 0x55e   : > { %v5402_v60 = vpop.f32.mrf.mxu1 }
 0x55f   : > { %5890 = vmatpush.bf16.msra.mxu3 %v10404_v54  ;;  %v10451_v54 = vld [vmem:[#allocation6 + $0x638] sm:$0xff] }
 0x561   : > { %v5374_v61 = vpop.f32.mrf.mxu3 }
 0x562   : > { %v5388_v16 = vadd.f32 %v5387_v57, %v5374_v61  ;;  %v5413_v50 = vpop.f32.mrf.mxu2 }
 0x564   : > { %v5401_v63 = vadd.f32 %v5400_v58, %v5388_v16 }
 0x566   : > { %v5414_v1 = vadd.f32 %v5413_v50, %v5401_v63 }
 0x568   : > { %v5420_v37 = vadd.f32 %v5414_v1, %v11049_v0  ;;  %v10402_v0 = vld [vmem:[#allocation6 + $0x4b0] sm:$0xff] }
 0x569   : > { %v5376_v18 = vpop.f32.mrf.mxu3  ;;  %5801 = vmatpush.bf16.msra.mxu2 %v10402_v0 }
 0x56a   : > { %v5415_v62 = vpop.f32.mrf.mxu2  ;;  %v5434_v2 = vadd.f32 %v5426_v15, %v5420_v37 }
 0x56c   : > { %v5438_v17 = vmax.f32 %v5434_v2, 0.0 }
 0x56d   : > { %5802 = vmatpush.bf16.msra.mxu2 %v10401_v14 }
 0x56e   : > { %5474 = vrot.lane.b32.xlu1 %v5438_v17, %s10776_s28  ;;  %5470 = vrot.lane.b32.xlu0 %v5438_v17, %s10775_s22 }
 0x571   : > { %5803 = vmatpush.bf16.msra.mxu2 %v10400_v21 }
 0x575   : > { %5804 = vmatpush.bf16.msra.mxu2 %v10399_v35  ;;  %v10441_v35 = vld [vmem:[#allocation6 + $0x5e8] sm:$0xff] }
 0x579   : > { %5805 = vmatpush.bf16.msra.mxu2 %v10398_v36  ;;  %v10440_v36 = vld [vmem:[#allocation6 + $0x5e0] sm:$0xff] }
 0x57d   : > { %5806 = vmatpush.bf16.msra.mxu2 %v10397_v43  ;;  %v10422_v43 = vld [vmem:[#allocation6 + $0x550] sm:$0xff] }
 0x581   : > { %5807 = vmatpush.bf16.msra.mxu2 %v10396_v46  ;;  %v10421_v46 = vld [vmem:[#allocation6 + $0x548] sm:$0xff] }
 0x585   : > { %6170 = vmatpush.bf16.msrb.mxu2 %v10435_v23 }
 0x5a0   : > { %v5443_v40 = vpop.permute.xlu0 %5442 }
 0x5a1   : > { %5446 = vst.msk [vmem:[#allocation3 + $0x4] sm:$0x1] %vm5445_vm9, %v5443_v40 }
 0x5a8   : > { %v5448_v12 = vpop.permute.xlu0 %5447  ;;  %v5462_v9 = vpop.permute.xlu2 %5461 }
 0x5a9   : > { %5450 = vst.msk [vmem:[#allocation3 + $0x5] sm:$0x1] %vm5445_vm9, %v5448_v12  ;;  %v10427_v12 = vld [vmem:[#allocation6 + $0x578] sm:$0xff] }
 0x5aa   : > { %5464 = vst.msk [vmem:[#allocation3 + $0x8] sm:$0x1] %vm5445_vm9, %v5462_v9  ;;  %v10419_v9 = vld [vmem:[#allocation6 + $0x538] sm:$0xff]  ;;  %6023 = vmatpush.bf16.msrb.mxu0 %v10427_v12 }
 0x5ab   : > { %6085 = vmatpush.bf16.msrb.mxu1 %v10419_v9 }
 0x5ae   : > { %6024 = vmatpush.bf16.msrb.mxu0 %v10426_v24 }
 0x5af   : > { %6086 = vmatpush.bf16.msrb.mxu1 %v10418_v25  ;;  %v10459_v25 = vld [vmem:[#allocation6 + $0x678] sm:$0xff] }
 0x5b0   : > { %v5453_v27 = vpop.permute.xlu1 %5452  ;;  %v5466_v28 = vpop.permute.xlu2 %5465 }
 0x5b1   : > { %5455 = vst.msk [vmem:[#allocation3 + $0x6] sm:$0x1] %vm5445_vm9, %v5453_v27  ;;  %v10434_v27 = vld [vmem:[#allocation6 + $0x5b0] sm:$0xff] }
 0x5b2   : > { %5468 = vst.msk [vmem:[#allocation3 + $0x9] sm:$0x1] %vm5445_vm9, %v5466_v28  ;;  %v10442_v28 = vld [vmem:[#allocation6 + $0x5f0] sm:$0xff]  ;;  %6171 = vmatpush.bf16.msrb.mxu2 %v10434_v27 }
 0x5b3   : > { %6087 = vmatpush.bf16.msrb.mxu1 %v10417_v29 }
 0x5b6   : > { %6172 = vmatpush.bf16.msrb.mxu2 %v10433_v30 }
 0x5b7   : > { %6088 = vmatpush.bf16.msrb.mxu1 %v10416_v32 }
 0x5b8   : > { %v5457_v49 = vpop.permute.xlu1 %5456 }
 0x5b9   : > { %5459 = vst.msk [vmem:[#allocation3 + $0x7] sm:$0x1] %vm5445_vm9, %v5457_v49  ;;  %v10425_v49 = vld [vmem:[#allocation6 + $0x568] sm:$0xff] }
 0x5ba   : > { %6025 = vmatpush.bf16.msrb.mxu0 %v10425_v49  ;;  %6173 = vmatpush.bf16.msrb.mxu2 %v10432_v33 }
 0x5bb   : > { %6089 = vmatpush.bf16.msrb.mxu1 %v10415_v39 }
 0x5be   : > { %6026 = vmatpush.bf16.msrb.mxu0 %v10424_v31  ;;  %6174 = vmatpush.bf16.msrb.mxu2 %v10431_v41 }
 0x5bf   : > { %6090 = vmatpush.bf16.msrb.mxu1 %v10414_v44 }
 0x5c0   : > { %v5478_v56 = vld [vmem:[#allocation3] sm:$0xff] }
 0x5c2   : > { %6027 = vmatpush.bf16.msrb.mxu0 %v10423_v38  ;;  %6175 = vmatpush.bf16.msrb.mxu2 %v10430_v52 }
 0x5c6   : > { %6028 = vmatpush.bf16.msrb.mxu0 %v10422_v43 }
 0x5ca   : > { %6029 = vmatpush.bf16.msrb.mxu0 %v10421_v46 }
 0x5ce   : > { %6030 = vmatpush.bf16.msrb.mxu0 %v10420_v51 }
 0x5e0   : > { %v5475_v34 = vpop.permute.xlu1 %5474  ;;  %v5471_v55 = vpop.permute.xlu0 %5470 }
 0x5e1   : > { %5477 = vst.msk [vmem:[#allocation3 + $0xb] sm:$0x1] %vm5445_vm9, %v5475_v34  ;;  %v10413_v34 = vld [vmem:[#allocation6 + $0x508] sm:$0xff] }
 0x5e2   : > { %5473 = vst.msk [vmem:[#allocation3 + $0xa] sm:$0x1] %vm5445_vm9, %v5471_v55  ;;  %v10429_v55 = vld [vmem:[#allocation6 + $0x588] sm:$0xff]  ;;  %6091 = vmatpush.bf16.msrb.mxu1 %v10413_v34 }
 0x5e3   : > { %6176 = vmatpush.bf16.msrb.mxu2 %v10429_v55 }
 0x5e9   : > { %v5479_v57 = vld [vmem:[#allocation3 + $0x8] sm:$0xff] }
 0x5ea   : > { %v5480_v58 = vpack.c.bf16 %v5479_v57, %v5478_v56  ;;  %v10438_v56 = vld [vmem:[#allocation6 + $0x5d0] sm:$0xff] }
 0x5eb   : > { %v10450_v57 = vld [vmem:[#allocation6 + $0x630] sm:$0xff] }
 0x5ec   : > { %5641 = vmatmul.bf16.vlgmr.msra.gmra.mxu0 %v5480_v58  ;;  %v5665_v59 = vrot.slane %v5480_v58, 1  ;;  %v5516_v60 = vshrl.u32 %v5480_v58, 16  ;;  %v5518_v61 = vshll.u32 %v5480_v58, 16  ;;  %v5833_v37 = vrot.slane %v5480_v58, 2  ;;  %v10412_v58 = vld [vmem:[#allocation6 + $0x500] sm:$0xff] }
 0x5ed   : > { %6346 = vmatpush.bf16.msra.mxu0 %v10451_v54  ;;  %6092 = vmatpush.bf16.msrb.mxu1 %v10412_v58  ;;  %v10474_v58 = vld [vmem:[#allocation6 + $0x6f0] sm:$0xff] }
 0x5ee   : > { %5723 = vmatmul.bf16.vlgmr.msra.gmra.mxu1 %v5665_v59  ;;  %v5520_v16 = vrot.slane %v5518_v61, 1  ;;  %v5748_v50 = vrot.slane %v5516_v60, 1  ;;  %v5749_v63 = vrot.slane %v5518_v61, 2  ;;  %v10428_v59 = vld [vmem:[#allocation6 + $0x580] sm:$0xff]  ;;  %v10449_v61 = vld [vmem:[#allocation6 + $0x628] sm:$0xff] }
 0x5ef   : > { %6177 = vmatpush.bf16.msrb.mxu2 %v10428_v59  ;;  %v10483_v59 = vld [vmem:[#allocation6 + $0x738] sm:$0xff] }
 0x5f0   : > { %v5521_v1 = vor.u32 %v5520_v16, %v5516_v60  ;;  %v5750_v15 = vor.u32 %v5749_v63, %v5748_v50  ;;  %v10437_v60 = vld [vmem:[#allocation6 + $0x5c8] sm:$0xff]  ;;  %v10436_v16 = vld [vmem:[#allocation6 + $0x5c0] sm:$0xff]  ;;  %v10447_v63 = vld [vmem:[#allocation6 + $0x618] sm:$0xff] }
 0x5f1   : > { %6347 = vmatpush.bf16.msra.mxu0 %v10450_v57  ;;  %v10448_v50 = vld [vmem:[#allocation6 + $0x620] sm:$0xff]  ;;  %v10467_v57 = vld [vmem:[#allocation6 + $0x6b8] sm:$0xff] }
 0x5f2   : > { %5579 = vmatmul.bf16.vlgmr.msrb.gmra.mxu3 %v5521_v1  ;;  %5808 = vmatmul.bf16.vlgmr.msra.gmra.mxu2 %v5750_v15  ;;  %v10446_v1 = vld [vmem:[#allocation6 + $0x610] sm:$0xff]  ;;  %v10445_v15 = vld [vmem:[#allocation6 + $0x608] sm:$0xff] }
 0x5f3   : > { %6261 = vmatpush.bf16.msrb.mxu3 %v10443_v26  ;;  %v10475_v26 = vld [vmem:[#allocation6 + $0x6f8] sm:$0xff]  ;;  %6555 = vmatpush.bf16.msra.mxu2 %v10459_v25  ;;  %v10486_v25 = vld [vmem:[#allocation6 + $0x750] sm:$0xff] }
 0x5f4   : > { %6489 = vmatpush.bf16.msra.mxu1 %v10467_v57 }
 0x5f5   : > { %6348 = vmatpush.bf16.msra.mxu0 %v10449_v61  ;;  %v10466_v61 = vld [vmem:[#allocation6 + $0x6b0] sm:$0xff] }
 0x5f7   : > { %6262 = vmatpush.bf16.msrb.mxu3 %v10442_v28  ;;  %v10458_v28 = vld [vmem:[#allocation6 + $0x670] sm:$0xff] }
 0x5f8   : > { %6556 = vmatpush.bf16.msra.mxu2 %v10458_v28  ;;  %6490 = vmatpush.bf16.msra.mxu1 %v10466_v61 }
 0x5f9   : > { %6349 = vmatpush.bf16.msra.mxu0 %v10448_v50  ;;  %v10482_v50 = vld [vmem:[#allocation6 + $0x730] sm:$0xff] }
 0x5fb   : > { %6263 = vmatpush.bf16.msrb.mxu3 %v10441_v35 }
 0x5fd   : > { %6350 = vmatpush.bf16.msra.mxu0 %v10447_v63  ;;  %v10456_v63 = vld [vmem:[#allocation6 + $0x660] sm:$0xff] }
 0x5ff   : > { %6264 = vmatpush.bf16.msrb.mxu3 %v10440_v36  ;;  %v10581_v36 = vld [vmem:[%s11133_s2 + $0x4] ss:$0 sm:$0xff] }
 0x601   : > { %6351 = vmatpush.bf16.msra.mxu0 %v10446_v1  ;;  %v10465_v1 = vld [vmem:[#allocation6 + $0x6a8] sm:$0xff] }
 0x602   : > { %5891 = vmatmul.bf16.vlgmr.msra.gmra.mxu3 %v5833_v37  ;;  %v10444_v37 = vld [vmem:[#allocation6 + $0x600] sm:$0xff]  ;;  %6491 = vmatpush.bf16.msra.mxu1 %v10465_v1 }
 0x603   : > { %6265 = vmatpush.bf16.msrb.mxu3 %v10439_v53 }
 0x605   : > { %6352 = vmatpush.bf16.msra.mxu0 %v10445_v15  ;;  %v10472_v15 = vld [vmem:[#allocation6 + $0x6e0] sm:$0xff] }
 0x607   : > { %6266 = vmatpush.bf16.msrb.mxu3 %v10438_v56 }
 0x609   : > { %6353 = vmatpush.bf16.msra.mxu0 %v10444_v37  ;;  %v10481_v37 = vld [vmem:[#allocation6 + $0x728] sm:$0xff] }
 0x60b   : > { %6267 = vmatpush.bf16.msrb.mxu3 %v10437_v60  ;;  %v10457_v60 = vld [vmem:[#allocation6 + $0x668] sm:$0xff] }
 0x60c   : > { %6557 = vmatpush.bf16.msra.mxu2 %v10457_v60 }
 0x60f   : > { %6268 = vmatpush.bf16.msrb.mxu3 %v10436_v16  ;;  %v10473_v16 = vld [vmem:[#allocation6 + $0x6e8] sm:$0xff] }
 0x610   : > { %6558 = vmatpush.bf16.msra.mxu2 %v10456_v63 }
 0x613   : > { %6645 = vmatpush.bf16.msra.mxu3 %v10475_v26  ;;  %v10485_v26 = vld [vmem:[#allocation6 + $0x748] sm:$0xff] }
 0x617   : > { %6646 = vmatpush.bf16.msra.mxu3 %v10474_v58 }
 0x61b   : > { %6647 = vmatpush.bf16.msra.mxu3 %v10473_v16 }
 0x61f   : > { %6648 = vmatpush.bf16.msra.mxu3 %v10472_v15 }
 0x669   : > { %v5642_v62 = vpop.f32.mrf.mxu0 }
 0x66b   : > { %v5724_v17 = vpop.f32.mrf.mxu1 }
 0x671   : > { %v5644_v6 = vpop.f32.mrf.mxu0 }
 0x673   : > { %v5726_v11 = vpop.f32.mrf.mxu1 }
 0x675   : > { %v5580_v18 = vpop.f32.mrf.mxu3  ;;  %v5809_v5 = vpop.f32.mrf.mxu2 }
 0x676   : > { %v5643_v2 = vadd.f32 %v5642_v62, %v5580_v18  ;;  %v5925_v18 = vld [vmem:[#allocation4 + $0x10] sm:$0xf] }
 0x678   : > { %v5729_v4 = vadd.f32 %v5724_v17, %v5643_v2  ;;  %v5944_v2 = vpack.c.bf16 %v5925_v18, %v5925_v18  ;;  %v10455_v18 = vld [vmem:[#allocation6 + $0x658] sm:$0xff] }
 0x679   : > { %6559 = vmatpush.bf16.msra.mxu2 %v10455_v18 }
 0x67a   : > { %v5814_v7 = vadd.f32 %v5809_v5, %v5729_v4  ;;  %v5970_v17 = vshll.u32 %v5944_v2, 16  ;;  %v6295_v23 = vrot.slane %v5944_v2, 2 }
 0x67d   : > { %v5582_v42 = vpop.f32.mrf.mxu3  ;;  %v5811_v45 = vpop.f32.mrf.mxu2 }
 0x67e   : > { %v5645_v8 = vadd.f32 %v5644_v6, %v5582_v42  ;;  %v6206_v42 = vshrl.u32 %v5944_v2, 16 }
 0x680   : > { %v5730_v40 = vadd.f32 %v5726_v11, %v5645_v8  ;;  %v6208_v6 = vrot.slane %v6206_v42, 1  ;;  %v10454_v42 = vld [vmem:[#allocation6 + $0x650] sm:$0xff] }
 0x681   : > { %6560 = vmatpush.bf16.msra.mxu2 %v10454_v42 }
 0x682   : > { %v5815_v19 = vadd.f32 %v5811_v45, %v5730_v40  ;;  %v5972_v40 = vrot.slane %v5970_v17, 1 }
 0x685   : > { %v5892_v0 = vpop.f32.mrf.mxu3 }
 0x686   : > { %v5897_v48 = vadd.f32 %v5892_v0, %v5814_v7  ;;  %v6209_v7 = vrot.slane %v5970_v17, 2  ;;  %v10480_v17 = vld [vmem:[#allocation6 + $0x720] sm:$0xff] }
 0x688   : > { %v5904_v13 = vadd.f32 %v10580_v10, %v5897_v48 }
 0x68a   : > { %v5906_v14 = vmax.f32 %v5904_v13, 0.0  ;;  %v6210_v13 = vor.u32 %v6209_v7, %v6208_v6  ;;  %v10479_v6 = vld [vmem:[#allocation6 + $0x718] sm:$0xff]  ;;  %v10453_v7 = vld [vmem:[#allocation6 + $0x648] sm:$0xff] }
 0x68b   : > { %6561 = vmatpush.bf16.msra.mxu2 %v10453_v7 }
 0x68c   : > { %5913 = vrot.lane.b32.xlu2 %v5906_v14, %s10777_s16 }
 0x68d   : > { %v5894_v20 = vpop.f32.mrf.mxu3 }
 0x68e   : > { %v5898_v21 = vadd.f32 %v5894_v20, %v5815_v19 }
 0x690   : > { %v5905_v22 = vadd.f32 %v10580_v10, %v5898_v21  ;;  %v6119_v10 = vrot.slane %v5944_v2, 1  ;;  %v10471_v2 = vld [vmem:[#allocation6 + $0x6d8] sm:$0xff] }
 0x691   : > { %6649 = vmatpush.bf16.msra.mxu3 %v10471_v2 }
 0x692   : > { %v5907_v3 = vmax.f32 %v5905_v22, 0.0 }
 0x694   : > { %5915 = vrot.lane.b32.xlu0 %v5907_v3, %s10777_s16 }
 0x6e6   : > { %v5914_v47 = vpop.permute.xlu2 %5913 }
 0x6e7   : > { %5920 = vst.msk [vmem:[#allocation4 + $0x4] sm:$0xff] %vm5919_vm10, %v5914_v47 }
 0x6ee   : > { %v5923_v4 = vld [vmem:[#allocation4] sm:$0xff] }
 0x706   : > { %v5916_v62 = vpop.permute.xlu0 %5915 }
 0x707   : > { %5922 = vst.msk [vmem:[#allocation4 + $0xc] sm:$0xf] %vm5921_vm11, %v5916_v62  ;;  %v10464_v62 = vld [vmem:[#allocation6 + $0x6a0] sm:$0xff] }
 0x708   : > { %6492 = vmatpush.bf16.msra.mxu1 %v10464_v62 }
 0x70e   : > { %v5924_v5 = vld [vmem:[#allocation4 + $0x8] sm:$0xff] }
 0x70f   : > { %v5926_v8 = vpack.c.bf16 %v5924_v5, %v5923_v4  ;;  %v10463_v4 = vld [vmem:[#allocation6 + $0x698] sm:$0xff]  ;;  %v10470_v5 = vld [vmem:[#allocation6 + $0x6d0] sm:$0xff] }
 0x710   : > { %6493 = vmatpush.bf16.msra.mxu1 %v10463_v4  ;;  %6650 = vmatpush.bf16.msra.mxu3 %v10470_v5 }
 0x711   : > { %6093 = vmatmul.bf16.vlgmr.msrb.gmra.mxu1 %v5926_v8  ;;  %v6118_v0 = vrot.slane %v5926_v8, 1  ;;  %v5963_v48 = vshrl.u32 %v5926_v8, 16  ;;  %v5965_v11 = vshll.u32 %v5926_v8, 16  ;;  %v6294_v9 = vrot.slane %v5926_v8, 2  ;;  %v10462_v8 = vld [vmem:[#allocation6 + $0x690] sm:$0xff] }
 0x713   : > { %v6120_v14 = vsel %vm676_vm2, %v6118_v0, %v6119_v10  ;;  %v5967_v45 = vrot.slane %v5965_v11, 1  ;;  %v6203_v19 = vrot.slane %v5963_v48, 1  ;;  %v6204_v20 = vrot.slane %v5965_v11, 2  ;;  %v10469_v10 = vld [vmem:[#allocation6 + $0x6c8] sm:$0xff]  ;;  %v10478_v0 = vld [vmem:[#allocation6 + $0x710] sm:$0xff] }
 0x714   : > { %6178 = vmatmul.bf16.vlgmr.msrb.gmra.mxu2 %v6120_v14  ;;  %v6296_v24 = vsel %vm854_vm5, %v6294_v9, %v6295_v23  ;;  %6494 = vmatpush.bf16.msra.mxu1 %v10462_v8  ;;  %v10461_v11 = vld [vmem:[#allocation6 + $0x688] sm:$0xff]  ;;  %v10460_v14 = vld [vmem:[#allocation6 + $0x680] sm:$0xff] }
 0x715   : > { %v5968_v21 = vor.u32 %v5967_v45, %v5963_v48  ;;  %v6205_v22 = vor.u32 %v6204_v20, %v6203_v19  ;;  %v10452_v48 = vld [vmem:[#allocation6 + $0x640] sm:$0xff]  ;;  %6651 = vmatpush.bf16.msra.mxu3 %v10469_v10  ;;  %v10491_v19 = vld [vmem:[#allocation6 + $0x778] sm:$0xff] }
 0x716   : > { %6562 = vmatpush.bf16.msra.mxu2 %v10452_v48  ;;  %v10476_v45 = vld [vmem:[#allocation6 + $0x700] sm:$0xff] }
 0x717   : > { %v5973_v3 = vsel %vm519_vm3, %v5968_v21, %v5972_v40  ;;  %v6211_v12 = vsel %vm762_vm4, %v6205_v22, %v6210_v13  ;;  %v10468_v40 = vld [vmem:[#allocation6 + $0x6c0] sm:$0xff]  ;;  %v10477_v13 = vld [vmem:[#allocation6 + $0x708] sm:$0xff]  ;;  %v10490_v21 = vld [vmem:[#allocation6 + $0x770] sm:$0xff] }
 0x718   : > { %6031 = vmatmul.bf16.vlgmr.msrb.gmra.mxu0 %v5973_v3  ;;  %6269 = vmatmul.bf16.vlgmr.msrb.gmra.mxu3 %v6211_v12  ;;  %v10489_v22 = vld [vmem:[#allocation6 + $0x768] sm:$0xff]  ;;  %v10488_v3 = vld [vmem:[#allocation6 + $0x760] sm:$0xff]  ;;  %v10487_v12 = vld [vmem:[#allocation6 + $0x758] sm:$0xff] }
 0x719   : > { %6740 = vmatpush.bf16.msrb.mxu0 %v10483_v59  ;;  %6495 = vmatpush.bf16.msra.mxu1 %v10461_v11 }
 0x71a   : > { %10492 = vmatpush.bf16.msrb.mxu2 %v10483_v59  ;;  %6652 = vmatpush.bf16.msra.mxu3 %v10468_v40 }
 0x71d   : > { %6741 = vmatpush.bf16.msrb.mxu0 %v10482_v50  ;;  %6496 = vmatpush.bf16.msra.mxu1 %v10460_v14 }
 0x71e   : > { %10493 = vmatpush.bf16.msrb.mxu2 %v10482_v50  ;;  %10500 = vmatpush.bf16.msrb.mxu3 %v10491_v19 }
 0x721   : > { %6742 = vmatpush.bf16.msrb.mxu0 %v10481_v37  ;;  %6831 = vmatpush.bf16.msrb.mxu1 %v10491_v19 }
 0x722   : > { %10494 = vmatpush.bf16.msrb.mxu2 %v10481_v37  ;;  %10501 = vmatpush.bf16.msrb.mxu3 %v10490_v21 }
 0x725   : > { %6743 = vmatpush.bf16.msrb.mxu0 %v10480_v17  ;;  %6832 = vmatpush.bf16.msrb.mxu1 %v10490_v21 }
 0x726   : > { %10495 = vmatpush.bf16.msrb.mxu2 %v10480_v17  ;;  %10502 = vmatpush.bf16.msrb.mxu3 %v10489_v22 }
 0x728   : > { %6354 = vmatmul.bf16.vlgmr.msra.gmra.mxu0 %v6296_v24 }
 0x729   : > { %6744 = vmatpush.bf16.msrb.mxu0 %v10479_v6  ;;  %6833 = vmatpush.bf16.msrb.mxu1 %v10489_v22 }
 0x72a   : > { %10496 = vmatpush.bf16.msrb.mxu2 %v10479_v6  ;;  %10503 = vmatpush.bf16.msrb.mxu3 %v10488_v3 }
 0x72d   : > { %6745 = vmatpush.bf16.msrb.mxu0 %v10478_v0  ;;  %6834 = vmatpush.bf16.msrb.mxu1 %v10488_v3 }
 0x72e   : > { %10497 = vmatpush.bf16.msrb.mxu2 %v10478_v0  ;;  %10504 = vmatpush.bf16.msrb.mxu3 %v10487_v12  ;;  %v10582_v0 = vld [vmem:[%s11133_s2 + $0x5] ss:$0 sm:$0xff] }
 0x731   : > { %6746 = vmatpush.bf16.msrb.mxu0 %v10477_v13  ;;  %6835 = vmatpush.bf16.msrb.mxu1 %v10487_v12 }
 0x732   : > { %10498 = vmatpush.bf16.msrb.mxu2 %v10477_v13  ;;  %10505 = vmatpush.bf16.msrb.mxu3 %v10486_v25 }
 0x735   : > { %6747 = vmatpush.bf16.msrb.mxu0 %v10476_v45  ;;  %6836 = vmatpush.bf16.msrb.mxu1 %v10486_v25 }
 0x736   : > { %10499 = vmatpush.bf16.msrb.mxu2 %v10476_v45  ;;  %10506 = vmatpush.bf16.msrb.mxu3 %v10485_v26 }
 0x739   : > { %6837 = vmatpush.bf16.msrb.mxu1 %v10485_v26 }
 0x78e   : > { %v6094_v49 = vpop.f32.mrf.mxu1 }
 0x795   : > { %v6032_v27 = vpop.f32.mrf.mxu0 }
 0x796   : > { %v6095_v35 = vadd.f32 %v6094_v49, %v6032_v27  ;;  %v6096_v38 = vpop.f32.mrf.mxu1 }
 0x797   : > { %v6179_v29 = vpop.f32.mrf.mxu2 }
 0x798   : > { %v6184_v32 = vadd.f32 %v6179_v29, %v6095_v35 }
 0x79b   : > { %v6270_v31 = vpop.f32.mrf.mxu3 }
 0x79c   : > { %v6275_v33 = vadd.f32 %v6270_v31, %v6184_v32  ;;  %v10484_v32 = vld [vmem:[#allocation6 + $0x740] sm:$0xff] }
 0x79d   : > { %v6034_v30 = vpop.f32.mrf.mxu0  ;;  %10507 = vmatpush.bf16.msrb.mxu3 %v10484_v32  ;;  %6838 = vmatpush.bf16.msrb.mxu1 %v10484_v32 }
 0x79e   : > { %v6097_v41 = vadd.f32 %v6096_v38, %v6034_v30 }
 0x79f   : > { %v6181_v44 = vpop.f32.mrf.mxu2 }
 0x7a0   : > { %v6185_v51 = vadd.f32 %v6181_v44, %v6097_v41 }
 0x7a3   : > { %v6272_v47 = vpop.f32.mrf.mxu3 }
 0x7a4   : > { %v6276_v53 = vadd.f32 %v6272_v47, %v6185_v51 }
 0x7a5   : > { %v6355_v39 = vpop.f32.mrf.mxu0 }
 0x7a6   : > { %v6360_v43 = vadd.f32 %v6355_v39, %v6275_v33 }
 0x7a8   : > { %v6367_v46 = vadd.f32 %v10581_v36, %v6360_v43 }
 0x7aa   : > { %v6369_v52 = vmax.f32 %v6367_v46, 0.0 }
 0x7ac   : > { %6376 = vrot.lane.b32.xlu1 %v6369_v52, %s10778_s25 }
 0x7ad   : > { %v6357_v54 = vpop.f32.mrf.mxu0 }
 0x7ae   : > { %v6361_v34 = vadd.f32 %v6357_v54, %v6276_v53 }
 0x7b0   : > { %v6368_v55 = vadd.f32 %v10581_v36, %v6361_v34 }
 0x7b2   : > { %v6370_v56 = vmax.f32 %v6368_v55, 0.0 }
 0x7b4   : > { %6378 = vrot.lane.b32.xlu2 %v6370_v56, %s10778_s25 }
 0x80e   : > { %v6379_v20 = vpop.permute.xlu2 %6378 }
 0x80f   : > { %6384 = vst.msk [vmem:[#allocation5 + $0xc] sm:$0xff] %vm6382_vm12, %v6379_v20 }
 0x816   : > { %v6387_v9 = vld [vmem:[#allocation5 + $0x10] sm:$0xff] }
 0x817   : > { %v6389_v24 = vpack.c.bf16 %v6387_v9, %v6387_v9 }
 0x819   : > { %v6436_v27 = vshrl.u32 %v6389_v24, 16  ;;  %v6432_v28 = vshll.u32 %v6389_v24, 16  ;;  %v6593_v35 = vrot.slane %v6389_v24, 1  ;;  %v6779_v56 = vrot.slane %v6389_v24, 2 }
 0x81b   : > { %v6686_v31 = vrot.slane %v6436_v27, 1  ;;  %v6687_v39 = vrot.slane %v6432_v28, 2  ;;  %v6434_v51 = vrot.slane %v6432_v28, 1 }
 0x81d   : > { %v6688_v53 = vor.u32 %v6687_v39, %v6686_v31  ;;  %v6438_v55 = vor.u32 %v6436_v27, %v6434_v51 }
 0x81e   : > { %v6377_v23 = vpop.permute.xlu1 %6376 }
 0x81f   : > { %6383 = vst.msk [vmem:[#allocation5 + $0x4] sm:$0xff] %vm6382_vm12, %v6377_v23 }
 0x826   : > { %v6385_v49 = vld [vmem:[#allocation5] sm:$0xff]  ;;  %v6386_v29 = vld [vmem:[#allocation5 + $0x8] sm:$0xff] }
 0x827   : > { %v6388_v30 = vpack.c.bf16 %v6386_v29, %v6385_v49 }
 0x829   : > { %6563 = vmatmul.bf16.vlgmr.msra.gmra.mxu2 %v6388_v30  ;;  %v6592_v33 = vrot.slane %v6388_v30, 1  ;;  %v6425_v36 = vshrl.u32 %v6388_v30, 16  ;;  %v6427_v38 = vshll.u32 %v6388_v30, 16  ;;  %v6778_v57 = vrot.slane %v6388_v30, 2 }
 0x82b   : > { %v6594_v41 = vsel %vm676_vm2, %v6592_v33, %v6593_v35  ;;  %v6429_v43 = vrot.slane %v6427_v38, 1  ;;  %v6683_v44 = vrot.slane %v6425_v36, 1  ;;  %v6684_v46 = vrot.slane %v6427_v38, 2 }
 0x82c   : > { %6653 = vmatmul.bf16.vlgmr.msra.gmra.mxu3 %v6594_v41  ;;  %v6780_v58 = vsel %vm854_vm5, %v6778_v57, %v6779_v56 }
 0x82d   : > { %v6430_v47 = vor.u32 %v6429_v43, %v6425_v36  ;;  %v6685_v52 = vor.u32 %v6684_v46, %v6683_v44 }
 0x82f   : > { %v6435_v54 = vsel %vm519_vm3, %v6430_v47, %v6434_v51  ;;  %v6689_v34 = vsel %vm762_vm4, %v6685_v52, %v6688_v53 }
 0x830   : > { %6497 = vmatmul.bf16.vlgmr.msra.gmra.mxu1 %v6435_v54  ;;  %6748 = vmatmul.bf16.vlgmr.msrb.gmra.mxu0 %v6689_v34 }
 0x839   : > { %6568 = vmatmul.bf16.gmra.mxu2 %v6389_v24 }
 0x83c   : > { %6658 = vmatmul.bf16.gmra.mxu3 %v6593_v35 }
 0x840   : > { %6502 = vmatmul.bf16.gmra.mxu1 %v6438_v55 }
 0x849   : > { %6753 = vmatmul.bf16.vlgmr.msrb.gmra.mxu2 %v6688_v53 }
 0x84c   : > { %6844 = vmatmul.bf16.vlgmr.msrb.gmra.mxu3 %v6779_v56 }
 0x850   : > { %6839 = vmatmul.bf16.vlgmr.msrb.gmra.mxu1 %v6780_v58 }
 0x8ac   : > { %v6564_v59 = vpop.f32.mrf.mxu2 }
 0x8ad   : > { %v6498_v60 = vpop.f32.mrf.mxu1  ;;  %v6749_v5 = vpop.f32.mrf.mxu0 }
 0x8ae   : > { %v6565_v18 = vadd.f32 %v6564_v59, %v6498_v60 }
 0x8af   : > { %v6654_v61 = vpop.f32.mrf.mxu3 }
 0x8b0   : > { %v6663_v4 = vadd.f32 %v6654_v61, %v6565_v18 }
 0x8b2   : > { %v6758_v10 = vadd.f32 %v6749_v5, %v6663_v4 }
 0x8b4   : > { %v6566_v16 = vpop.f32.mrf.mxu2 }
 0x8b5   : > { %v6500_v50 = vpop.f32.mrf.mxu1  ;;  %v6751_v22 = vpop.f32.mrf.mxu0 }
 0x8b6   : > { %v6567_v7 = vadd.f32 %v6566_v16, %v6500_v50 }
 0x8b7   : > { %v6656_v63 = vpop.f32.mrf.mxu3 }
 0x8b8   : > { %v6664_v14 = vadd.f32 %v6656_v63, %v6567_v7 }
 0x8ba   : > { %v6759_v9 = vadd.f32 %v6751_v22, %v6664_v14 }
 0x8bc   : > { %v6569_v1 = vpop.f32.mrf.mxu2 }
 0x8bd   : > { %v6503_v15 = vpop.f32.mrf.mxu1 }
 0x8be   : > { %v6570_v17 = vadd.f32 %v6569_v1, %v6503_v15 }
 0x8bf   : > { %v6659_v37 = vpop.f32.mrf.mxu3 }
 0x8c0   : > { %v6665_v6 = vadd.f32 %v6659_v37, %v6570_v17 }
 0x8c4   : > { %v6571_v62 = vpop.f32.mrf.mxu2 }
 0x8c5   : > { %v6505_v2 = vpop.f32.mrf.mxu1 }
 0x8c7   : > { %v6661_v42 = vpop.f32.mrf.mxu3 }
 0x8cc   : > { %v6754_v8 = vpop.f32.mrf.mxu2 }
 0x8cd   : > { %v6760_v48 = vadd.f32 %v6754_v8, %v6665_v6  ;;  %v6840_v11 = vpop.f32.mrf.mxu1 }
 0x8ce   : > { %v6849_v40 = vadd.f32 %v6840_v11, %v6758_v10 }
 0x8cf   : > { %v6845_v13 = vpop.f32.mrf.mxu3 }
 0x8d0   : > { %v6857_v45 = vadd.f32 %v10582_v0, %v6849_v40  ;;  %v6851_v19 = vadd.f32 %v6845_v13, %v6760_v48 }
 0x8d2   : > { %v9799_v20 = vmul.f32 -1.442695, %v6857_v45  ;;  %v6859_v21 = vadd.f32 %v10582_v0, %v6851_v19 }
 0x8d4   : > { %10583 = vpow2.f32 %v9799_v20  ;;  %v9801_v3 = vmul.f32 -1.442695, %v6859_v21  ;;  %v6756_v12 = vpop.f32.mrf.mxu2 }
 0x8d5   : > { %v6842_v23 = vpop.f32.mrf.mxu1 }
 0x8d6   : > { %10585 = vpow2.f32 %v9801_v3  ;;  %v6850_v24 = vadd.f32 %v6842_v23, %v6759_v9 }
 0x8d7   : > { %v6847_v25 = vpop.f32.mrf.mxu3 }
 0x8d8   : > { %v6858_v26 = vadd.f32 %v10582_v0, %v6850_v24 }
 0x8da   : > { %v10584_v27 = vpop.eup %10583  ;;  %v9800_v28 = vmul.f32 -1.442695, %v6858_v26 }
 0x8db   : > { %v6869_v49 = vadd.f32 1.0, %v10584_v27 }
 0x8dc   : > { %v10586_v29 = vpop.eup %10585  ;;  %10587 = vpow2.f32 %v9800_v28 }
 0x8dd   : > { %10589 = vrcp.f32 %v6869_v49  ;;  %v6871_v30 = vadd.f32 1.0, %v10586_v29  ;;  %v6883_v39 = vand.u32 2147483648, %v6869_v49  ;;  %v6881_v44 = vand.u32 2147483647, %v6869_v49 }
 0x8de   : > { %vm6877_vm14 = vweird.f32 %v6869_v49 }
 0x8df   : > { %10591 = vrcp.f32 %v6871_v30  ;;  %v6913_v51 = vand.u32 2147483648, %v6871_v30  ;;  %v6884_v53 = vor.u32 1.1754944e-38, %v6883_v39  ;;  %v6911_v34 = vand.u32 2147483647, %v6871_v30 }
 0x8e0   : > { %vm6882_vm3 = vcmp.eq.f32.partialorder %v6881_v44, 8.507059e+37  ;;  %vm6907_vm4 = vweird.f32 %v6871_v30 }
 0x8e1   : > { %v6914_v59 = vor.u32 1.1754944e-38, %v6913_v51  ;;  %vm6912_vm6 = vcmp.eq.f32.partialorder %v6911_v34, 8.507059e+37 }
 0x8e2   : > { %v10588_v35 = vpop.eup %10587 }
 0x8e3   : > { %v10590_v31 = vpop.eup %10589  ;;  %v6870_v32 = vadd.f32 1.0, %v10588_v35 }
 0x8e4   : > { %v6873_v33 = vmul.f32 %v10590_v31, %v6869_v49  ;;  %vm6878_vm13 = vweird.f32 %v10590_v31 }
 0x8e5   : > { %10593 = vrcp.f32 %v6870_v32  ;;  %v10592_v36 = vpop.eup %10591  ;;  %vm6879_vm15 = vmor %vm6877_vm14, %vm6878_vm13  ;;  %v6898_v16 = vand.u32 2147483648, %v6870_v32  ;;  %v6896_v1 = vand.u32 2147483647, %v6870_v32  ;;  %vm6892_vm8 = vweird.f32 %v6870_v32 }
 0x8e6   : > { %v6874_v38 = vsub.f32 1.0, %v6873_v33  ;;  %v6903_v41 = vmul.f32 %v10592_v36, %v6871_v30  ;;  %vm6908_vm2 = vweird.f32 %v10592_v36 }
 0x8e7   : > { %vm6909_vm5 = vmor %vm6907_vm4, %vm6908_vm2  ;;  %v6899_v37 = vor.u32 1.1754944e-38, %v6898_v16  ;;  %vm6897_vm10 = vcmp.eq.f32.partialorder %v6896_v1, 8.507059e+37 }
 0x8e8   : > { %v6875_v43 = vmul.f32 %v10590_v31, %v6874_v38  ;;  %v6904_v46 = vsub.f32 1.0, %v6903_v41 }
 0x8ea   : > { %v6876_v47 = vadd.f32 %v10590_v31, %v6875_v43  ;;  %v6905_v54 = vmul.f32 %v10592_v36, %v6904_v46 }
 0x8eb   : > { %v10594_v52 = vpop.eup %10593 }
 0x8ec   : > { %v6880_v55 = vsel %vm6879_vm15, %v10590_v31, %v6876_v47  ;;  %v6888_v56 = vmul.f32 %v10594_v52, %v6870_v32  ;;  %v6906_v58 = vadd.f32 %v10592_v36, %v6905_v54  ;;  %vm6893_vm7 = vweird.f32 %v10594_v52 }
 0x8ed   : > { %v6885_v57 = vsel %vm6882_vm3, %v6884_v53, %v6880_v55  ;;  %vm6894_vm9 = vmor %vm6892_vm8, %vm6893_vm7 }
 0x8ee   : > { %6917 = vst.msk [vmem:[%s11120_s20] sm:$0xff] %vm476_vm0, %v6885_v57  ;;  %v6889_v60 = vsub.f32 1.0, %v6888_v56  ;;  %v6910_v61 = vsel %vm6909_vm5, %v10592_v36, %v6906_v58 }
 0x8ef   : > { %v6915_v50 = vsel %vm6912_vm6, %v6914_v59, %v6910_v61 }
 0x8f0   : > { %v6890_v63 = vmul.f32 %v10594_v52, %v6889_v60  ;;  %6919 = vst.msk [vmem:[%s11120_s20 + $0x10] sm:$0xf] %vm479_vm1, %v6915_v50 }
 0x8f2   : > { %v6891_v15 = vadd.f32 %v10594_v52, %v6890_v63 }
 0x8f4   : > { %v6895_v18 = vsel %vm6894_vm9, %v10594_v52, %v6891_v15 }
 0x8f5   : > { %v6900_v62 = vsel %vm6897_vm10, %v6899_v37, %v6895_v18 }
 0x8f6   : > { %6918 = vst.msk [vmem:[%s11120_s20 + $0x8] sm:$0xff] %vm476_vm0, %v6900_v62 }
 0x8f7 PF: > { %s24_s17 = sadd.s32 1, %s10763_s17  }
 0x8f8   : > { %p21_p7 = scmp.ge.s32.totalorder %s24_s17, 4  }
 0x8fa   :  { %23 = sbr.rel (!%p21_p7) target bundleno = 5 (0x5), region = 156 }
 0x8ff   :  { %6941 = vsyncpa [#allocation7], 1 }
 0x900   :  { %6943 = vsyncpa [#allocation7 + $0x1], 1 }
 0x901   :  { %6944 = vsyncpa [#allocation9], 1 }
 0x902   :  { %6945 = vsyncpa [#allocation12], 1 }

</bundles_post_ra>
